<compile_context>
chip_gen: v7x
topology: tpu7x:2x2x1
jax: 0.10.0
libtpu: 0.0.40
codegen_flags: <defaults>
</compile_context>

<pallas_src>
import functools
import math

import jax
import jax.numpy as jnp
from jax.experimental import pallas as pl
from jax.experimental.pallas import tpu as pltpu


def self_attention_kernel(v_ref, k_ref, q_ref, bias_ref,
                          wv_ref, wk_ref, wq_ref, wo_ref, bo_ref,
                          out_ref,
                          qp_ref, m_ref, l_ref, acc_ref,
                          *, heads, matmul_dtype, approx_reciprocal):
    # Block shapes per grid step (bn batch elements, tk keys):
    #   v_ref/k_ref : (bn, tk, E)   lane-dense, E last
    #   q_ref       : (bn, Lq, E)   resident across the kv axis
    #   bias_ref    : (1|bn, Lq, tk) additive mask bias (0 / -1e20), bf16
    #   wv/wk/wq    : (E, E)        block-diagonal fused per-head weights
    #   wo_ref      : (E, E)        fc_out weight, pre-transposed (in, out)
    #   bo_ref      : (1, E)        fp32 bias
    #   out_ref     : (bn, Lq, E)   written at the last kv step
    # Scratch (persists across the kv reduction axis):
    #   qp_ref  (bn, Lq, E) cdt     projected (and pre-scaled) queries
    #   m_ref   (H, bn, Lq, 1) f32  running max per head
    #   l_ref   (H, bn, Lq, 1) f32  running denominator per head
    #   acc_ref (bn, Lq, E) f32     un-normalized context, heads concatenated
    bn, tk, E = k_ref.shape
    Lq = q_ref.shape[1]
    H = heads
    D = E // H
    cdt = matmul_dtype

    kv = pl.program_id(1)
    nkv = pl.num_programs(1)

    # ---- per-batch-tile init: reset online-softmax state, project q once ---
    @pl.when(kv == 0)
    def _():
        m_ref[...] = jnp.full(m_ref.shape, -jnp.inf, m_ref.dtype)
        l_ref[...] = jnp.zeros(l_ref.shape, l_ref.dtype)
        acc_ref[...] = jnp.zeros(acc_ref.shape, acc_ref.dtype)
        q2 = q_ref[...].reshape(bn * Lq, E).astype(cdt)
        qp = jnp.dot(q2, wq_ref[...], preferred_element_type=jnp.float32)
        qp_ref[...] = qp.reshape(bn, Lq, E).astype(qp_ref.dtype)

    # ---- project this kv tile: one lane-dense (bn*tk, E) @ (E, E) each -----
    k2 = k_ref[...].reshape(bn * tk, E).astype(cdt)
    v2 = v_ref[...].reshape(bn * tk, E).astype(cdt)
    kp = jnp.dot(k2, wk_ref[...], preferred_element_type=jnp.float32)
    vp = jnp.dot(v2, wv_ref[...], preferred_element_type=jnp.float32)
    kp = kp.reshape(bn, tk, E).astype(cdt)   # cast back immediately: halves
    vp = vp.reshape(bn, tk, E).astype(cdt)   # live intermediate footprint

    bias = bias_ref[...].astype(jnp.float32)  # (1|bn, Lq, tk)
    qp = qp_ref[...]                          # (bn, Lq, E), cdt

    # ---- online softmax, head by head (static unroll over lane slices) -----
    for h in range(H):
        lo, hi = h * D, (h + 1) * D
        qh = qp[:, :, lo:hi]                  # (bn, Lq, D)
        kh = kp[:, :, lo:hi]                  # (bn, tk, D)
        vh = vp[:, :, lo:hi]                  # (bn, tk, D)

        s = jnp.einsum('bqd,bkd->bqk', qh, kh,
                       preferred_element_type=jnp.float32)   # (bn, Lq, tk)
        s = s + bias                          # broadcasts over batch/heads

        m_prev = m_ref[h]                     # (bn, Lq, 1)
        m_new = jnp.maximum(m_prev, jnp.max(s, axis=-1, keepdims=True))
        alpha = jnp.exp(m_prev - m_new)
        p = jnp.exp(s - m_new)                # fp32 exp; cast only for the MXU
        l_ref[h] = alpha * l_ref[h] + jnp.sum(p, axis=-1, keepdims=True)
        ctx_h = jnp.einsum('bqk,bkd->bqd', p.astype(cdt), vh,
                           preferred_element_type=jnp.float32)
        acc_ref[:, :, lo:hi] = alpha * acc_ref[:, :, lo:hi] + ctx_h
        m_ref[h] = m_new

    # ---- finalize: deferred normalization + fc_out (single lane-dense GEMM) -
    @pl.when(kv == nkv - 1)
    def _():
        for h in range(H):
            lo, hi = h * D, (h + 1) * D
            inv = pl.reciprocal(l_ref[h], approx=approx_reciprocal)
            acc_ref[:, :, lo:hi] = acc_ref[:, :, lo:hi] * inv
        ctx = acc_ref[...].reshape(bn * Lq, E).astype(cdt)   # heads already concat
        out = jnp.dot(ctx, wo_ref[...], preferred_element_type=jnp.float32)
        out = out + bo_ref[...].astype(jnp.float32)
        out_ref[...] = out.reshape(out_ref.shape).astype(out_ref.dtype)


def self_attention(values, keys, query, mask, params, *, embed_size, heads,
                   matmul_dtype=jnp.bfloat16, batch_block=8, kv_block=256,
                   approx_reciprocal=True, out_dtype=None):
    N, Lv, E = values.shape
    Lk = keys.shape[1]
    Lq = query.shape[1]
    H = heads
    D = E // H
    assert D * H == E, "embed_size must be divisible by heads"
    assert E == embed_size
    assert Lv == Lk, "attention requires value_len == key_len"
    out_dtype = query.dtype if out_dtype is None else out_dtype

    wdt = matmul_dtype
    scale = 1.0 / math.sqrt(embed_size)

    # Fuse the per-head (D,D) Linear weights into block-diagonal (E,E) weights
    # (single full-E matmul per projection, lane-dense activations); fold the
    # softmax scale into the q weight.
    def bdiag(w):
        return jax.scipy.linalg.block_diag(*([w.T] * H))

    wv_bd = bdiag(params['wv']).astype(wdt)
    wk_bd = bdiag(params['wk']).astype(wdt)
    wq_bd = bdiag(params['wq'] * jnp.float32(scale)).astype(wdt)
    wo_t = params['wo'].T.astype(wdt)                 # (E_in, E_out)
    bo = params['bo'].reshape(1, E).astype(jnp.float32)

    # Additive mask bias in bf16 (0 / -1e20).  A batch-shared mask ((Lq,Lk) or
    # leading dim 1) is kept un-replicated.  NOTE: `mask == 0` is an exact
    # compare, matching torch masked_fill(mask == 0, ...); pass 0/1 masks.
    if mask is None:
        bias = jnp.zeros((1, Lq, Lk), jnp.bfloat16)
    else:
        m = jnp.asarray(mask)
        if m.ndim == 4:
            m = m.reshape(m.shape[0], Lq, Lk)
        elif m.ndim == 2:
            m = m.reshape(1, Lq, Lk)
        bias = jnp.where(m == 0, jnp.float32(-1e20),
                         jnp.float32(0.0)).astype(jnp.bfloat16)
    Nb = bias.shape[0]
    if Nb not in (1, N):
        raise ValueError(f"mask batch dim {Nb} must be 1 or {N}")

    # ---- tile selection -----------------------------------------------------
    # batch tile: largest divisor of N <= batch_block, capped at N//2 so the
    # "parallel" grid axis has length >= 2 (feeds both v7x TensorCores).
    cap = max(1, min(batch_block, N // 2 if N >= 2 else 1))
    bns = [d for d in range(cap, 0, -1) if N % d == 0]
    # kv tile: divisors of Lk that keep the second-minor block dim 8-aligned
    # (or the full axis), largest first.
    tks = [d for d in range(min(kv_block, Lk), 0, -1)
           if Lk % d == 0 and (d % 8 == 0 or d == Lk)] or [Lk]

    in_isz = jnp.dtype(values.dtype).itemsize
    w_isz = jnp.dtype(wdt).itemsize
    out_isz = jnp.dtype(out_dtype).itemsize

    def _blk_bytes(bn_, tk_):
        bnb_ = bn_ if Nb == N else 1
        return (2 * 2 * bn_ * tk_ * E * in_isz          # k, v (double-buffered)
                + 2 * bn_ * Lq * E * in_isz             # q
                + 2 * bnb_ * Lq * tk_ * 2               # bias (bf16)
                + 2 * bn_ * Lq * E * out_isz            # output block
                + 2 * (4 * E * E + E) * w_isz           # weights (worst case 2x)
                + bn_ * Lq * E * (w_isz + 4)            # qp + acc scratch
                + 2 * H * bn_ * max(Lq, 8) * 128 * 4    # m, l scratch (padded)
                + 3 * bn_ * Lq * tk_ * 4)               # per-head s/p temporaries

    try:
        phys_vmem = pltpu.get_tpu_info().vmem_capacity_bytes
    except Exception:
        phys_vmem = 64 * 1024 * 1024        # conservative (v7x per-core VMEM)
    budget = int(0.8 * phys_vmem)
    bi = ti = 0
    while _blk_bytes(bns[bi], tks[ti]) > budget:
        if ti + 1 < len(tks):
            ti += 1
        elif bi + 1 < len(bns):
            bi += 1
        else:
            break
    bn, tk = bns[bi], tks[ti]
    bnb = bn if Nb == N else 1
    vmem_limit = int(min(max(2 * _blk_bytes(bn, tk), 32 * 1024 * 1024),
                         phys_vmem))

    bias_index = (lambda b, kv: (b, 0, kv)) if Nb == N \
        else (lambda b, kv: (0, 0, kv))

    kernel = functools.partial(self_attention_kernel, heads=H,
                               matmul_dtype=matmul_dtype,
                               approx_reciprocal=approx_reciprocal)
    grid = (N // bn, Lk // tk)

    def _call(single_buffer_weights):
        def wspec(shape):
            idx = lambda b, kv: (0,) * len(shape)
            if single_buffer_weights:
                # constant index_map -> never re-DMA'd; skip the useless 2nd buffer
                return pl.BlockSpec(shape, idx, pipeline_mode=pl.Buffered(1))
            return pl.BlockSpec(shape, idx)

        in_specs = [
            pl.BlockSpec((bn, tk, E), lambda b, kv: (b, kv, 0)),   # values
            pl.BlockSpec((bn, tk, E), lambda b, kv: (b, kv, 0)),   # keys
            pl.BlockSpec((bn, Lq, E), lambda b, kv: (b, 0, 0)),    # query
            pl.BlockSpec((bnb, Lq, tk), bias_index),               # mask bias
            wspec((E, E)),                                         # wv (block-diag)
            wspec((E, E)),                                         # wk (block-diag)
            wspec((E, E)),                                         # wq (block-diag, scaled)
            wspec((E, E)),                                         # wo (pre-transposed)
            wspec((1, E)),                                         # bo
        ]
        return pl.pallas_call(
            kernel,
            out_shape=jax.ShapeDtypeStruct((N, Lq, E), out_dtype),
            grid=grid,
            in_specs=in_specs,
            out_specs=pl.BlockSpec((bn, Lq, E), lambda b, kv: (b, 0, 0)),
            scratch_shapes=[
                pltpu.VMEM((bn, Lq, E), matmul_dtype),    # projected q
                pltpu.VMEM((H, bn, Lq, 1), jnp.float32),  # running max m
                pltpu.VMEM((H, bn, Lq, 1), jnp.float32),  # running sum l
                pltpu.VMEM((bn, Lq, E), jnp.float32),     # context accumulator
            ],
            compiler_params=pltpu.CompilerParams(
                dimension_semantics=("parallel", "arbitrary"),
                vmem_limit_bytes=vmem_limit),
        )(values, keys, query, bias, wv_bd, wk_bd, wq_bd, wo_t, bo)

    try:
        return _call(True)
    except Exception:
        # pl.Buffered(1) not accepted on this jax/libtpu combo; fall back to
        # default double-buffered weight blocks (correct, slightly more VMEM).
        return _call(False)


def reference_self_attention(values, keys, query, mask, params, *,
                             embed_size, heads):
    """Pure-JAX fp32 reference mirroring the PyTorch forward exactly."""
    N, Lv, E = values.shape
    Lk, Lq = keys.shape[1], query.shape[1]
    H = heads
    D = E // H
    v = values.reshape(N, Lv, H, D)
    k = keys.reshape(N, Lk, H, D)
    q = query.reshape(N, Lq, H, D)
    v = jnp.einsum('nlhd,ed->nlhe', v, params['wv'])
    k = jnp.einsum('nlhd,ed->nlhe', k, params['wk'])
    q = jnp.einsum('nlhd,ed->nlhe', q, params['wq'])
    energy = jnp.einsum('nqhd,nkhd->nhqk', q, k)
    m4 = mask.reshape(-1, 1, Lq, Lk) if mask is not None else None
    if m4 is not None:
        energy = jnp.where(m4 == 0, jnp.float32(-1e20), energy)
    attn = jax.nn.softmax(energy / (embed_size ** 0.5), axis=3)
    out = jnp.einsum('nhqk,nkhd->nqhd', attn, v).reshape(N, Lq, H * D)
    out = out @ params['wo'].T + params['bo']
    return out


if __name__ == "__main__":
    embed_size = 32
    heads = 4
    head_dim = embed_size // heads
    N, L = 2, 8

    key = jax.random.PRNGKey(0)
    ks = jax.random.split(key, 9)

    # Deterministic parameter init (shapes match nn.Linear weights: (out, in)).
    lim_hd = 1.0 / math.sqrt(head_dim)
    lim_e = 1.0 / math.sqrt(embed_size)
    params = {
        'wv': jax.random.uniform(ks[0], (head_dim, head_dim), jnp.float32,
                                 -lim_hd, lim_hd),
        'wk': jax.random.uniform(ks[1], (head_dim, head_dim), jnp.float32,
                                 -lim_hd, lim_hd),
        'wq': jax.random.uniform(ks[2], (head_dim, head_dim), jnp.float32,
                                 -lim_hd, lim_hd),
        'wo': jax.random.uniform(ks[3], (embed_size, embed_size), jnp.float32,
                                 -lim_e, lim_e),
        'bo': jax.random.uniform(ks[4], (embed_size,), jnp.float32,
                                 -lim_e, lim_e),
    }

    values = jax.random.normal(ks[5], (N, L, embed_size), jnp.float32)
    keys_in = jax.random.normal(ks[6], (N, L, embed_size), jnp.float32)
    query = jax.random.normal(ks[7], (N, L, embed_size), jnp.float32)

    causal = jnp.tril(jnp.ones((L, L), jnp.float32))
    mask_3d = jnp.broadcast_to(causal, (N, L, L))      # per-batch mask path

    ref = reference_self_attention(values, keys_in, query, mask_3d, params,
                                   embed_size=embed_size, heads=heads)

    # fp32 MXU path, per-batch mask (tight tolerance; approx reciprocal).
    out_f32 = self_attention(values, keys_in, query, mask_3d, params,
                             embed_size=embed_size, heads=heads,
                             matmul_dtype=jnp.float32)
    out_f32 = jax.block_until_ready(out_f32)
    assert out_f32.shape == (N, L, embed_size)
    assert jnp.allclose(out_f32, ref, atol=5e-3, rtol=5e-3), \
        "fp32-path mismatch vs reference"

    # fp32 path with a batch-shared 2-D mask (bias not replicated per batch).
    out_shared = self_attention(values, keys_in, query, causal, params,
                                embed_size=embed_size, heads=heads,
                                matmul_dtype=jnp.float32)
    out_shared = jax.block_until_ready(out_shared)
    assert jnp.allclose(out_shared, ref, atol=5e-3, rtol=5e-3), \
        "shared-mask path mismatch vs reference"

    # bf16 MXU path (production fast path, fp32 accumulation; looser tolerance)
    out_bf16 = self_attention(values, keys_in, query, mask_3d, params,
                              embed_size=embed_size, heads=heads,
                              matmul_dtype=jnp.bfloat16)
    out_bf16 = jax.block_until_ready(out_bf16)
    assert out_bf16.shape == (N, L, embed_size)
    assert jnp.allclose(out_bf16, ref, atol=5e-2, rtol=5e-2), \
        "bf16-path mismatch vs reference"

    print("KERNEL_OK")
</pallas_src>

<mosaic_0001>
module attributes {stable_mosaic.version = 11 : i64} {
  func.func @self_attention_kernel(%arg0: i32, %arg1: i32, %arg2: memref<1x8x32xf32, #tpu.memory_space<vmem>>, %arg3: memref<1x8x32xf32, #tpu.memory_space<vmem>>, %arg4: memref<1x8x32xf32, #tpu.memory_space<vmem>>, %arg5: memref<1x8x8xbf16, #tpu.memory_space<vmem>>, %arg6: memref<32x32xf32, #tpu.memory_space<vmem>>, %arg7: memref<32x32xf32, #tpu.memory_space<vmem>>, %arg8: memref<32x32xf32, #tpu.memory_space<vmem>>, %arg9: memref<32x32xf32, #tpu.memory_space<vmem>>, %arg10: memref<1x32xf32, #tpu.memory_space<vmem>>, %arg11: memref<1x8x32xf32, #tpu.memory_space<vmem>>, %arg12: memref<1x8x32xf32, #tpu.memory_space<vmem>>, %arg13: memref<4x1x8x1xf32, #tpu.memory_space<vmem>>, %arg14: memref<4x1x8x1xf32, #tpu.memory_space<vmem>>, %arg15: memref<1x8x32xf32, #tpu.memory_space<vmem>>) attributes {dimension_semantics = [#tpu.dimension_semantics<parallel>, #tpu.dimension_semantics<arbitrary>], iteration_bounds = array<i64: 2, 1>, scalar_prefetch = 0 : i64, scratch_operands = 4 : i64, tpu.core_type = #tpu.core_type<tc>, window_params = [{transform_indices = @transform_0, window_bounds = array<i64: 1, 8, 32>}, {transform_indices = @transform_1, window_bounds = array<i64: 1, 8, 32>}, {transform_indices = @transform_2, window_bounds = array<i64: 1, 8, 32>}, {transform_indices = @transform_3, window_bounds = array<i64: 1, 8, 8>}, {pipeline_mode = #tpu.pipeline_mode<synchronous>, transform_indices = @transform_4, window_bounds = array<i64: 32, 32>}, {pipeline_mode = #tpu.pipeline_mode<synchronous>, transform_indices = @transform_5, window_bounds = array<i64: 32, 32>}, {pipeline_mode = #tpu.pipeline_mode<synchronous>, transform_indices = @transform_6, window_bounds = array<i64: 32, 32>}, {pipeline_mode = #tpu.pipeline_mode<synchronous>, transform_indices = @transform_7, window_bounds = array<i64: 32, 32>}, {pipeline_mode = #tpu.pipeline_mode<synchronous>, transform_indices = @transform_8, window_bounds = array<i64: 1, 32>}, {transform_indices = @transform_9, window_bounds = array<i64: 1, 8, 32>}]} {
    %c0_i32 = arith.constant 0 : i32
    %0 = arith.cmpi eq, %arg1, %c0_i32 : i32
    %1 = arith.extui %0 : i1 to i32
    %c0_i32_0 = arith.constant 0 : i32
    %2 = arith.cmpi ne, %1, %c0_i32_0 : i32
    scf.if %2 {
      %cst_117 = arith.constant 0xFF800000 : f32
      %151 = vector.broadcast %cst_117 : f32 to vector<4x1x8x1xf32>
      %c0_118 = arith.constant 0 : index
      %c0_119 = arith.constant 0 : index
      %c0_120 = arith.constant 0 : index
      %c0_121 = arith.constant 0 : index
      %152 = vector.load %arg13[%c0_118, %c0_119, %c0_120, %c0_121] : memref<4x1x8x1xf32, #tpu.memory_space<vmem>>, vector<4x1x8x1xf32>
      tpu.vector_store %arg13[%c0_118, %c0_119, %c0_120, %c0_121], %151 {strides = array<i32>} : memref<4x1x8x1xf32, #tpu.memory_space<vmem>>, vector<4x1x8x1xf32>,
      %cst_122 = arith.constant 0.000000e+00 : f32
      %153 = vector.broadcast %cst_122 : f32 to vector<4x1x8x1xf32>
      %c0_123 = arith.constant 0 : index
      %c0_124 = arith.constant 0 : index
      %c0_125 = arith.constant 0 : index
      %c0_126 = arith.constant 0 : index
      %154 = vector.load %arg14[%c0_123, %c0_124, %c0_125, %c0_126] : memref<4x1x8x1xf32, #tpu.memory_space<vmem>>, vector<4x1x8x1xf32>
      tpu.vector_store %arg14[%c0_123, %c0_124, %c0_125, %c0_126], %153 {strides = array<i32>} : memref<4x1x8x1xf32, #tpu.memory_space<vmem>>, vector<4x1x8x1xf32>,
      %cst_127 = arith.constant 0.000000e+00 : f32
      %155 = vector.broadcast %cst_127 : f32 to vector<1x8x32xf32>
      %c0_128 = arith.constant 0 : index
      %c0_129 = arith.constant 0 : index
      %c0_130 = arith.constant 0 : index
      %156 = vector.load %arg15[%c0_128, %c0_129, %c0_130] : memref<1x8x32xf32, #tpu.memory_space<vmem>>, vector<1x8x32xf32>
      tpu.vector_store %arg15[%c0_128, %c0_129, %c0_130], %155 {strides = array<i32>} : memref<1x8x32xf32, #tpu.memory_space<vmem>>, vector<1x8x32xf32>,
      %c0_131 = arith.constant 0 : index
      %c0_132 = arith.constant 0 : index
      %c0_133 = arith.constant 0 : index
      %157 = vector.load %arg4[%c0_131, %c0_132, %c0_133] : memref<1x8x32xf32, #tpu.memory_space<vmem>>, vector<1x8x32xf32>
      %158 = vector.shape_cast %157 : vector<1x8x32xf32> to vector<8x32xf32>
      %c0_134 = arith.constant 0 : index
      %c0_135 = arith.constant 0 : index
      %159 = vector.load %arg8[%c0_134, %c0_135] : memref<32x32xf32, #tpu.memory_space<vmem>>, vector<32x32xf32>
      %cst_136 = arith.constant dense<0.000000e+00> : vector<8x32xf32>
      %160 = tpu.matmul %158, %159, %cst_136 {dimension_numbers = #tpu.dot_dimension_numbers<[1], [0], [0], [1], [0, 0, 1, 1], [], []>} : vector<8x32xf32>, vector<32x32xf32>, vector<8x32xf32> -> vector<8x32xf32>
      %161 = vector.shape_cast %160 : vector<8x32xf32> to vector<1x8x32xf32>
      %c0_137 = arith.constant 0 : index
      %c0_138 = arith.constant 0 : index
      %c0_139 = arith.constant 0 : index
      %162 = vector.load %arg12[%c0_137, %c0_138, %c0_139] : memref<1x8x32xf32, #tpu.memory_space<vmem>>, vector<1x8x32xf32>
      tpu.vector_store %arg12[%c0_137, %c0_138, %c0_139], %161 {strides = array<i32>} : memref<1x8x32xf32, #tpu.memory_space<vmem>>, vector<1x8x32xf32>,
    } else {
    }
    %c0 = arith.constant 0 : index
    %c0_1 = arith.constant 0 : index
    %c0_2 = arith.constant 0 : index
    %3 = vector.load %arg3[%c0, %c0_1, %c0_2] : memref<1x8x32xf32, #tpu.memory_space<vmem>>, vector<1x8x32xf32>
    %4 = vector.shape_cast %3 : vector<1x8x32xf32> to vector<8x32xf32>
    %c0_3 = arith.constant 0 : index
    %c0_4 = arith.constant 0 : index
    %c0_5 = arith.constant 0 : index
    %5 = vector.load %arg2[%c0_3, %c0_4, %c0_5] : memref<1x8x32xf32, #tpu.memory_space<vmem>>, vector<1x8x32xf32>
    %6 = vector.shape_cast %5 : vector<1x8x32xf32> to vector<8x32xf32>
    %c0_6 = arith.constant 0 : index
    %c0_7 = arith.constant 0 : index
    %7 = vector.load %arg7[%c0_6, %c0_7] : memref<32x32xf32, #tpu.memory_space<vmem>>, vector<32x32xf32>
    %cst = arith.constant dense<0.000000e+00> : vector<8x32xf32>
    %8 = tpu.matmul %4, %7, %cst {dimension_numbers = #tpu.dot_dimension_numbers<[1], [0], [0], [1], [0, 0, 1, 1], [], []>} : vector<8x32xf32>, vector<32x32xf32>, vector<8x32xf32> -> vector<8x32xf32>
    %c0_8 = arith.constant 0 : index
    %c0_9 = arith.constant 0 : index
    %9 = vector.load %arg6[%c0_8, %c0_9] : memref<32x32xf32, #tpu.memory_space<vmem>>, vector<32x32xf32>
    %cst_10 = arith.constant dense<0.000000e+00> : vector<8x32xf32>
    %10 = tpu.matmul %6, %9, %cst_10 {dimension_numbers = #tpu.dot_dimension_numbers<[1], [0], [0], [1], [0, 0, 1, 1], [], []>} : vector<8x32xf32>, vector<32x32xf32>, vector<8x32xf32> -> vector<8x32xf32>
    %11 = vector.shape_cast %8 : vector<8x32xf32> to vector<1x8x32xf32>
    %12 = vector.shape_cast %10 : vector<8x32xf32> to vector<1x8x32xf32>
    %c0_11 = arith.constant 0 : index
    %c0_12 = arith.constant 0 : index
    %c0_13 = arith.constant 0 : index
    %13 = vector.load %arg5[%c0_11, %c0_12, %c0_13] : memref<1x8x8xbf16, #tpu.memory_space<vmem>>, vector<1x8x8xbf16>
    %14 = arith.extf %13 : vector<1x8x8xbf16> to vector<1x8x8xf32>
    %c0_14 = arith.constant 0 : index
    %c0_15 = arith.constant 0 : index
    %c0_16 = arith.constant 0 : index
    %15 = vector.load %arg12[%c0_14, %c0_15, %c0_16] : memref<1x8x32xf32, #tpu.memory_space<vmem>>, vector<1x8x32xf32>
    %16 = vector.extract_strided_slice %15 {offsets = [0, 0, 0], sizes = [1, 8, 8], strides = [1, 1, 1]} : vector<1x8x32xf32> to vector<1x8x8xf32>
    %17 = vector.extract_strided_slice %11 {offsets = [0, 0, 0], sizes = [1, 8, 8], strides = [1, 1, 1]} : vector<1x8x32xf32> to vector<1x8x8xf32>
    %18 = vector.extract_strided_slice %12 {offsets = [0, 0, 0], sizes = [1, 8, 8], strides = [1, 1, 1]} : vector<1x8x32xf32> to vector<1x8x8xf32>
    "tpu.trace_start"() <{level = 10 : i32, message = "bqd,bkd->bqk"}> : () -> ()
    %cst_17 = arith.constant dense<0.000000e+00> : vector<1x8x8xf32>
    %19 = tpu.matmul %16, %17, %cst_17 {dimension_numbers = #tpu.dot_dimension_numbers<[2], [2], [1], [1], [0, 0, 0, 1, 1, 1], [0], [0]>} : vector<1x8x8xf32>, vector<1x8x8xf32>, vector<1x8x8xf32> -> vector<1x8x8xf32>
    "tpu.trace_stop"() : () -> ()
    %20 = arith.addf %19, %14 : vector<1x8x8xf32>
    %c0_18 = arith.constant 0 : index
    %c0_19 = arith.constant 0 : index
    %c0_20 = arith.constant 0 : index
    %c0_21 = arith.constant 0 : index
    %21 = vector.load %arg13[%c0_18, %c0_19, %c0_20, %c0_21] : memref<4x1x8x1xf32, #tpu.memory_space<vmem>>, vector<1x1x8x1xf32>
    %22 = vector.shape_cast %21 : vector<1x1x8x1xf32> to vector<1x8x1xf32>
    %cst_22 = arith.constant dense<0xFF800000> : vector<1x8xf32>
    %23 = vector.multi_reduction <maximumf>, %20, %cst_22 [2] : vector<1x8x8xf32> to vector<1x8xf32>
    %24 = vector.shape_cast %23 : vector<1x8xf32> to vector<1x8x1xf32>
    %25 = arith.maximumf %22, %24 : vector<1x8x1xf32>
    %26 = arith.subf %22, %25 : vector<1x8x1xf32>
    %27 = math.exp %26 : vector<1x8x1xf32>
    %28 = vector.broadcast %25 : vector<1x8x1xf32> to vector<1x8x8xf32>
    %29 = arith.subf %20, %28 : vector<1x8x8xf32>
    %30 = math.exp %29 : vector<1x8x8xf32>
    %c0_23 = arith.constant 0 : index
    %c0_24 = arith.constant 0 : index
    %c0_25 = arith.constant 0 : index
    %c0_26 = arith.constant 0 : index
    %31 = vector.load %arg14[%c0_23, %c0_24, %c0_25, %c0_26] : memref<4x1x8x1xf32, #tpu.memory_space<vmem>>, vector<1x1x8x1xf32>
    %32 = vector.shape_cast %31 : vector<1x1x8x1xf32> to vector<1x8x1xf32>
    %33 = arith.mulf %27, %32 : vector<1x8x1xf32>
    %cst_27 = arith.constant dense<0.000000e+00> : vector<1x8xf32>
    %34 = vector.multi_reduction <add>, %30, %cst_27 [2] : vector<1x8x8xf32> to vector<1x8xf32>
    %35 = vector.shape_cast %34 : vector<1x8xf32> to vector<1x8x1xf32>
    %36 = arith.addf %33, %35 : vector<1x8x1xf32>
    %c0_28 = arith.constant 0 : index
    %c0_29 = arith.constant 0 : index
    %c0_30 = arith.constant 0 : index
    %c0_31 = arith.constant 0 : index
    %37 = vector.load %arg14[%c0_28, %c0_29, %c0_30, %c0_31] : memref<4x1x8x1xf32, #tpu.memory_space<vmem>>, vector<1x1x8x1xf32>
    %38 = vector.shape_cast %37 : vector<1x1x8x1xf32> to vector<1x8x1xf32>
    %39 = vector.shape_cast %36 : vector<1x8x1xf32> to vector<1x1x8x1xf32>
    tpu.vector_store %arg14[%c0_28, %c0_29, %c0_30, %c0_31], %39 {strides = array<i32>} : memref<4x1x8x1xf32, #tpu.memory_space<vmem>>, vector<1x1x8x1xf32>,
    "tpu.trace_start"() <{level = 10 : i32, message = "bqk,bkd->bqd"}> : () -> ()
    %cst_32 = arith.constant dense<0.000000e+00> : vector<1x8x8xf32>
    %40 = tpu.matmul %30, %18, %cst_32 {dimension_numbers = #tpu.dot_dimension_numbers<[2], [1], [1], [2], [0, 0, 0, 1, 1, 2], [0], [0]>} : vector<1x8x8xf32>, vector<1x8x8xf32>, vector<1x8x8xf32> -> vector<1x8x8xf32>
    "tpu.trace_stop"() : () -> ()
    %c0_33 = arith.constant 0 : index
    %c0_34 = arith.constant 0 : index
    %c0_35 = arith.constant 0 : index
    %41 = vector.load %arg15[%c0_33, %c0_34, %c0_35] : memref<1x8x32xf32, #tpu.memory_space<vmem>>, vector<1x8x8xf32>
    %42 = vector.broadcast %27 : vector<1x8x1xf32> to vector<1x8x8xf32>
    %43 = arith.mulf %42, %41 : vector<1x8x8xf32>
    %44 = arith.addf %43, %40 : vector<1x8x8xf32>
    %c0_36 = arith.constant 0 : index
    %c0_37 = arith.constant 0 : index
    %c0_38 = arith.constant 0 : index
    %45 = vector.load %arg15[%c0_36, %c0_37, %c0_38] : memref<1x8x32xf32, #tpu.memory_space<vmem>>, vector<1x8x8xf32>
    tpu.vector_store %arg15[%c0_36, %c0_37, %c0_38], %44 {strides = array<i32>} : memref<1x8x32xf32, #tpu.memory_space<vmem>>, vector<1x8x8xf32>,
    %c0_39 = arith.constant 0 : index
    %c0_40 = arith.constant 0 : index
    %c0_41 = arith.constant 0 : index
    %c0_42 = arith.constant 0 : index
    %46 = vector.load %arg13[%c0_39, %c0_40, %c0_41, %c0_42] : memref<4x1x8x1xf32, #tpu.memory_space<vmem>>, vector<1x1x8x1xf32>
    %47 = vector.shape_cast %46 : vector<1x1x8x1xf32> to vector<1x8x1xf32>
    %48 = vector.shape_cast %25 : vector<1x8x1xf32> to vector<1x1x8x1xf32>
    tpu.vector_store %arg13[%c0_39, %c0_40, %c0_41, %c0_42], %48 {strides = array<i32>} : memref<4x1x8x1xf32, #tpu.memory_space<vmem>>, vector<1x1x8x1xf32>,
    %49 = vector.extract_strided_slice %15 {offsets = [0, 0, 8], sizes = [1, 8, 8], strides = [1, 1, 1]} : vector<1x8x32xf32> to vector<1x8x8xf32>
    %50 = vector.extract_strided_slice %11 {offsets = [0, 0, 8], sizes = [1, 8, 8], strides = [1, 1, 1]} : vector<1x8x32xf32> to vector<1x8x8xf32>
    %51 = vector.extract_strided_slice %12 {offsets = [0, 0, 8], sizes = [1, 8, 8], strides = [1, 1, 1]} : vector<1x8x32xf32> to vector<1x8x8xf32>
    "tpu.trace_start"() <{level = 10 : i32, message = "bqd,bkd->bqk"}> : () -> ()
    %cst_43 = arith.constant dense<0.000000e+00> : vector<1x8x8xf32>
    %52 = tpu.matmul %49, %50, %cst_43 {dimension_numbers = #tpu.dot_dimension_numbers<[2], [2], [1], [1], [0, 0, 0, 1, 1, 1], [0], [0]>} : vector<1x8x8xf32>, vector<1x8x8xf32>, vector<1x8x8xf32> -> vector<1x8x8xf32>
    "tpu.trace_stop"() : () -> ()
    %53 = arith.addf %52, %14 : vector<1x8x8xf32>
    %c1 = arith.constant 1 : index
    %c0_44 = arith.constant 0 : index
    %c0_45 = arith.constant 0 : index
    %c0_46 = arith.constant 0 : index
    %54 = vector.load %arg13[%c1, %c0_44, %c0_45, %c0_46] : memref<4x1x8x1xf32, #tpu.memory_space<vmem>>, vector<1x1x8x1xf32>
    %55 = vector.shape_cast %54 : vector<1x1x8x1xf32> to vector<1x8x1xf32>
    %cst_47 = arith.constant dense<0xFF800000> : vector<1x8xf32>
    %56 = vector.multi_reduction <maximumf>, %53, %cst_47 [2] : vector<1x8x8xf32> to vector<1x8xf32>
    %57 = vector.shape_cast %56 : vector<1x8xf32> to vector<1x8x1xf32>
    %58 = arith.maximumf %55, %57 : vector<1x8x1xf32>
    %59 = arith.subf %55, %58 : vector<1x8x1xf32>
    %60 = math.exp %59 : vector<1x8x1xf32>
    %61 = vector.broadcast %58 : vector<1x8x1xf32> to vector<1x8x8xf32>
    %62 = arith.subf %53, %61 : vector<1x8x8xf32>
    %63 = math.exp %62 : vector<1x8x8xf32>
    %c1_48 = arith.constant 1 : index
    %c0_49 = arith.constant 0 : index
    %c0_50 = arith.constant 0 : index
    %c0_51 = arith.constant 0 : index
    %64 = vector.load %arg14[%c1_48, %c0_49, %c0_50, %c0_51] : memref<4x1x8x1xf32, #tpu.memory_space<vmem>>, vector<1x1x8x1xf32>
    %65 = vector.shape_cast %64 : vector<1x1x8x1xf32> to vector<1x8x1xf32>
    %66 = arith.mulf %60, %65 : vector<1x8x1xf32>
    %cst_52 = arith.constant dense<0.000000e+00> : vector<1x8xf32>
    %67 = vector.multi_reduction <add>, %63, %cst_52 [2] : vector<1x8x8xf32> to vector<1x8xf32>
    %68 = vector.shape_cast %67 : vector<1x8xf32> to vector<1x8x1xf32>
    %69 = arith.addf %66, %68 : vector<1x8x1xf32>
    %c1_53 = arith.constant 1 : index
    %c0_54 = arith.constant 0 : index
    %c0_55 = arith.constant 0 : index
    %c0_56 = arith.constant 0 : index
    %70 = vector.load %arg14[%c1_53, %c0_54, %c0_55, %c0_56] : memref<4x1x8x1xf32, #tpu.memory_space<vmem>>, vector<1x1x8x1xf32>
    %71 = vector.shape_cast %70 : vector<1x1x8x1xf32> to vector<1x8x1xf32>
    %72 = vector.shape_cast %69 : vector<1x8x1xf32> to vector<1x1x8x1xf32>
    tpu.vector_store %arg14[%c1_53, %c0_54, %c0_55, %c0_56], %72 {strides = array<i32>} : memref<4x1x8x1xf32, #tpu.memory_space<vmem>>, vector<1x1x8x1xf32>,
    "tpu.trace_start"() <{level = 10 : i32, message = "bqk,bkd->bqd"}> : () -> ()
    %cst_57 = arith.constant dense<0.000000e+00> : vector<1x8x8xf32>
    %73 = tpu.matmul %63, %51, %cst_57 {dimension_numbers = #tpu.dot_dimension_numbers<[2], [1], [1], [2], [0, 0, 0, 1, 1, 2], [0], [0]>} : vector<1x8x8xf32>, vector<1x8x8xf32>, vector<1x8x8xf32> -> vector<1x8x8xf32>
    "tpu.trace_stop"() : () -> ()
    %c0_58 = arith.constant 0 : index
    %c0_59 = arith.constant 0 : index
    %c8 = arith.constant 8 : index
    %74 = vector.load %arg15[%c0_58, %c0_59, %c8] : memref<1x8x32xf32, #tpu.memory_space<vmem>>, vector<1x8x8xf32>
    %75 = vector.broadcast %60 : vector<1x8x1xf32> to vector<1x8x8xf32>
    %76 = arith.mulf %75, %74 : vector<1x8x8xf32>
    %77 = arith.addf %76, %73 : vector<1x8x8xf32>
    %c0_60 = arith.constant 0 : index
    %c0_61 = arith.constant 0 : index
    %c8_62 = arith.constant 8 : index
    %78 = vector.load %arg15[%c0_60, %c0_61, %c8_62] : memref<1x8x32xf32, #tpu.memory_space<vmem>>, vector<1x8x8xf32>
    tpu.vector_store %arg15[%c0_60, %c0_61, %c8_62], %77 {strides = array<i32>} : memref<1x8x32xf32, #tpu.memory_space<vmem>>, vector<1x8x8xf32>,
    %c1_63 = arith.constant 1 : index
    %c0_64 = arith.constant 0 : index
    %c0_65 = arith.constant 0 : index
    %c0_66 = arith.constant 0 : index
    %79 = vector.load %arg13[%c1_63, %c0_64, %c0_65, %c0_66] : memref<4x1x8x1xf32, #tpu.memory_space<vmem>>, vector<1x1x8x1xf32>
    %80 = vector.shape_cast %79 : vector<1x1x8x1xf32> to vector<1x8x1xf32>
    %81 = vector.shape_cast %58 : vector<1x8x1xf32> to vector<1x1x8x1xf32>
    tpu.vector_store %arg13[%c1_63, %c0_64, %c0_65, %c0_66], %81 {strides = array<i32>} : memref<4x1x8x1xf32, #tpu.memory_space<vmem>>, vector<1x1x8x1xf32>,
    %82 = vector.extract_strided_slice %15 {offsets = [0, 0, 16], sizes = [1, 8, 8], strides = [1, 1, 1]} : vector<1x8x32xf32> to vector<1x8x8xf32>
    %83 = vector.extract_strided_slice %11 {offsets = [0, 0, 16], sizes = [1, 8, 8], strides = [1, 1, 1]} : vector<1x8x32xf32> to vector<1x8x8xf32>
    %84 = vector.extract_strided_slice %12 {offsets = [0, 0, 16], sizes = [1, 8, 8], strides = [1, 1, 1]} : vector<1x8x32xf32> to vector<1x8x8xf32>
    "tpu.trace_start"() <{level = 10 : i32, message = "bqd,bkd->bqk"}> : () -> ()
    %cst_67 = arith.constant dense<0.000000e+00> : vector<1x8x8xf32>
    %85 = tpu.matmul %82, %83, %cst_67 {dimension_numbers = #tpu.dot_dimension_numbers<[2], [2], [1], [1], [0, 0, 0, 1, 1, 1], [0], [0]>} : vector<1x8x8xf32>, vector<1x8x8xf32>, vector<1x8x8xf32> -> vector<1x8x8xf32>
    "tpu.trace_stop"() : () -> ()
    %86 = arith.addf %85, %14 : vector<1x8x8xf32>
    %c2 = arith.constant 2 : index
    %c0_68 = arith.constant 0 : index
    %c0_69 = arith.constant 0 : index
    %c0_70 = arith.constant 0 : index
    %87 = vector.load %arg13[%c2, %c0_68, %c0_69, %c0_70] : memref<4x1x8x1xf32, #tpu.memory_space<vmem>>, vector<1x1x8x1xf32>
    %88 = vector.shape_cast %87 : vector<1x1x8x1xf32> to vector<1x8x1xf32>
    %cst_71 = arith.constant dense<0xFF800000> : vector<1x8xf32>
    %89 = vector.multi_reduction <maximumf>, %86, %cst_71 [2] : vector<1x8x8xf32> to vector<1x8xf32>
    %90 = vector.shape_cast %89 : vector<1x8xf32> to vector<1x8x1xf32>
    %91 = arith.maximumf %88, %90 : vector<1x8x1xf32>
    %92 = arith.subf %88, %91 : vector<1x8x1xf32>
    %93 = math.exp %92 : vector<1x8x1xf32>
    %94 = vector.broadcast %91 : vector<1x8x1xf32> to vector<1x8x8xf32>
    %95 = arith.subf %86, %94 : vector<1x8x8xf32>
    %96 = math.exp %95 : vector<1x8x8xf32>
    %c2_72 = arith.constant 2 : index
    %c0_73 = arith.constant 0 : index
    %c0_74 = arith.constant 0 : index
    %c0_75 = arith.constant 0 : index
    %97 = vector.load %arg14[%c2_72, %c0_73, %c0_74, %c0_75] : memref<4x1x8x1xf32, #tpu.memory_space<vmem>>, vector<1x1x8x1xf32>
    %98 = vector.shape_cast %97 : vector<1x1x8x1xf32> to vector<1x8x1xf32>
    %99 = arith.mulf %93, %98 : vector<1x8x1xf32>
    %cst_76 = arith.constant dense<0.000000e+00> : vector<1x8xf32>
    %100 = vector.multi_reduction <add>, %96, %cst_76 [2] : vector<1x8x8xf32> to vector<1x8xf32>
    %101 = vector.shape_cast %100 : vector<1x8xf32> to vector<1x8x1xf32>
    %102 = arith.addf %99, %101 : vector<1x8x1xf32>
    %c2_77 = arith.constant 2 : index
    %c0_78 = arith.constant 0 : index
    %c0_79 = arith.constant 0 : index
    %c0_80 = arith.constant 0 : index
    %103 = vector.load %arg14[%c2_77, %c0_78, %c0_79, %c0_80] : memref<4x1x8x1xf32, #tpu.memory_space<vmem>>, vector<1x1x8x1xf32>
    %104 = vector.shape_cast %103 : vector<1x1x8x1xf32> to vector<1x8x1xf32>
    %105 = vector.shape_cast %102 : vector<1x8x1xf32> to vector<1x1x8x1xf32>
    tpu.vector_store %arg14[%c2_77, %c0_78, %c0_79, %c0_80], %105 {strides = array<i32>} : memref<4x1x8x1xf32, #tpu.memory_space<vmem>>, vector<1x1x8x1xf32>,
    "tpu.trace_start"() <{level = 10 : i32, message = "bqk,bkd->bqd"}> : () -> ()
    %cst_81 = arith.constant dense<0.000000e+00> : vector<1x8x8xf32>
    %106 = tpu.matmul %96, %84, %cst_81 {dimension_numbers = #tpu.dot_dimension_numbers<[2], [1], [1], [2], [0, 0, 0, 1, 1, 2], [0], [0]>} : vector<1x8x8xf32>, vector<1x8x8xf32>, vector<1x8x8xf32> -> vector<1x8x8xf32>
    "tpu.trace_stop"() : () -> ()
    %c0_82 = arith.constant 0 : index
    %c0_83 = arith.constant 0 : index
    %c16 = arith.constant 16 : index
    %107 = vector.load %arg15[%c0_82, %c0_83, %c16] : memref<1x8x32xf32, #tpu.memory_space<vmem>>, vector<1x8x8xf32>
    %108 = vector.broadcast %93 : vector<1x8x1xf32> to vector<1x8x8xf32>
    %109 = arith.mulf %108, %107 : vector<1x8x8xf32>
    %110 = arith.addf %109, %106 : vector<1x8x8xf32>
    %c0_84 = arith.constant 0 : index
    %c0_85 = arith.constant 0 : index
    %c16_86 = arith.constant 16 : index
    %111 = vector.load %arg15[%c0_84, %c0_85, %c16_86] : memref<1x8x32xf32, #tpu.memory_space<vmem>>, vector<1x8x8xf32>
    tpu.vector_store %arg15[%c0_84, %c0_85, %c16_86], %110 {strides = array<i32>} : memref<1x8x32xf32, #tpu.memory_space<vmem>>, vector<1x8x8xf32>,
    %c2_87 = arith.constant 2 : index
    %c0_88 = arith.constant 0 : index
    %c0_89 = arith.constant 0 : index
    %c0_90 = arith.constant 0 : index
    %112 = vector.load %arg13[%c2_87, %c0_88, %c0_89, %c0_90] : memref<4x1x8x1xf32, #tpu.memory_space<vmem>>, vector<1x1x8x1xf32>
    %113 = vector.shape_cast %112 : vector<1x1x8x1xf32> to vector<1x8x1xf32>
    %114 = vector.shape_cast %91 : vector<1x8x1xf32> to vector<1x1x8x1xf32>
    tpu.vector_store %arg13[%c2_87, %c0_88, %c0_89, %c0_90], %114 {strides = array<i32>} : memref<4x1x8x1xf32, #tpu.memory_space<vmem>>, vector<1x1x8x1xf32>,
    %115 = vector.extract_strided_slice %15 {offsets = [0, 0, 24], sizes = [1, 8, 8], strides = [1, 1, 1]} : vector<1x8x32xf32> to vector<1x8x8xf32>
    %116 = vector.extract_strided_slice %11 {offsets = [0, 0, 24], sizes = [1, 8, 8], strides = [1, 1, 1]} : vector<1x8x32xf32> to vector<1x8x8xf32>
    %117 = vector.extract_strided_slice %12 {offsets = [0, 0, 24], sizes = [1, 8, 8], strides = [1, 1, 1]} : vector<1x8x32xf32> to vector<1x8x8xf32>
    "tpu.trace_start"() <{level = 10 : i32, message = "bqd,bkd->bqk"}> : () -> ()
    %cst_91 = arith.constant dense<0.000000e+00> : vector<1x8x8xf32>
    %118 = tpu.matmul %115, %116, %cst_91 {dimension_numbers = #tpu.dot_dimension_numbers<[2], [2], [1], [1], [0, 0, 0, 1, 1, 1], [0], [0]>} : vector<1x8x8xf32>, vector<1x8x8xf32>, vector<1x8x8xf32> -> vector<1x8x8xf32>
    "tpu.trace_stop"() : () -> ()
    %119 = arith.addf %118, %14 : vector<1x8x8xf32>
    %c3 = arith.constant 3 : index
    %c0_92 = arith.constant 0 : index
    %c0_93 = arith.constant 0 : index
    %c0_94 = arith.constant 0 : index
    %120 = vector.load %arg13[%c3, %c0_92, %c0_93, %c0_94] : memref<4x1x8x1xf32, #tpu.memory_space<vmem>>, vector<1x1x8x1xf32>
    %121 = vector.shape_cast %120 : vector<1x1x8x1xf32> to vector<1x8x1xf32>
    %cst_95 = arith.constant dense<0xFF800000> : vector<1x8xf32>
    %122 = vector.multi_reduction <maximumf>, %119, %cst_95 [2] : vector<1x8x8xf32> to vector<1x8xf32>
    %123 = vector.shape_cast %122 : vector<1x8xf32> to vector<1x8x1xf32>
    %124 = arith.maximumf %121, %123 : vector<1x8x1xf32>
    %125 = arith.subf %121, %124 : vector<1x8x1xf32>
    %126 = math.exp %125 : vector<1x8x1xf32>
    %127 = vector.broadcast %124 : vector<1x8x1xf32> to vector<1x8x8xf32>
    %128 = arith.subf %119, %127 : vector<1x8x8xf32>
    %129 = math.exp %128 : vector<1x8x8xf32>
    %c3_96 = arith.constant 3 : index
    %c0_97 = arith.constant 0 : index
    %c0_98 = arith.constant 0 : index
    %c0_99 = arith.constant 0 : index
    %130 = vector.load %arg14[%c3_96, %c0_97, %c0_98, %c0_99] : memref<4x1x8x1xf32, #tpu.memory_space<vmem>>, vector<1x1x8x1xf32>
    %131 = vector.shape_cast %130 : vector<1x1x8x1xf32> to vector<1x8x1xf32>
    %132 = arith.mulf %126, %131 : vector<1x8x1xf32>
    %cst_100 = arith.constant dense<0.000000e+00> : vector<1x8xf32>
    %133 = vector.multi_reduction <add>, %129, %cst_100 [2] : vector<1x8x8xf32> to vector<1x8xf32>
    %134 = vector.shape_cast %133 : vector<1x8xf32> to vector<1x8x1xf32>
    %135 = arith.addf %132, %134 : vector<1x8x1xf32>
    %c3_101 = arith.constant 3 : index
    %c0_102 = arith.constant 0 : index
    %c0_103 = arith.constant 0 : index
    %c0_104 = arith.constant 0 : index
    %136 = vector.load %arg14[%c3_101, %c0_102, %c0_103, %c0_104] : memref<4x1x8x1xf32, #tpu.memory_space<vmem>>, vector<1x1x8x1xf32>
    %137 = vector.shape_cast %136 : vector<1x1x8x1xf32> to vector<1x8x1xf32>
    %138 = vector.shape_cast %135 : vector<1x8x1xf32> to vector<1x1x8x1xf32>
    tpu.vector_store %arg14[%c3_101, %c0_102, %c0_103, %c0_104], %138 {strides = array<i32>} : memref<4x1x8x1xf32, #tpu.memory_space<vmem>>, vector<1x1x8x1xf32>,
    "tpu.trace_start"() <{level = 10 : i32, message = "bqk,bkd->bqd"}> : () -> ()
    %cst_105 = arith.constant dense<0.000000e+00> : vector<1x8x8xf32>
    %139 = tpu.matmul %129, %117, %cst_105 {dimension_numbers = #tpu.dot_dimension_numbers<[2], [1], [1], [2], [0, 0, 0, 1, 1, 2], [0], [0]>} : vector<1x8x8xf32>, vector<1x8x8xf32>, vector<1x8x8xf32> -> vector<1x8x8xf32>
    "tpu.trace_stop"() : () -> ()
    %c0_106 = arith.constant 0 : index
    %c0_107 = arith.constant 0 : index
    %c24 = arith.constant 24 : index
    %140 = vector.load %arg15[%c0_106, %c0_107, %c24] : memref<1x8x32xf32, #tpu.memory_space<vmem>>, vector<1x8x8xf32>
    %141 = vector.broadcast %126 : vector<1x8x1xf32> to vector<1x8x8xf32>
    %142 = arith.mulf %141, %140 : vector<1x8x8xf32>
    %143 = arith.addf %142, %139 : vector<1x8x8xf32>
    %c0_108 = arith.constant 0 : index
    %c0_109 = arith.constant 0 : index
    %c24_110 = arith.constant 24 : index
    %144 = vector.load %arg15[%c0_108, %c0_109, %c24_110] : memref<1x8x32xf32, #tpu.memory_space<vmem>>, vector<1x8x8xf32>
    tpu.vector_store %arg15[%c0_108, %c0_109, %c24_110], %143 {strides = array<i32>} : memref<1x8x32xf32, #tpu.memory_space<vmem>>, vector<1x8x8xf32>,
    %c3_111 = arith.constant 3 : index
    %c0_112 = arith.constant 0 : index
    %c0_113 = arith.constant 0 : index
    %c0_114 = arith.constant 0 : index
    %145 = vector.load %arg13[%c3_111, %c0_112, %c0_113, %c0_114] : memref<4x1x8x1xf32, #tpu.memory_space<vmem>>, vector<1x1x8x1xf32>
    %146 = vector.shape_cast %145 : vector<1x1x8x1xf32> to vector<1x8x1xf32>
    %147 = vector.shape_cast %124 : vector<1x8x1xf32> to vector<1x1x8x1xf32>
    tpu.vector_store %arg13[%c3_111, %c0_112, %c0_113, %c0_114], %147 {strides = array<i32>} : memref<4x1x8x1xf32, #tpu.memory_space<vmem>>, vector<1x1x8x1xf32>,
    %c0_i32_115 = arith.constant 0 : i32
    %148 = arith.cmpi eq, %arg1, %c0_i32_115 : i32
    %149 = arith.extui %148 : i1 to i32
    %c0_i32_116 = arith.constant 0 : i32
    %150 = arith.cmpi ne, %149, %c0_i32_116 : i32
    scf.if %150 {
      %c0_117 = arith.constant 0 : index
      %c0_118 = arith.constant 0 : index
      %c0_119 = arith.constant 0 : index
      %c0_120 = arith.constant 0 : index
      %151 = vector.load %arg14[%c0_117, %c0_118, %c0_119, %c0_120] : memref<4x1x8x1xf32, #tpu.memory_space<vmem>>, vector<1x1x8x1xf32>
      %152 = vector.shape_cast %151 : vector<1x1x8x1xf32> to vector<1x8x1xf32>
      %153 = tpu.reciprocal %152 {approx = true} : vector<1x8x1xf32> -> vector<1x8x1xf32>
      %c0_121 = arith.constant 0 : index
      %c0_122 = arith.constant 0 : index
      %c0_123 = arith.constant 0 : index
      %154 = vector.load %arg15[%c0_121, %c0_122, %c0_123] : memref<1x8x32xf32, #tpu.memory_space<vmem>>, vector<1x8x8xf32>
      %155 = vector.broadcast %153 : vector<1x8x1xf32> to vector<1x8x8xf32>
      %156 = arith.mulf %154, %155 : vector<1x8x8xf32>
      %c0_124 = arith.constant 0 : index
      %c0_125 = arith.constant 0 : index
      %c0_126 = arith.constant 0 : index
      %157 = vector.load %arg15[%c0_124, %c0_125, %c0_126] : memref<1x8x32xf32, #tpu.memory_space<vmem>>, vector<1x8x8xf32>
      tpu.vector_store %arg15[%c0_124, %c0_125, %c0_126], %156 {strides = array<i32>} : memref<1x8x32xf32, #tpu.memory_space<vmem>>, vector<1x8x8xf32>,
      %c1_127 = arith.constant 1 : index
      %c0_128 = arith.constant 0 : index
      %c0_129 = arith.constant 0 : index
      %c0_130 = arith.constant 0 : index
      %158 = vector.load %arg14[%c1_127, %c0_128, %c0_129, %c0_130] : memref<4x1x8x1xf32, #tpu.memory_space<vmem>>, vector<1x1x8x1xf32>
      %159 = vector.shape_cast %158 : vector<1x1x8x1xf32> to vector<1x8x1xf32>
      %160 = tpu.reciprocal %159 {approx = true} : vector<1x8x1xf32> -> vector<1x8x1xf32>
      %c0_131 = arith.constant 0 : index
      %c0_132 = arith.constant 0 : index
      %c8_133 = arith.constant 8 : index
      %161 = vector.load %arg15[%c0_131, %c0_132, %c8_133] : memref<1x8x32xf32, #tpu.memory_space<vmem>>, vector<1x8x8xf32>
      %162 = vector.broadcast %160 : vector<1x8x1xf32> to vector<1x8x8xf32>
      %163 = arith.mulf %161, %162 : vector<1x8x8xf32>
      %c0_134 = arith.constant 0 : index
      %c0_135 = arith.constant 0 : index
      %c8_136 = arith.constant 8 : index
      %164 = vector.load %arg15[%c0_134, %c0_135, %c8_136] : memref<1x8x32xf32, #tpu.memory_space<vmem>>, vector<1x8x8xf32>
      tpu.vector_store %arg15[%c0_134, %c0_135, %c8_136], %163 {strides = array<i32>} : memref<1x8x32xf32, #tpu.memory_space<vmem>>, vector<1x8x8xf32>,
      %c2_137 = arith.constant 2 : index
      %c0_138 = arith.constant 0 : index
      %c0_139 = arith.constant 0 : index
      %c0_140 = arith.constant 0 : index
      %165 = vector.load %arg14[%c2_137, %c0_138, %c0_139, %c0_140] : memref<4x1x8x1xf32, #tpu.memory_space<vmem>>, vector<1x1x8x1xf32>
      %166 = vector.shape_cast %165 : vector<1x1x8x1xf32> to vector<1x8x1xf32>
      %167 = tpu.reciprocal %166 {approx = true} : vector<1x8x1xf32> -> vector<1x8x1xf32>
      %c0_141 = arith.constant 0 : index
      %c0_142 = arith.constant 0 : index
      %c16_143 = arith.constant 16 : index
      %168 = vector.load %arg15[%c0_141, %c0_142, %c16_143] : memref<1x8x32xf32, #tpu.memory_space<vmem>>, vector<1x8x8xf32>
      %169 = vector.broadcast %167 : vector<1x8x1xf32> to vector<1x8x8xf32>
      %170 = arith.mulf %168, %169 : vector<1x8x8xf32>
      %c0_144 = arith.constant 0 : index
      %c0_145 = arith.constant 0 : index
      %c16_146 = arith.constant 16 : index
      %171 = vector.load %arg15[%c0_144, %c0_145, %c16_146] : memref<1x8x32xf32, #tpu.memory_space<vmem>>, vector<1x8x8xf32>
      tpu.vector_store %arg15[%c0_144, %c0_145, %c16_146], %170 {strides = array<i32>} : memref<1x8x32xf32, #tpu.memory_space<vmem>>, vector<1x8x8xf32>,
      %c3_147 = arith.constant 3 : index
      %c0_148 = arith.constant 0 : index
      %c0_149 = arith.constant 0 : index
      %c0_150 = arith.constant 0 : index
      %172 = vector.load %arg14[%c3_147, %c0_148, %c0_149, %c0_150] : memref<4x1x8x1xf32, #tpu.memory_space<vmem>>, vector<1x1x8x1xf32>
      %173 = vector.shape_cast %172 : vector<1x1x8x1xf32> to vector<1x8x1xf32>
      %174 = tpu.reciprocal %173 {approx = true} : vector<1x8x1xf32> -> vector<1x8x1xf32>
      %c0_151 = arith.constant 0 : index
      %c0_152 = arith.constant 0 : index
      %c24_153 = arith.constant 24 : index
      %175 = vector.load %arg15[%c0_151, %c0_152, %c24_153] : memref<1x8x32xf32, #tpu.memory_space<vmem>>, vector<1x8x8xf32>
      %176 = vector.broadcast %174 : vector<1x8x1xf32> to vector<1x8x8xf32>
      %177 = arith.mulf %175, %176 : vector<1x8x8xf32>
      %c0_154 = arith.constant 0 : index
      %c0_155 = arith.constant 0 : index
      %c24_156 = arith.constant 24 : index
      %178 = vector.load %arg15[%c0_154, %c0_155, %c24_156] : memref<1x8x32xf32, #tpu.memory_space<vmem>>, vector<1x8x8xf32>
      tpu.vector_store %arg15[%c0_154, %c0_155, %c24_156], %177 {strides = array<i32>} : memref<1x8x32xf32, #tpu.memory_space<vmem>>, vector<1x8x8xf32>,
      %c0_157 = arith.constant 0 : index
      %c0_158 = arith.constant 0 : index
      %c0_159 = arith.constant 0 : index
      %179 = vector.load %arg15[%c0_157, %c0_158, %c0_159] : memref<1x8x32xf32, #tpu.memory_space<vmem>>, vector<1x8x32xf32>
      %180 = vector.shape_cast %179 : vector<1x8x32xf32> to vector<8x32xf32>
      %c0_160 = arith.constant 0 : index
      %c0_161 = arith.constant 0 : index
      %181 = vector.load %arg9[%c0_160, %c0_161] : memref<32x32xf32, #tpu.memory_space<vmem>>, vector<32x32xf32>
      %cst_162 = arith.constant dense<0.000000e+00> : vector<8x32xf32>
      %182 = tpu.matmul %180, %181, %cst_162 {dimension_numbers = #tpu.dot_dimension_numbers<[1], [0], [0], [1], [0, 0, 1, 1], [], []>} : vector<8x32xf32>, vector<32x32xf32>, vector<8x32xf32> -> vector<8x32xf32>
      %c0_163 = arith.constant 0 : index
      %c0_164 = arith.constant 0 : index
      %183 = vector.load %arg10[%c0_163, %c0_164] : memref<1x32xf32, #tpu.memory_space<vmem>>, vector<1x32xf32>
      %184 = vector.broadcast %183 : vector<1x32xf32> to vector<8x32xf32>
      %185 = arith.addf %182, %184 : vector<8x32xf32>
      %186 = vector.shape_cast %185 : vector<8x32xf32> to vector<1x8x32xf32>
      %c0_165 = arith.constant 0 : index
      %c0_166 = arith.constant 0 : index
      %c0_167 = arith.constant 0 : index
      %187 = vector.load %arg11[%c0_165, %c0_166, %c0_167] : memref<1x8x32xf32, #tpu.memory_space<vmem>>, vector<1x8x32xf32>
      tpu.vector_store %arg11[%c0_165, %c0_166, %c0_167], %186 {strides = array<i32>} : memref<1x8x32xf32, #tpu.memory_space<vmem>>, vector<1x8x32xf32>,
    } else {
    }
    return
  }
  func.func @transform_0(%arg0: i32, %arg1: i32) -> (i32, i32, i32) {
    %c0_i32 = arith.constant 0 : i32
    %c0_i32_0 = arith.constant 0 : i32
    return %arg0, %arg1, %c0_i32 : i32, i32, i32
  }
  func.func @transform_1(%arg0: i32, %arg1: i32) -> (i32, i32, i32) {
    %c0_i32 = arith.constant 0 : i32
    %c0_i32_0 = arith.constant 0 : i32
    return %arg0, %arg1, %c0_i32 : i32, i32, i32
  }
  func.func @transform_2(%arg0: i32, %arg1: i32) -> (i32, i32, i32) {
    %c0_i32 = arith.constant 0 : i32
    %c0_i32_0 = arith.constant 0 : i32
    %c0_i32_1 = arith.constant 0 : i32
    return %arg0, %c0_i32, %c0_i32_0 : i32, i32, i32
  }
  func.func @transform_3(%arg0: i32, %arg1: i32) -> (i32, i32, i32) {
    %c0_i32 = arith.constant 0 : i32
    %c0_i32_0 = arith.constant 0 : i32
    return %arg0, %c0_i32, %arg1 : i32, i32, i32
  }
  func.func @transform_4(%arg0: i32, %arg1: i32) -> (i32, i32) {
    %c0_i32 = arith.constant 0 : i32
    %c0_i32_0 = arith.constant 0 : i32
    %c0_i32_1 = arith.constant 0 : i32
    return %c0_i32, %c0_i32_0 : i32, i32
  }
  func.func @transform_5(%arg0: i32, %arg1: i32) -> (i32, i32) {
    %c0_i32 = arith.constant 0 : i32
    %c0_i32_0 = arith.constant 0 : i32
    %c0_i32_1 = arith.constant 0 : i32
    return %c0_i32, %c0_i32_0 : i32, i32
  }
  func.func @transform_6(%arg0: i32, %arg1: i32) -> (i32, i32) {
    %c0_i32 = arith.constant 0 : i32
    %c0_i32_0 = arith.constant 0 : i32
    %c0_i32_1 = arith.constant 0 : i32
    return %c0_i32, %c0_i32_0 : i32, i32
  }
  func.func @transform_7(%arg0: i32, %arg1: i32) -> (i32, i32) {
    %c0_i32 = arith.constant 0 : i32
    %c0_i32_0 = arith.constant 0 : i32
    %c0_i32_1 = arith.constant 0 : i32
    return %c0_i32, %c0_i32_0 : i32, i32
  }
  func.func @transform_8(%arg0: i32, %arg1: i32) -> (i32, i32) {
    %c0_i32 = arith.constant 0 : i32
    %c0_i32_0 = arith.constant 0 : i32
    %c0_i32_1 = arith.constant 0 : i32
    return %c0_i32, %c0_i32_0 : i32, i32
  }
  func.func @transform_9(%arg0: i32, %arg1: i32) -> (i32, i32, i32) {
    %c0_i32 = arith.constant 0 : i32
    %c0_i32_0 = arith.constant 0 : i32
    %c0_i32_1 = arith.constant 0 : i32
    return %arg0, %c0_i32, %c0_i32_0 : i32, i32, i32
  }
}

module attributes {stable_mosaic.version = 11 : i64} {
  func.func @self_attention_kernel(%arg0: i32, %arg1: i32, %arg2: memref<1x8x32xf32, #tpu.memory_space<vmem>>, %arg3: memref<1x8x32xf32, #tpu.memory_space<vmem>>, %arg4: memref<1x8x32xf32, #tpu.memory_space<vmem>>, %arg5: memref<1x8x8xbf16, #tpu.memory_space<vmem>>, %arg6: memref<32x32xf32, #tpu.memory_space<vmem>>, %arg7: memref<32x32xf32, #tpu.memory_space<vmem>>, %arg8: memref<32x32xf32, #tpu.memory_space<vmem>>, %arg9: memref<32x32xf32, #tpu.memory_space<vmem>>, %arg10: memref<1x32xf32, #tpu.memory_space<vmem>>, %arg11: memref<1x8x32xf32, #tpu.memory_space<vmem>>, %arg12: memref<1x8x32xf32, #tpu.memory_space<vmem>>, %arg13: memref<4x1x8x1xf32, #tpu.memory_space<vmem>>, %arg14: memref<4x1x8x1xf32, #tpu.memory_space<vmem>>, %arg15: memref<1x8x32xf32, #tpu.memory_space<vmem>>) attributes {dimension_semantics = [#tpu.dimension_semantics<parallel>, #tpu.dimension_semantics<arbitrary>], iteration_bounds = array<i64: 2, 1>, scalar_prefetch = 0 : i64, scratch_operands = 4 : i64, tpu.core_type = #tpu.core_type<tc>, window_params = [{transform_indices = @transform_0, window_bounds = array<i64: 1, 8, 32>}, {transform_indices = @transform_1, window_bounds = array<i64: 1, 8, 32>}, {transform_indices = @transform_2, window_bounds = array<i64: 1, 8, 32>}, {transform_indices = @transform_3, window_bounds = array<i64: 1, 8, 8>}, {pipeline_mode = #tpu.pipeline_mode<synchronous>, transform_indices = @transform_4, window_bounds = array<i64: 32, 32>}, {pipeline_mode = #tpu.pipeline_mode<synchronous>, transform_indices = @transform_5, window_bounds = array<i64: 32, 32>}, {pipeline_mode = #tpu.pipeline_mode<synchronous>, transform_indices = @transform_6, window_bounds = array<i64: 32, 32>}, {pipeline_mode = #tpu.pipeline_mode<synchronous>, transform_indices = @transform_7, window_bounds = array<i64: 32, 32>}, {pipeline_mode = #tpu.pipeline_mode<synchronous>, transform_indices = @transform_8, window_bounds = array<i64: 1, 32>}, {transform_indices = @transform_9, window_bounds = array<i64: 1, 8, 32>}]} {
    %c0_i32 = arith.constant 0 : i32
    %0 = arith.cmpi eq, %arg1, %c0_i32 : i32
    %1 = arith.extui %0 : i1 to i32
    %c0_i32_0 = arith.constant 0 : i32
    %2 = arith.cmpi ne, %1, %c0_i32_0 : i32
    scf.if %2 {
      %cst_117 = arith.constant 0xFF800000 : f32
      %151 = vector.broadcast %cst_117 : f32 to vector<4x1x8x1xf32>
      %c0_118 = arith.constant 0 : index
      %c0_119 = arith.constant 0 : index
      %c0_120 = arith.constant 0 : index
      %c0_121 = arith.constant 0 : index
      %152 = vector.load %arg13[%c0_118, %c0_119, %c0_120, %c0_121] : memref<4x1x8x1xf32, #tpu.memory_space<vmem>>, vector<4x1x8x1xf32>
      tpu.vector_store %arg13[%c0_118, %c0_119, %c0_120, %c0_121], %151 {strides = array<i32>} : memref<4x1x8x1xf32, #tpu.memory_space<vmem>>, vector<4x1x8x1xf32>,
      %cst_122 = arith.constant 0.000000e+00 : f32
      %153 = vector.broadcast %cst_122 : f32 to vector<4x1x8x1xf32>
      %c0_123 = arith.constant 0 : index
      %c0_124 = arith.constant 0 : index
      %c0_125 = arith.constant 0 : index
      %c0_126 = arith.constant 0 : index
      %154 = vector.load %arg14[%c0_123, %c0_124, %c0_125, %c0_126] : memref<4x1x8x1xf32, #tpu.memory_space<vmem>>, vector<4x1x8x1xf32>
      tpu.vector_store %arg14[%c0_123, %c0_124, %c0_125, %c0_126], %153 {strides = array<i32>} : memref<4x1x8x1xf32, #tpu.memory_space<vmem>>, vector<4x1x8x1xf32>,
      %cst_127 = arith.constant 0.000000e+00 : f32
      %155 = vector.broadcast %cst_127 : f32 to vector<1x8x32xf32>
      %c0_128 = arith.constant 0 : index
      %c0_129 = arith.constant 0 : index
      %c0_130 = arith.constant 0 : index
      %156 = vector.load %arg15[%c0_128, %c0_129, %c0_130] : memref<1x8x32xf32, #tpu.memory_space<vmem>>, vector<1x8x32xf32>
      tpu.vector_store %arg15[%c0_128, %c0_129, %c0_130], %155 {strides = array<i32>} : memref<1x8x32xf32, #tpu.memory_space<vmem>>, vector<1x8x32xf32>,
      %c0_131 = arith.constant 0 : index
      %c0_132 = arith.constant 0 : index
      %c0_133 = arith.constant 0 : index
      %157 = vector.load %arg4[%c0_131, %c0_132, %c0_133] : memref<1x8x32xf32, #tpu.memory_space<vmem>>, vector<1x8x32xf32>
      %158 = vector.shape_cast %157 : vector<1x8x32xf32> to vector<8x32xf32>
      %c0_134 = arith.constant 0 : index
      %c0_135 = arith.constant 0 : index
      %159 = vector.load %arg8[%c0_134, %c0_135] : memref<32x32xf32, #tpu.memory_space<vmem>>, vector<32x32xf32>
      %cst_136 = arith.constant dense<0.000000e+00> : vector<8x32xf32>
      %160 = tpu.matmul %158, %159, %cst_136 {dimension_numbers = #tpu.dot_dimension_numbers<[1], [0], [0], [1], [0, 0, 1, 1], [], []>} : vector<8x32xf32>, vector<32x32xf32>, vector<8x32xf32> -> vector<8x32xf32>
      %161 = vector.shape_cast %160 : vector<8x32xf32> to vector<1x8x32xf32>
      %c0_137 = arith.constant 0 : index
      %c0_138 = arith.constant 0 : index
      %c0_139 = arith.constant 0 : index
      %162 = vector.load %arg12[%c0_137, %c0_138, %c0_139] : memref<1x8x32xf32, #tpu.memory_space<vmem>>, vector<1x8x32xf32>
      tpu.vector_store %arg12[%c0_137, %c0_138, %c0_139], %161 {strides = array<i32>} : memref<1x8x32xf32, #tpu.memory_space<vmem>>, vector<1x8x32xf32>,
    } else {
    }
    %c0 = arith.constant 0 : index
    %c0_1 = arith.constant 0 : index
    %c0_2 = arith.constant 0 : index
    %3 = vector.load %arg3[%c0, %c0_1, %c0_2] : memref<1x8x32xf32, #tpu.memory_space<vmem>>, vector<1x8x32xf32>
    %4 = vector.shape_cast %3 : vector<1x8x32xf32> to vector<8x32xf32>
    %c0_3 = arith.constant 0 : index
    %c0_4 = arith.constant 0 : index
    %c0_5 = arith.constant 0 : index
    %5 = vector.load %arg2[%c0_3, %c0_4, %c0_5] : memref<1x8x32xf32, #tpu.memory_space<vmem>>, vector<1x8x32xf32>
    %6 = vector.shape_cast %5 : vector<1x8x32xf32> to vector<8x32xf32>
    %c0_6 = arith.constant 0 : index
    %c0_7 = arith.constant 0 : index
    %7 = vector.load %arg7[%c0_6, %c0_7] : memref<32x32xf32, #tpu.memory_space<vmem>>, vector<32x32xf32>
    %cst = arith.constant dense<0.000000e+00> : vector<8x32xf32>
    %8 = tpu.matmul %4, %7, %cst {dimension_numbers = #tpu.dot_dimension_numbers<[1], [0], [0], [1], [0, 0, 1, 1], [], []>} : vector<8x32xf32>, vector<32x32xf32>, vector<8x32xf32> -> vector<8x32xf32>
    %c0_8 = arith.constant 0 : index
    %c0_9 = arith.constant 0 : index
    %9 = vector.load %arg6[%c0_8, %c0_9] : memref<32x32xf32, #tpu.memory_space<vmem>>, vector<32x32xf32>
    %cst_10 = arith.constant dense<0.000000e+00> : vector<8x32xf32>
    %10 = tpu.matmul %6, %9, %cst_10 {dimension_numbers = #tpu.dot_dimension_numbers<[1], [0], [0], [1], [0, 0, 1, 1], [], []>} : vector<8x32xf32>, vector<32x32xf32>, vector<8x32xf32> -> vector<8x32xf32>
    %11 = vector.shape_cast %8 : vector<8x32xf32> to vector<1x8x32xf32>
    %12 = vector.shape_cast %10 : vector<8x32xf32> to vector<1x8x32xf32>
    %c0_11 = arith.constant 0 : index
    %c0_12 = arith.constant 0 : index
    %c0_13 = arith.constant 0 : index
    %13 = vector.load %arg5[%c0_11, %c0_12, %c0_13] : memref<1x8x8xbf16, #tpu.memory_space<vmem>>, vector<1x8x8xbf16>
    %14 = arith.extf %13 : vector<1x8x8xbf16> to vector<1x8x8xf32>
    %c0_14 = arith.constant 0 : index
    %c0_15 = arith.constant 0 : index
    %c0_16 = arith.constant 0 : index
    %15 = vector.load %arg12[%c0_14, %c0_15, %c0_16] : memref<1x8x32xf32, #tpu.memory_space<vmem>>, vector<1x8x32xf32>
    %16 = vector.extract_strided_slice %15 {offsets = [0, 0, 0], sizes = [1, 8, 8], strides = [1, 1, 1]} : vector<1x8x32xf32> to vector<1x8x8xf32>
    %17 = vector.extract_strided_slice %11 {offsets = [0, 0, 0], sizes = [1, 8, 8], strides = [1, 1, 1]} : vector<1x8x32xf32> to vector<1x8x8xf32>
    %18 = vector.extract_strided_slice %12 {offsets = [0, 0, 0], sizes = [1, 8, 8], strides = [1, 1, 1]} : vector<1x8x32xf32> to vector<1x8x8xf32>
    "tpu.trace_start"() <{level = 10 : i32, message = "bqd,bkd->bqk"}> : () -> ()
    %cst_17 = arith.constant dense<0.000000e+00> : vector<1x8x8xf32>
    %19 = tpu.matmul %16, %17, %cst_17 {dimension_numbers = #tpu.dot_dimension_numbers<[2], [2], [1], [1], [0, 0, 0, 1, 1, 1], [0], [0]>} : vector<1x8x8xf32>, vector<1x8x8xf32>, vector<1x8x8xf32> -> vector<1x8x8xf32>
    "tpu.trace_stop"() : () -> ()
    %20 = arith.addf %19, %14 : vector<1x8x8xf32>
    %c0_18 = arith.constant 0 : index
    %c0_19 = arith.constant 0 : index
    %c0_20 = arith.constant 0 : index
    %c0_21 = arith.constant 0 : index
    %21 = vector.load %arg13[%c0_18, %c0_19, %c0_20, %c0_21] : memref<4x1x8x1xf32, #tpu.memory_space<vmem>>, vector<1x1x8x1xf32>
    %22 = vector.shape_cast %21 : vector<1x1x8x1xf32> to vector<1x8x1xf32>
    %cst_22 = arith.constant dense<0xFF800000> : vector<1x8xf32>
    %23 = vector.multi_reduction <maximumf>, %20, %cst_22 [2] : vector<1x8x8xf32> to vector<1x8xf32>
    %24 = vector.shape_cast %23 : vector<1x8xf32> to vector<1x8x1xf32>
    %25 = arith.maximumf %22, %24 : vector<1x8x1xf32>
    %26 = arith.subf %22, %25 : vector<1x8x1xf32>
    %27 = math.exp %26 : vector<1x8x1xf32>
    %28 = vector.broadcast %25 : vector<1x8x1xf32> to vector<1x8x8xf32>
    %29 = arith.subf %20, %28 : vector<1x8x8xf32>
    %30 = math.exp %29 : vector<1x8x8xf32>
    %c0_23 = arith.constant 0 : index
    %c0_24 = arith.constant 0 : index
    %c0_25 = arith.constant 0 : index
    %c0_26 = arith.constant 0 : index
    %31 = vector.load %arg14[%c0_23, %c0_24, %c0_25, %c0_26] : memref<4x1x8x1xf32, #tpu.memory_space<vmem>>, vector<1x1x8x1xf32>
    %32 = vector.shape_cast %31 : vector<1x1x8x1xf32> to vector<1x8x1xf32>
    %33 = arith.mulf %27, %32 : vector<1x8x1xf32>
    %cst_27 = arith.constant dense<0.000000e+00> : vector<1x8xf32>
    %34 = vector.multi_reduction <add>, %30, %cst_27 [2] : vector<1x8x8xf32> to vector<1x8xf32>
    %35 = vector.shape_cast %34 : vector<1x8xf32> to vector<1x8x1xf32>
    %36 = arith.addf %33, %35 : vector<1x8x1xf32>
    %c0_28 = arith.constant 0 : index
    %c0_29 = arith.constant 0 : index
    %c0_30 = arith.constant 0 : index
    %c0_31 = arith.constant 0 : index
    %37 = vector.load %arg14[%c0_28, %c0_29, %c0_30, %c0_31] : memref<4x1x8x1xf32, #tpu.memory_space<vmem>>, vector<1x1x8x1xf32>
    %38 = vector.shape_cast %37 : vector<1x1x8x1xf32> to vector<1x8x1xf32>
    %39 = vector.shape_cast %36 : vector<1x8x1xf32> to vector<1x1x8x1xf32>
    tpu.vector_store %arg14[%c0_28, %c0_29, %c0_30, %c0_31], %39 {strides = array<i32>} : memref<4x1x8x1xf32, #tpu.memory_space<vmem>>, vector<1x1x8x1xf32>,
    "tpu.trace_start"() <{level = 10 : i32, message = "bqk,bkd->bqd"}> : () -> ()
    %cst_32 = arith.constant dense<0.000000e+00> : vector<1x8x8xf32>
    %40 = tpu.matmul %30, %18, %cst_32 {dimension_numbers = #tpu.dot_dimension_numbers<[2], [1], [1], [2], [0, 0, 0, 1, 1, 2], [0], [0]>} : vector<1x8x8xf32>, vector<1x8x8xf32>, vector<1x8x8xf32> -> vector<1x8x8xf32>
    "tpu.trace_stop"() : () -> ()
    %c0_33 = arith.constant 0 : index
    %c0_34 = arith.constant 0 : index
    %c0_35 = arith.constant 0 : index
    %41 = vector.load %arg15[%c0_33, %c0_34, %c0_35] : memref<1x8x32xf32, #tpu.memory_space<vmem>>, vector<1x8x8xf32>
    %42 = vector.broadcast %27 : vector<1x8x1xf32> to vector<1x8x8xf32>
    %43 = arith.mulf %42, %41 : vector<1x8x8xf32>
    %44 = arith.addf %43, %40 : vector<1x8x8xf32>
    %c0_36 = arith.constant 0 : index
    %c0_37 = arith.constant 0 : index
    %c0_38 = arith.constant 0 : index
    %45 = vector.load %arg15[%c0_36, %c0_37, %c0_38] : memref<1x8x32xf32, #tpu.memory_space<vmem>>, vector<1x8x8xf32>
    tpu.vector_store %arg15[%c0_36, %c0_37, %c0_38], %44 {strides = array<i32>} : memref<1x8x32xf32, #tpu.memory_space<vmem>>, vector<1x8x8xf32>,
    %c0_39 = arith.constant 0 : index
    %c0_40 = arith.constant 0 : index
    %c0_41 = arith.constant 0 : index
    %c0_42 = arith.constant 0 : index
    %46 = vector.load %arg13[%c0_39, %c0_40, %c0_41, %c0_42] : memref<4x1x8x1xf32, #tpu.memory_space<vmem>>, vector<1x1x8x1xf32>
    %47 = vector.shape_cast %46 : vector<1x1x8x1xf32> to vector<1x8x1xf32>
    %48 = vector.shape_cast %25 : vector<1x8x1xf32> to vector<1x1x8x1xf32>
    tpu.vector_store %arg13[%c0_39, %c0_40, %c0_41, %c0_42], %48 {strides = array<i32>} : memref<4x1x8x1xf32, #tpu.memory_space<vmem>>, vector<1x1x8x1xf32>,
    %49 = vector.extract_strided_slice %15 {offsets = [0, 0, 8], sizes = [1, 8, 8], strides = [1, 1, 1]} : vector<1x8x32xf32> to vector<1x8x8xf32>
    %50 = vector.extract_strided_slice %11 {offsets = [0, 0, 8], sizes = [1, 8, 8], strides = [1, 1, 1]} : vector<1x8x32xf32> to vector<1x8x8xf32>
    %51 = vector.extract_strided_slice %12 {offsets = [0, 0, 8], sizes = [1, 8, 8], strides = [1, 1, 1]} : vector<1x8x32xf32> to vector<1x8x8xf32>
    "tpu.trace_start"() <{level = 10 : i32, message = "bqd,bkd->bqk"}> : () -> ()
    %cst_43 = arith.constant dense<0.000000e+00> : vector<1x8x8xf32>
    %52 = tpu.matmul %49, %50, %cst_43 {dimension_numbers = #tpu.dot_dimension_numbers<[2], [2], [1], [1], [0, 0, 0, 1, 1, 1], [0], [0]>} : vector<1x8x8xf32>, vector<1x8x8xf32>, vector<1x8x8xf32> -> vector<1x8x8xf32>
    "tpu.trace_stop"() : () -> ()
    %53 = arith.addf %52, %14 : vector<1x8x8xf32>
    %c1 = arith.constant 1 : index
    %c0_44 = arith.constant 0 : index
    %c0_45 = arith.constant 0 : index
    %c0_46 = arith.constant 0 : index
    %54 = vector.load %arg13[%c1, %c0_44, %c0_45, %c0_46] : memref<4x1x8x1xf32, #tpu.memory_space<vmem>>, vector<1x1x8x1xf32>
    %55 = vector.shape_cast %54 : vector<1x1x8x1xf32> to vector<1x8x1xf32>
    %cst_47 = arith.constant dense<0xFF800000> : vector<1x8xf32>
    %56 = vector.multi_reduction <maximumf>, %53, %cst_47 [2] : vector<1x8x8xf32> to vector<1x8xf32>
    %57 = vector.shape_cast %56 : vector<1x8xf32> to vector<1x8x1xf32>
    %58 = arith.maximumf %55, %57 : vector<1x8x1xf32>
    %59 = arith.subf %55, %58 : vector<1x8x1xf32>
    %60 = math.exp %59 : vector<1x8x1xf32>
    %61 = vector.broadcast %58 : vector<1x8x1xf32> to vector<1x8x8xf32>
    %62 = arith.subf %53, %61 : vector<1x8x8xf32>
    %63 = math.exp %62 : vector<1x8x8xf32>
    %c1_48 = arith.constant 1 : index
    %c0_49 = arith.constant 0 : index
    %c0_50 = arith.constant 0 : index
    %c0_51 = arith.constant 0 : index
    %64 = vector.load %arg14[%c1_48, %c0_49, %c0_50, %c0_51] : memref<4x1x8x1xf32, #tpu.memory_space<vmem>>, vector<1x1x8x1xf32>
    %65 = vector.shape_cast %64 : vector<1x1x8x1xf32> to vector<1x8x1xf32>
    %66 = arith.mulf %60, %65 : vector<1x8x1xf32>
    %cst_52 = arith.constant dense<0.000000e+00> : vector<1x8xf32>
    %67 = vector.multi_reduction <add>, %63, %cst_52 [2] : vector<1x8x8xf32> to vector<1x8xf32>
    %68 = vector.shape_cast %67 : vector<1x8xf32> to vector<1x8x1xf32>
    %69 = arith.addf %66, %68 : vector<1x8x1xf32>
    %c1_53 = arith.constant 1 : index
    %c0_54 = arith.constant 0 : index
    %c0_55 = arith.constant 0 : index
    %c0_56 = arith.constant 0 : index
    %70 = vector.load %arg14[%c1_53, %c0_54, %c0_55, %c0_56] : memref<4x1x8x1xf32, #tpu.memory_space<vmem>>, vector<1x1x8x1xf32>
    %71 = vector.shape_cast %70 : vector<1x1x8x1xf32> to vector<1x8x1xf32>
    %72 = vector.shape_cast %69 : vector<1x8x1xf32> to vector<1x1x8x1xf32>
    tpu.vector_store %arg14[%c1_53, %c0_54, %c0_55, %c0_56], %72 {strides = array<i32>} : memref<4x1x8x1xf32, #tpu.memory_space<vmem>>, vector<1x1x8x1xf32>,
    "tpu.trace_start"() <{level = 10 : i32, message = "bqk,bkd->bqd"}> : () -> ()
    %cst_57 = arith.constant dense<0.000000e+00> : vector<1x8x8xf32>
    %73 = tpu.matmul %63, %51, %cst_57 {dimension_numbers = #tpu.dot_dimension_numbers<[2], [1], [1], [2], [0, 0, 0, 1, 1, 2], [0], [0]>} : vector<1x8x8xf32>, vector<1x8x8xf32>, vector<1x8x8xf32> -> vector<1x8x8xf32>
    "tpu.trace_stop"() : () -> ()
    %c0_58 = arith.constant 0 : index
    %c0_59 = arith.constant 0 : index
    %c8 = arith.constant 8 : index
    %74 = vector.load %arg15[%c0_58, %c0_59, %c8] : memref<1x8x32xf32, #tpu.memory_space<vmem>>, vector<1x8x8xf32>
    %75 = vector.broadcast %60 : vector<1x8x1xf32> to vector<1x8x8xf32>
    %76 = arith.mulf %75, %74 : vector<1x8x8xf32>
    %77 = arith.addf %76, %73 : vector<1x8x8xf32>
    %c0_60 = arith.constant 0 : index
    %c0_61 = arith.constant 0 : index
    %c8_62 = arith.constant 8 : index
    %78 = vector.load %arg15[%c0_60, %c0_61, %c8_62] : memref<1x8x32xf32, #tpu.memory_space<vmem>>, vector<1x8x8xf32>
    tpu.vector_store %arg15[%c0_60, %c0_61, %c8_62], %77 {strides = array<i32>} : memref<1x8x32xf32, #tpu.memory_space<vmem>>, vector<1x8x8xf32>,
    %c1_63 = arith.constant 1 : index
    %c0_64 = arith.constant 0 : index
    %c0_65 = arith.constant 0 : index
    %c0_66 = arith.constant 0 : index
    %79 = vector.load %arg13[%c1_63, %c0_64, %c0_65, %c0_66] : memref<4x1x8x1xf32, #tpu.memory_space<vmem>>, vector<1x1x8x1xf32>
    %80 = vector.shape_cast %79 : vector<1x1x8x1xf32> to vector<1x8x1xf32>
    %81 = vector.shape_cast %58 : vector<1x8x1xf32> to vector<1x1x8x1xf32>
    tpu.vector_store %arg13[%c1_63, %c0_64, %c0_65, %c0_66], %81 {strides = array<i32>} : memref<4x1x8x1xf32, #tpu.memory_space<vmem>>, vector<1x1x8x1xf32>,
    %82 = vector.extract_strided_slice %15 {offsets = [0, 0, 16], sizes = [1, 8, 8], strides = [1, 1, 1]} : vector<1x8x32xf32> to vector<1x8x8xf32>
    %83 = vector.extract_strided_slice %11 {offsets = [0, 0, 16], sizes = [1, 8, 8], strides = [1, 1, 1]} : vector<1x8x32xf32> to vector<1x8x8xf32>
    %84 = vector.extract_strided_slice %12 {offsets = [0, 0, 16], sizes = [1, 8, 8], strides = [1, 1, 1]} : vector<1x8x32xf32> to vector<1x8x8xf32>
    "tpu.trace_start"() <{level = 10 : i32, message = "bqd,bkd->bqk"}> : () -> ()
    %cst_67 = arith.constant dense<0.000000e+00> : vector<1x8x8xf32>
    %85 = tpu.matmul %82, %83, %cst_67 {dimension_numbers = #tpu.dot_dimension_numbers<[2], [2], [1], [1], [0, 0, 0, 1, 1, 1], [0], [0]>} : vector<1x8x8xf32>, vector<1x8x8xf32>, vector<1x8x8xf32> -> vector<1x8x8xf32>
    "tpu.trace_stop"() : () -> ()
    %86 = arith.addf %85, %14 : vector<1x8x8xf32>
    %c2 = arith.constant 2 : index
    %c0_68 = arith.constant 0 : index
    %c0_69 = arith.constant 0 : index
    %c0_70 = arith.constant 0 : index
    %87 = vector.load %arg13[%c2, %c0_68, %c0_69, %c0_70] : memref<4x1x8x1xf32, #tpu.memory_space<vmem>>, vector<1x1x8x1xf32>
    %88 = vector.shape_cast %87 : vector<1x1x8x1xf32> to vector<1x8x1xf32>
    %cst_71 = arith.constant dense<0xFF800000> : vector<1x8xf32>
    %89 = vector.multi_reduction <maximumf>, %86, %cst_71 [2] : vector<1x8x8xf32> to vector<1x8xf32>
    %90 = vector.shape_cast %89 : vector<1x8xf32> to vector<1x8x1xf32>
    %91 = arith.maximumf %88, %90 : vector<1x8x1xf32>
    %92 = arith.subf %88, %91 : vector<1x8x1xf32>
    %93 = math.exp %92 : vector<1x8x1xf32>
    %94 = vector.broadcast %91 : vector<1x8x1xf32> to vector<1x8x8xf32>
    %95 = arith.subf %86, %94 : vector<1x8x8xf32>
    %96 = math.exp %95 : vector<1x8x8xf32>
    %c2_72 = arith.constant 2 : index
    %c0_73 = arith.constant 0 : index
    %c0_74 = arith.constant 0 : index
    %c0_75 = arith.constant 0 : index
    %97 = vector.load %arg14[%c2_72, %c0_73, %c0_74, %c0_75] : memref<4x1x8x1xf32, #tpu.memory_space<vmem>>, vector<1x1x8x1xf32>
    %98 = vector.shape_cast %97 : vector<1x1x8x1xf32> to vector<1x8x1xf32>
    %99 = arith.mulf %93, %98 : vector<1x8x1xf32>
    %cst_76 = arith.constant dense<0.000000e+00> : vector<1x8xf32>
    %100 = vector.multi_reduction <add>, %96, %cst_76 [2] : vector<1x8x8xf32> to vector<1x8xf32>
    %101 = vector.shape_cast %100 : vector<1x8xf32> to vector<1x8x1xf32>
    %102 = arith.addf %99, %101 : vector<1x8x1xf32>
    %c2_77 = arith.constant 2 : index
    %c0_78 = arith.constant 0 : index
    %c0_79 = arith.constant 0 : index
    %c0_80 = arith.constant 0 : index
    %103 = vector.load %arg14[%c2_77, %c0_78, %c0_79, %c0_80] : memref<4x1x8x1xf32, #tpu.memory_space<vmem>>, vector<1x1x8x1xf32>
    %104 = vector.shape_cast %103 : vector<1x1x8x1xf32> to vector<1x8x1xf32>
    %105 = vector.shape_cast %102 : vector<1x8x1xf32> to vector<1x1x8x1xf32>
    tpu.vector_store %arg14[%c2_77, %c0_78, %c0_79, %c0_80], %105 {strides = array<i32>} : memref<4x1x8x1xf32, #tpu.memory_space<vmem>>, vector<1x1x8x1xf32>,
    "tpu.trace_start"() <{level = 10 : i32, message = "bqk,bkd->bqd"}> : () -> ()
    %cst_81 = arith.constant dense<0.000000e+00> : vector<1x8x8xf32>
    %106 = tpu.matmul %96, %84, %cst_81 {dimension_numbers = #tpu.dot_dimension_numbers<[2], [1], [1], [2], [0, 0, 0, 1, 1, 2], [0], [0]>} : vector<1x8x8xf32>, vector<1x8x8xf32>, vector<1x8x8xf32> -> vector<1x8x8xf32>
    "tpu.trace_stop"() : () -> ()
    %c0_82 = arith.constant 0 : index
    %c0_83 = arith.constant 0 : index
    %c16 = arith.constant 16 : index
    %107 = vector.load %arg15[%c0_82, %c0_83, %c16] : memref<1x8x32xf32, #tpu.memory_space<vmem>>, vector<1x8x8xf32>
    %108 = vector.broadcast %93 : vector<1x8x1xf32> to vector<1x8x8xf32>
    %109 = arith.mulf %108, %107 : vector<1x8x8xf32>
    %110 = arith.addf %109, %106 : vector<1x8x8xf32>
    %c0_84 = arith.constant 0 : index
    %c0_85 = arith.constant 0 : index
    %c16_86 = arith.constant 16 : index
    %111 = vector.load %arg15[%c0_84, %c0_85, %c16_86] : memref<1x8x32xf32, #tpu.memory_space<vmem>>, vector<1x8x8xf32>
    tpu.vector_store %arg15[%c0_84, %c0_85, %c16_86], %110 {strides = array<i32>} : memref<1x8x32xf32, #tpu.memory_space<vmem>>, vector<1x8x8xf32>,
    %c2_87 = arith.constant 2 : index
    %c0_88 = arith.constant 0 : index
    %c0_89 = arith.constant 0 : index
    %c0_90 = arith.constant 0 : index
    %112 = vector.load %arg13[%c2_87, %c0_88, %c0_89, %c0_90] : memref<4x1x8x1xf32, #tpu.memory_space<vmem>>, vector<1x1x8x1xf32>
    %113 = vector.shape_cast %112 : vector<1x1x8x1xf32> to vector<1x8x1xf32>
    %114 = vector.shape_cast %91 : vector<1x8x1xf32> to vector<1x1x8x1xf32>
    tpu.vector_store %arg13[%c2_87, %c0_88, %c0_89, %c0_90], %114 {strides = array<i32>} : memref<4x1x8x1xf32, #tpu.memory_space<vmem>>, vector<1x1x8x1xf32>,
    %115 = vector.extract_strided_slice %15 {offsets = [0, 0, 24], sizes = [1, 8, 8], strides = [1, 1, 1]} : vector<1x8x32xf32> to vector<1x8x8xf32>
    %116 = vector.extract_strided_slice %11 {offsets = [0, 0, 24], sizes = [1, 8, 8], strides = [1, 1, 1]} : vector<1x8x32xf32> to vector<1x8x8xf32>
    %117 = vector.extract_strided_slice %12 {offsets = [0, 0, 24], sizes = [1, 8, 8], strides = [1, 1, 1]} : vector<1x8x32xf32> to vector<1x8x8xf32>
    "tpu.trace_start"() <{level = 10 : i32, message = "bqd,bkd->bqk"}> : () -> ()
    %cst_91 = arith.constant dense<0.000000e+00> : vector<1x8x8xf32>
    %118 = tpu.matmul %115, %116, %cst_91 {dimension_numbers = #tpu.dot_dimension_numbers<[2], [2], [1], [1], [0, 0, 0, 1, 1, 1], [0], [0]>} : vector<1x8x8xf32>, vector<1x8x8xf32>, vector<1x8x8xf32> -> vector<1x8x8xf32>
    "tpu.trace_stop"() : () -> ()
    %119 = arith.addf %118, %14 : vector<1x8x8xf32>
    %c3 = arith.constant 3 : index
    %c0_92 = arith.constant 0 : index
    %c0_93 = arith.constant 0 : index
    %c0_94 = arith.constant 0 : index
    %120 = vector.load %arg13[%c3, %c0_92, %c0_93, %c0_94] : memref<4x1x8x1xf32, #tpu.memory_space<vmem>>, vector<1x1x8x1xf32>
    %121 = vector.shape_cast %120 : vector<1x1x8x1xf32> to vector<1x8x1xf32>
    %cst_95 = arith.constant dense<0xFF800000> : vector<1x8xf32>
    %122 = vector.multi_reduction <maximumf>, %119, %cst_95 [2] : vector<1x8x8xf32> to vector<1x8xf32>
    %123 = vector.shape_cast %122 : vector<1x8xf32> to vector<1x8x1xf32>
    %124 = arith.maximumf %121, %123 : vector<1x8x1xf32>
    %125 = arith.subf %121, %124 : vector<1x8x1xf32>
    %126 = math.exp %125 : vector<1x8x1xf32>
    %127 = vector.broadcast %124 : vector<1x8x1xf32> to vector<1x8x8xf32>
    %128 = arith.subf %119, %127 : vector<1x8x8xf32>
    %129 = math.exp %128 : vector<1x8x8xf32>
    %c3_96 = arith.constant 3 : index
    %c0_97 = arith.constant 0 : index
    %c0_98 = arith.constant 0 : index
    %c0_99 = arith.constant 0 : index
    %130 = vector.load %arg14[%c3_96, %c0_97, %c0_98, %c0_99] : memref<4x1x8x1xf32, #tpu.memory_space<vmem>>, vector<1x1x8x1xf32>
    %131 = vector.shape_cast %130 : vector<1x1x8x1xf32> to vector<1x8x1xf32>
    %132 = arith.mulf %126, %131 : vector<1x8x1xf32>
    %cst_100 = arith.constant dense<0.000000e+00> : vector<1x8xf32>
    %133 = vector.multi_reduction <add>, %129, %cst_100 [2] : vector<1x8x8xf32> to vector<1x8xf32>
    %134 = vector.shape_cast %133 : vector<1x8xf32> to vector<1x8x1xf32>
    %135 = arith.addf %132, %134 : vector<1x8x1xf32>
    %c3_101 = arith.constant 3 : index
    %c0_102 = arith.constant 0 : index
    %c0_103 = arith.constant 0 : index
    %c0_104 = arith.constant 0 : index
    %136 = vector.load %arg14[%c3_101, %c0_102, %c0_103, %c0_104] : memref<4x1x8x1xf32, #tpu.memory_space<vmem>>, vector<1x1x8x1xf32>
    %137 = vector.shape_cast %136 : vector<1x1x8x1xf32> to vector<1x8x1xf32>
    %138 = vector.shape_cast %135 : vector<1x8x1xf32> to vector<1x1x8x1xf32>
    tpu.vector_store %arg14[%c3_101, %c0_102, %c0_103, %c0_104], %138 {strides = array<i32>} : memref<4x1x8x1xf32, #tpu.memory_space<vmem>>, vector<1x1x8x1xf32>,
    "tpu.trace_start"() <{level = 10 : i32, message = "bqk,bkd->bqd"}> : () -> ()
    %cst_105 = arith.constant dense<0.000000e+00> : vector<1x8x8xf32>
    %139 = tpu.matmul %129, %117, %cst_105 {dimension_numbers = #tpu.dot_dimension_numbers<[2], [1], [1], [2], [0, 0, 0, 1, 1, 2], [0], [0]>} : vector<1x8x8xf32>, vector<1x8x8xf32>, vector<1x8x8xf32> -> vector<1x8x8xf32>
    "tpu.trace_stop"() : () -> ()
    %c0_106 = arith.constant 0 : index
    %c0_107 = arith.constant 0 : index
    %c24 = arith.constant 24 : index
    %140 = vector.load %arg15[%c0_106, %c0_107, %c24] : memref<1x8x32xf32, #tpu.memory_space<vmem>>, vector<1x8x8xf32>
    %141 = vector.broadcast %126 : vector<1x8x1xf32> to vector<1x8x8xf32>
    %142 = arith.mulf %141, %140 : vector<1x8x8xf32>
    %143 = arith.addf %142, %139 : vector<1x8x8xf32>
    %c0_108 = arith.constant 0 : index
    %c0_109 = arith.constant 0 : index
    %c24_110 = arith.constant 24 : index
    %144 = vector.load %arg15[%c0_108, %c0_109, %c24_110] : memref<1x8x32xf32, #tpu.memory_space<vmem>>, vector<1x8x8xf32>
    tpu.vector_store %arg15[%c0_108, %c0_109, %c24_110], %143 {strides = array<i32>} : memref<1x8x32xf32, #tpu.memory_space<vmem>>, vector<1x8x8xf32>,
    %c3_111 = arith.constant 3 : index
    %c0_112 = arith.constant 0 : index
    %c0_113 = arith.constant 0 : index
    %c0_114 = arith.constant 0 : index
    %145 = vector.load %arg13[%c3_111, %c0_112, %c0_113, %c0_114] : memref<4x1x8x1xf32, #tpu.memory_space<vmem>>, vector<1x1x8x1xf32>
    %146 = vector.shape_cast %145 : vector<1x1x8x1xf32> to vector<1x8x1xf32>
    %147 = vector.shape_cast %124 : vector<1x8x1xf32> to vector<1x1x8x1xf32>
    tpu.vector_store %arg13[%c3_111, %c0_112, %c0_113, %c0_114], %147 {strides = array<i32>} : memref<4x1x8x1xf32, #tpu.memory_space<vmem>>, vector<1x1x8x1xf32>,
    %c0_i32_115 = arith.constant 0 : i32
    %148 = arith.cmpi eq, %arg1, %c0_i32_115 : i32
    %149 = arith.extui %148 : i1 to i32
    %c0_i32_116 = arith.constant 0 : i32
    %150 = arith.cmpi ne, %149, %c0_i32_116 : i32
    scf.if %150 {
      %c0_117 = arith.constant 0 : index
      %c0_118 = arith.constant 0 : index
      %c0_119 = arith.constant 0 : index
      %c0_120 = arith.constant 0 : index
      %151 = vector.load %arg14[%c0_117, %c0_118, %c0_119, %c0_120] : memref<4x1x8x1xf32, #tpu.memory_space<vmem>>, vector<1x1x8x1xf32>
      %152 = vector.shape_cast %151 : vector<1x1x8x1xf32> to vector<1x8x1xf32>
      %153 = tpu.reciprocal %152 {approx = true} : vector<1x8x1xf32> -> vector<1x8x1xf32>
      %c0_121 = arith.constant 0 : index
      %c0_122 = arith.constant 0 : index
      %c0_123 = arith.constant 0 : index
      %154 = vector.load %arg15[%c0_121, %c0_122, %c0_123] : memref<1x8x32xf32, #tpu.memory_space<vmem>>, vector<1x8x8xf32>
      %155 = vector.broadcast %153 : vector<1x8x1xf32> to vector<1x8x8xf32>
      %156 = arith.mulf %154, %155 : vector<1x8x8xf32>
      %c0_124 = arith.constant 0 : index
      %c0_125 = arith.constant 0 : index
      %c0_126 = arith.constant 0 : index
      %157 = vector.load %arg15[%c0_124, %c0_125, %c0_126] : memref<1x8x32xf32, #tpu.memory_space<vmem>>, vector<1x8x8xf32>
      tpu.vector_store %arg15[%c0_124, %c0_125, %c0_126], %156 {strides = array<i32>} : memref<1x8x32xf32, #tpu.memory_space<vmem>>, vector<1x8x8xf32>,
      %c1_127 = arith.constant 1 : index
      %c0_128 = arith.constant 0 : index
      %c0_129 = arith.constant 0 : index
      %c0_130 = arith.constant 0 : index
      %158 = vector.load %arg14[%c1_127, %c0_128, %c0_129, %c0_130] : memref<4x1x8x1xf32, #tpu.memory_space<vmem>>, vector<1x1x8x1xf32>
      %159 = vector.shape_cast %158 : vector<1x1x8x1xf32> to vector<1x8x1xf32>
      %160 = tpu.reciprocal %159 {approx = true} : vector<1x8x1xf32> -> vector<1x8x1xf32>
      %c0_131 = arith.constant 0 : index
      %c0_132 = arith.constant 0 : index
      %c8_133 = arith.constant 8 : index
      %161 = vector.load %arg15[%c0_131, %c0_132, %c8_133] : memref<1x8x32xf32, #tpu.memory_space<vmem>>, vector<1x8x8xf32>
      %162 = vector.broadcast %160 : vector<1x8x1xf32> to vector<1x8x8xf32>
      %163 = arith.mulf %161, %162 : vector<1x8x8xf32>
      %c0_134 = arith.constant 0 : index
      %c0_135 = arith.constant 0 : index
      %c8_136 = arith.constant 8 : index
      %164 = vector.load %arg15[%c0_134, %c0_135, %c8_136] : memref<1x8x32xf32, #tpu.memory_space<vmem>>, vector<1x8x8xf32>
      tpu.vector_store %arg15[%c0_134, %c0_135, %c8_136], %163 {strides = array<i32>} : memref<1x8x32xf32, #tpu.memory_space<vmem>>, vector<1x8x8xf32>,
      %c2_137 = arith.constant 2 : index
      %c0_138 = arith.constant 0 : index
      %c0_139 = arith.constant 0 : index
      %c0_140 = arith.constant 0 : index
      %165 = vector.load %arg14[%c2_137, %c0_138, %c0_139, %c0_140] : memref<4x1x8x1xf32, #tpu.memory_space<vmem>>, vector<1x1x8x1xf32>
      %166 = vector.shape_cast %165 : vector<1x1x8x1xf32> to vector<1x8x1xf32>
      %167 = tpu.reciprocal %166 {approx = true} : vector<1x8x1xf32> -> vector<1x8x1xf32>
      %c0_141 = arith.constant 0 : index
      %c0_142 = arith.constant 0 : index
      %c16_143 = arith.constant 16 : index
      %168 = vector.load %arg15[%c0_141, %c0_142, %c16_143] : memref<1x8x32xf32, #tpu.memory_space<vmem>>, vector<1x8x8xf32>
      %169 = vector.broadcast %167 : vector<1x8x1xf32> to vector<1x8x8xf32>
      %170 = arith.mulf %168, %169 : vector<1x8x8xf32>
      %c0_144 = arith.constant 0 : index
      %c0_145 = arith.constant 0 : index
      %c16_146 = arith.constant 16 : index
      %171 = vector.load %arg15[%c0_144, %c0_145, %c16_146] : memref<1x8x32xf32, #tpu.memory_space<vmem>>, vector<1x8x8xf32>
      tpu.vector_store %arg15[%c0_144, %c0_145, %c16_146], %170 {strides = array<i32>} : memref<1x8x32xf32, #tpu.memory_space<vmem>>, vector<1x8x8xf32>,
      %c3_147 = arith.constant 3 : index
      %c0_148 = arith.constant 0 : index
      %c0_149 = arith.constant 0 : index
      %c0_150 = arith.constant 0 : index
      %172 = vector.load %arg14[%c3_147, %c0_148, %c0_149, %c0_150] : memref<4x1x8x1xf32, #tpu.memory_space<vmem>>, vector<1x1x8x1xf32>
      %173 = vector.shape_cast %172 : vector<1x1x8x1xf32> to vector<1x8x1xf32>
      %174 = tpu.reciprocal %173 {approx = true} : vector<1x8x1xf32> -> vector<1x8x1xf32>
      %c0_151 = arith.constant 0 : index
      %c0_152 = arith.constant 0 : index
      %c24_153 = arith.constant 24 : index
      %175 = vector.load %arg15[%c0_151, %c0_152, %c24_153] : memref<1x8x32xf32, #tpu.memory_space<vmem>>, vector<1x8x8xf32>
      %176 = vector.broadcast %174 : vector<1x8x1xf32> to vector<1x8x8xf32>
      %177 = arith.mulf %175, %176 : vector<1x8x8xf32>
      %c0_154 = arith.constant 0 : index
      %c0_155 = arith.constant 0 : index
      %c24_156 = arith.constant 24 : index
      %178 = vector.load %arg15[%c0_154, %c0_155, %c24_156] : memref<1x8x32xf32, #tpu.memory_space<vmem>>, vector<1x8x8xf32>
      tpu.vector_store %arg15[%c0_154, %c0_155, %c24_156], %177 {strides = array<i32>} : memref<1x8x32xf32, #tpu.memory_space<vmem>>, vector<1x8x8xf32>,
      %c0_157 = arith.constant 0 : index
      %c0_158 = arith.constant 0 : index
      %c0_159 = arith.constant 0 : index
      %179 = vector.load %arg15[%c0_157, %c0_158, %c0_159] : memref<1x8x32xf32, #tpu.memory_space<vmem>>, vector<1x8x32xf32>
      %180 = vector.shape_cast %179 : vector<1x8x32xf32> to vector<8x32xf32>
      %c0_160 = arith.constant 0 : index
      %c0_161 = arith.constant 0 : index
      %181 = vector.load %arg9[%c0_160, %c0_161] : memref<32x32xf32, #tpu.memory_space<vmem>>, vector<32x32xf32>
      %cst_162 = arith.constant dense<0.000000e+00> : vector<8x32xf32>
      %182 = tpu.matmul %180, %181, %cst_162 {dimension_numbers = #tpu.dot_dimension_numbers<[1], [0], [0], [1], [0, 0, 1, 1], [], []>} : vector<8x32xf32>, vector<32x32xf32>, vector<8x32xf32> -> vector<8x32xf32>
      %c0_163 = arith.constant 0 : index
      %c0_164 = arith.constant 0 : index
      %183 = vector.load %arg10[%c0_163, %c0_164] : memref<1x32xf32, #tpu.memory_space<vmem>>, vector<1x32xf32>
      %184 = vector.broadcast %183 : vector<1x32xf32> to vector<8x32xf32>
      %185 = arith.addf %182, %184 : vector<8x32xf32>
      %186 = vector.shape_cast %185 : vector<8x32xf32> to vector<1x8x32xf32>
      %c0_165 = arith.constant 0 : index
      %c0_166 = arith.constant 0 : index
      %c0_167 = arith.constant 0 : index
      %187 = vector.load %arg11[%c0_165, %c0_166, %c0_167] : memref<1x8x32xf32, #tpu.memory_space<vmem>>, vector<1x8x32xf32>
      tpu.vector_store %arg11[%c0_165, %c0_166, %c0_167], %186 {strides = array<i32>} : memref<1x8x32xf32, #tpu.memory_space<vmem>>, vector<1x8x32xf32>,
    } else {
    }
    return
  }
  func.func @transform_0(%arg0: i32, %arg1: i32) -> (i32, i32, i32) {
    %c0_i32 = arith.constant 0 : i32
    %c0_i32_0 = arith.constant 0 : i32
    return %arg0, %arg1, %c0_i32 : i32, i32, i32
  }
  func.func @transform_1(%arg0: i32, %arg1: i32) -> (i32, i32, i32) {
    %c0_i32 = arith.constant 0 : i32
    %c0_i32_0 = arith.constant 0 : i32
    return %arg0, %arg1, %c0_i32 : i32, i32, i32
  }
  func.func @transform_2(%arg0: i32, %arg1: i32) -> (i32, i32, i32) {
    %c0_i32 = arith.constant 0 : i32
    %c0_i32_0 = arith.constant 0 : i32
    %c0_i32_1 = arith.constant 0 : i32
    return %arg0, %c0_i32, %c0_i32_0 : i32, i32, i32
  }
  func.func @transform_3(%arg0: i32, %arg1: i32) -> (i32, i32, i32) {
    %c0_i32 = arith.constant 0 : i32
    %c0_i32_0 = arith.constant 0 : i32
    return %arg0, %c0_i32, %arg1 : i32, i32, i32
  }
  func.func @transform_4(%arg0: i32, %arg1: i32) -> (i32, i32) {
    %c0_i32 = arith.constant 0 : i32
    %c0_i32_0 = arith.constant 0 : i32
    %c0_i32_1 = arith.constant 0 : i32
    return %c0_i32, %c0_i32_0 : i32, i32
  }
  func.func @transform_5(%arg0: i32, %arg1: i32) -> (i32, i32) {
    %c0_i32 = arith.constant 0 : i32
    %c0_i32_0 = arith.constant 0 : i32
    %c0_i32_1 = arith.constant 0 : i32
    return %c0_i32, %c0_i32_0 : i32, i32
  }
  func.func @transform_6(%arg0: i32, %arg1: i32) -> (i32, i32) {
    %c0_i32 = arith.constant 0 : i32
    %c0_i32_0 = arith.constant 0 : i32
    %c0_i32_1 = arith.constant 0 : i32
    return %c0_i32, %c0_i32_0 : i32, i32
  }
  func.func @transform_7(%arg0: i32, %arg1: i32) -> (i32, i32) {
    %c0_i32 = arith.constant 0 : i32
    %c0_i32_0 = arith.constant 0 : i32
    %c0_i32_1 = arith.constant 0 : i32
    return %c0_i32, %c0_i32_0 : i32, i32
  }
  func.func @transform_8(%arg0: i32, %arg1: i32) -> (i32, i32) {
    %c0_i32 = arith.constant 0 : i32
    %c0_i32_0 = arith.constant 0 : i32
    %c0_i32_1 = arith.constant 0 : i32
    return %c0_i32, %c0_i32_0 : i32, i32
  }
  func.func @transform_9(%arg0: i32, %arg1: i32) -> (i32, i32, i32) {
    %c0_i32 = arith.constant 0 : i32
    %c0_i32_0 = arith.constant 0 : i32
    %c0_i32_1 = arith.constant 0 : i32
    return %arg0, %c0_i32, %c0_i32_0 : i32, i32, i32
  }
}

</mosaic_0001>

<bundles_post_ra>
// kernel: tpu_custom_call.1
= control target key start
LH: loop header
LB: loop body
LE: loop exit
PB: predicated region body
PF: predicated region fallthrough
CT: control target
= control target key end

     0   :  { %s3110_s0 = inlined_call_operand.hbm [shape: f32[2,8,32], index: 0, kind: input, shape index: {}]   ;;  %s3111_s1 = inlined_call_operand.hbm [shape: f32[2,8,32], index: 1, kind: input, shape index: {}]   ;;  %s3112_s2 = inlined_call_operand.hbm [shape: f32[2,8,32], index: 2, kind: input, shape index: {}]   ;;  %s3113_s3 = inlined_call_operand.vmem [shape: bf16[2,8,8], index: 3, kind: input, shape index: {}]   ;;  %s3114_s4 = inlined_call_operand.hbm [shape: f32[32,32], index: 4, kind: input, shape index: {}]   ;;  %s3115_s5 = inlined_call_operand.hbm [shape: f32[32,32], index: 5, kind: input, shape index: {}]   ;;  %s3116_s6 = inlined_call_operand.hbm [shape: f32[32,32], index: 6, kind: input, shape index: {}]   ;;  %s3117_s7 = inlined_call_operand.hbm [shape: f32[32,32], index: 7, kind: input, shape index: {}]   ;;  %s3118_s8 = inlined_call_operand.vmem [shape: f32[1,32], index: 8, kind: input, shape index: {}]   ;;  %s3119_s9 = inlined_call_operand.hbm [shape: f32[2,8,32], index: 9, kind: output, shape index: {}]  }
   0x1   :  { %3146 = sst [smem:[#allocation31_spill]] %s3111_s1 }
   0x2   :  { %3147 = sst [smem:[#allocation32_spill]] %s3114_s4 }
   0x3   :  { %3148 = sst [smem:[#allocation33_spill]] %s3116_s6 }
   0x4   :  { %3149 = sst [smem:[#allocation34_spill]] %s3118_s8 }
   0x5   :  { %3150 = sst [smem:[#allocation35_spill]] %s3119_s9 }
   0x6   :  { %14 = vsyncpa [#allocation7], 0 }
   0x7   :  { %16 = vsyncpa [#allocation7 + $0x1], 0 }
   0x8   :  { %17 = vsyncpa [#allocation10], 0 }
   0x9   :  { %19 = vsyncpa [#allocation10 + $0x1], 0 }
   0xa   :  { %20 = vsyncpa [#allocation13], 0 }
   0xb   :  { %21 = vsyncpa [#allocation16], 0 }
   0xc   :  { %22 = vsyncpa [#allocation8], 0 }
   0xd   :  { %24 = vsyncpa [#allocation8 + $0x1], 0  ;;  %s2573_s30 = smov 0   ;;  %s2575_s10 = smov 0  }
   0xe   :  { %s2577_s11 = smov 0   ;;  %s2579_s12 = smov 0  }
   0xf   :  { %s2581_s13 = smov 0   ;;  %s2583_s14 = smov 0  }
  0x10 LB: > { %3151 = sst [smem:[#allocation24_spill]] %s2480_s30  ;;  %s2604_s15 = sadd.s32 4294967295, %s2500_s14   ;;  %s2500_s14 = sphi %s2583_s14, %s30_s14   ;;  %s2496_s13 = sphi %s2581_s13, %s3196_s13   ;;  %s2492_s12 = sphi %s2579_s12, %s3195_s12   ;;  %s2488_s11 = sphi %s2577_s11, %s3199_s11   ;;  %s2484_s10 = sphi %s2575_s10, %s3198_s10   ;;  %s2480_s30 = sphi %s2573_s30, %s3197_s30  }
  0x11   : > { %3152 = sst [smem:[#allocation25_spill]] %s2496_s13  ;;  %p1865_p0 = scmp.ge.s32.totalorder %s2500_s14, 1 }
  0x12   : > { %3153 = sst [smem:[#allocation26_spill]] %s2500_s14  ;;  %p3130_p1 = scmp.eq.s32.totalorder %s2604_s15, 0 }
  0x13   : > { %p288_p2 = scmp.lt.s32.totalorder %s2500_s14, 3  ;;  %s2502_s17 = smov [#allocation12]  }
  0x14   : > { %s300_s18 = sshll.u32 %s2502_s17, 4  ;;  %s2503_s20 = smov [#allocation15]   ;;  %s2613_s18 = int_to_ptr.vmem [resolvable:$true] %s300_s18 }
  0x15   : > { %p2609_p3 = pnand %p1865_p0, %p288_p2  ;;  %s326_s21 = sshll.u32 %s2503_s20, 4  ;;  %s2624_s21 = int_to_ptr.vmem [resolvable:$true] %s326_s21 }
  0x16   : > { %s3156_s4 = sld [smem:[#allocation32_spill]] }
  0x17   : > { %s3154_s16 = scalar_select %p2609_p3, 1, 0 }
  0x18   : > { %p2076_p4 = pneg %p2609_p3 }
  0x1a   : > { %p2620_p6 = pnand %p2076_p4, %p3130_p1 }
  0x1c   : > { %s3155_s19 = scalar_select %p2620_p6, 1, 0 }
  0x1d   : > { %s2204_s24 = scalar_lea.hbm %s3156_s4, 512  ;;  %p2634_p8 = pneg %p2620_p6 }
  0x1e   : > { %p2205_p7 = scmp.ne.s32.totalorder %s3156_s4, %s2204_s24  ;;  %p2211_p11 = scmp.lt.u32.totalorder %s2204_s24, %s3156_s4 }
  0x1f   : > { %s3157_s27 = scalar_select %p2634_p8, 1, 0 }
  0x20   : > { %p2207_p9 = pnand %p2634_p8, %p2205_p7 }
  0x22   : > { %p2208_p10 = pneg %p2207_p9 }
  0x24   : > { %p2213_p12 = pnand %p2211_p11, %p2208_p10 }
  0x26   : > { %2216 = shalt.err (!%p2213_p12)
}
  0x27   : > { %s2217_s17 = scalar_lea.vmem %s2613_s18, 512  ;;  %p2225_p4 = scmp.lt.s32.totalorder %s2613_s18, %s2613_s18 }
  0x28   : > { %p2218_p13 = scmp.ne.s32.totalorder %s2613_s18, %s2217_s17  ;;  %p2226_p5 = scmp.lt.s32.totalorder %s2217_s17, %s2217_s17 }
  0x2a   : > { %p2220_p0 = pnand %p2218_p13, %p2634_p8  ;;  %p2227_p7 = por %p2226_p5, %p2225_p4 }
  0x2c   : > { %p2221_p2 = pneg %p2220_p0 }
  0x2e   : > { %p2228_p9 = pnand %p2227_p7, %p2221_p2 }
  0x30   : > { %2231 = shalt.err (!%p2228_p9)
}
  0x31   : > { %s3121_s20 = smov 128   ;;  %s3123_s22 = smov 8  }
  0x32   : > { %2079 = dma.hbm_to_vmem [thread:$0]  (!%p2620_p6), %s3156_s4, 512, %s2613_s18, [#allocation13], %s3121_s20, %s3121_s20, %s3123_s22  }
  0x33   : > { %s3158_s6 = sld [smem:[#allocation33_spill]] }
  0x39   : > { %s2232_s28 = scalar_lea.hbm %s3158_s6, 512 }
  0x3a   : > { %p2233_p5 = scmp.ne.s32.totalorder %s3158_s6, %s2232_s28  ;;  %p2239_p12 = scmp.lt.u32.totalorder %s2232_s28, %s3158_s6 }
  0x3c   : > { %p2235_p10 = pnand %p2233_p5, %p2634_p8 }
  0x3e   : > { %p2236_p11 = pneg %p2235_p10 }
  0x40   : > { %p2241_p13 = pnand %p2239_p12, %p2236_p11 }
  0x42   : > { %2244 = shalt.err (!%p2241_p13)
}
  0x43   : > { %s2245_s18 = scalar_lea.vmem %s2624_s21, 512  ;;  %p2253_p7 = scmp.lt.s32.totalorder %s2624_s21, %s2624_s21 }
  0x44   : > { %p2246_p0 = scmp.ne.s32.totalorder %s2624_s21, %s2245_s18  ;;  %p2254_p9 = scmp.lt.s32.totalorder %s2245_s18, %s2245_s18 }
  0x46   : > { %p2248_p2 = pnand %p2246_p0, %p2634_p8  ;;  %p2255_p5 = por %p2254_p9, %p2253_p7 }
  0x48   : > { %p2249_p4 = pneg %p2248_p2 }
  0x4a   : > { %p2256_p10 = pnand %p2255_p5, %p2249_p4 }
  0x4c   : > { %2259 = shalt.err (!%p2256_p10)
}
  0x4d   : > { %2085 = dma.hbm_to_vmem [thread:$0]  (!%p2620_p6), %s3158_s6, 512, %s2624_s21, [#allocation16], %s3121_s20, %s3121_s20, %s3123_s22  }
  0x4e   : > { %s1864_s23 = sadd.s32 4294967294, %s2500_s14   ;;  %s42_s24 = sadd.s32 1, %s2496_s13 }
  0x4f   : > { %p44_p11 = scmp.ge.s32.totalorder %s42_s24, 2  ;;  %s51_s25 = sadd.s32 1, %s2488_s11 }
  0x50   : > { %p58_p12 = scmp.ne.s32.totalorder %s2488_s11, %s2484_s10  ;;  %p59_p13 = scmp.eq.s32.totalorder %s2500_s14, 0 }
  0x51   : > { %s3201_s24 = smov (%p44_p11, %s42_s24), 0  ;;  %p64_p2 = scmp.ne.s32.totalorder %s2484_s10, %s2480_s30 }
  0x52   : > { %3159 = sst [smem:[#allocation27_spill]] %s3201_s24  ;;  %p2692_p0 = por %p59_p13, %p58_p12 }
  0x53   : > { %s46_s21 = ssub.s32 %s2496_s13, %s3201_s24  ;;  %p275_p4 = scmp.eq.s32.totalorder %s2604_s15, 1 }
  0x54   : > { %p49_p7 = scmp.eq.s32.totalorder %s46_s21, 0  ;;  %p2703_p9 = por %p3130_p1, %p64_p2 }
  0x55   : > { %p2707_p5 = por %p275_p4, %p58_p12  ;;  %p281_p10 = scmp.eq.s32.totalorder %s1864_s23, 1 }
  0x56   : > { %s3161_s28 = scalar_select %p2703_p9, 1, 0 }
  0x57   : > { %s3162_s29 = scalar_select %p2707_p5, 1, 0 }
  0x58   : > { %s2712_s17 = scalar_select %p49_p7, %s2488_s11, %s51_s25  }
  0x59   : > { %3163 = sst [smem:[#allocation28_spill]] %s3162_s29  ;;  %p2714_p11 = por %p281_p10, %p64_p2 }
  0x5a   : > { %3164 = sst [smem:[#allocation29_spill]] %s2712_s17  ;;  %p2107_p13 = scmp.lt.s32.totalorder %s2500_s14, 2 }
  0x5b   : > { %s3165_s18 = scalar_select %p2714_p11, 1, 0 }
  0x5c   : > { %s3125_s8 = sand.u32 1, %s2488_s11   ;;  %s2721_s9 = sshll.u32 %s2496_s13, 7 }
  0x5d   : > { %3166 = sst [smem:[#allocation30_spill]] %s3165_s18  ;;  %s2725_s21 = sshll.u32 %s3125_s8, 3 }
  0x5e   : > { %p2729_p12 = pnand %p2107_p13, %p2692_p0  ;;  %s375_s23 = sand.u32 1, %s2500_s14  }
  0x5f   : > { %s3168_s1 = sld [smem:[#allocation31_spill]]  ;;  %s379_s6 = scalar_lea.vmem [#allocation9], %s2725_s21 }
  0x60   : > { %s3167_s20 = scalar_select %p2729_p12, 1, 0 }
  0x61   : > { %s387_s8 = sshll.u32 %s379_s6, 4  ;;  %s2743_s26 = scalar_lea.sflag [#allocation10], %s375_s23  ;;  %s2741_s8 = int_to_ptr.vmem [resolvable:$true] %s387_s8 }
  0x62   : > { %p2749_p2 = pneg %p2729_p12 }
  0x64   : > { %s3169_s13 = scalar_select %p2749_p2, 1, 0 }
  0x65   : > { %s2738_s4 = scalar_lea.hbm %s3168_s1, %s2721_s9  ;;  %s2265_s17 = scalar_lea.hbm %s3168_s1, 256 }
  0x66   : > { %s2260_s24 = scalar_lea.hbm %s2738_s4, 128  ;;  %p2266_p10 = scmp.lt.u32.totalorder %s2738_s4, %s3168_s1 }
  0x67   : > { %p2261_p0 = scmp.ne.s32.totalorder %s2738_s4, %s2260_s24  ;;  %p2267_p13 = scmp.lt.u32.totalorder %s2265_s17, %s2260_s24 }
  0x68   : > { %p2269_p11 = scmp.lt.u32.totalorder %s2260_s24, %s2738_s4 }
  0x69   : > { %p2263_p4 = pnand %p2749_p2, %p2261_p0  ;;  %p2268_p1 = por %p2267_p13, %p2266_p10 }
  0x6b   : > { %p2264_p7 = pneg %p2263_p4  ;;  %p2270_p5 = por %p2269_p11, %p2268_p1 }
  0x6d   : > { %p2271_p9 = pnand %p2270_p5, %p2264_p7 }
  0x6f   : > { %2274 = shalt.err (!%p2271_p9)
}
  0x70   : > { %s2275_s23 = scalar_lea.vmem %s2741_s8, 128  ;;  %s2506_s22 = smov [#allocation9]  }
  0x71   : > { %p2276_p0 = scmp.ne.s32.totalorder %s2741_s8, %s2275_s23  ;;  %s2280_s25 = sshll.u32 %s2506_s22, 4  ;;  %s2281_s25 = int_to_ptr.vmem [resolvable:$false] %s2280_s25 }
  0x72   : > { %s2282_s14 = scalar_lea.vmem %s2281_s25, 256  ;;  %p2283_p6 = scmp.lt.s32.totalorder %s2741_s8, %s2281_s25 }
  0x73   : > { %p2278_p4 = pnand %p2276_p0, %p2749_p2  ;;  %p2284_p8 = scmp.lt.s32.totalorder %s2282_s14, %s2275_s23 }
  0x75   : > { %p2279_p3 = pneg %p2278_p4  ;;  %p2285_p10 = por %p2284_p8, %p2283_p6 }
  0x77   : > { %p2286_p13 = pnand %p2285_p10, %p2279_p3 }
  0x79   : > { %2289 = shalt.err (!%p2286_p13)
}
  0x7a   : > { %2095 = dma.hbm_to_vmem [thread:$0]  (!%p2729_p12), %s2738_s4, 128, %s2741_s8, %s2743_s26  }
  0x7b   : > { %s2507_s24 = smov [#allocation14]   ;;  %s2508_s6 = smov [#allocation17]  }
  0x7c   : > { %s313_s17 = sshll.u32 %s2507_s24, 4  ;;  %s339_s1 = sshll.u32 %s2508_s6, 4  ;;  %s314_s17 = int_to_ptr.vmem [resolvable:$true] %s313_s17  ;;  %s340_s1 = int_to_ptr.vmem [resolvable:$true] %s339_s1 }
  0x7d   : > { %s2290_s25 = scalar_lea.hbm %s3115_s5, 512  ;;  %p3170_p3 = scmp.ne.s32.totalorder %s3157_s27, 0 }
  0x7e   : > { %p2291_p1 = scmp.ne.s32.totalorder %s3115_s5, %s2290_s25  ;;  %p2297_p9 = scmp.lt.u32.totalorder %s2290_s25, %s3115_s5 }
  0x80   : > { %p2293_p6 = pnand %p2291_p1, %p3170_p3 }
  0x82   : > { %p2294_p8 = pneg %p2293_p6 }
  0x84   : > { %p2299_p5 = pnand %p2297_p9, %p2294_p8 }
  0x86   : > { %2302 = shalt.err (!%p2299_p5)
}
  0x87   : > { %s2303_s4 = scalar_lea.vmem %s314_s17, 512  ;;  %p2311_p4 = scmp.lt.s32.totalorder %s314_s17, %s314_s17 }
  0x88   : > { %p2304_p11 = scmp.ne.s32.totalorder %s314_s17, %s2303_s4  ;;  %p2312_p10 = scmp.lt.s32.totalorder %s2303_s4, %s2303_s4 }
  0x8a   : > { %p2306_p7 = pnand %p2304_p11, %p3170_p3  ;;  %p2313_p13 = por %p2312_p10, %p2311_p4 }
  0x8c   : > { %p2307_p0 = pneg %p2306_p7 }
  0x8e   : > { %p2314_p12 = pnand %p2313_p13, %p2307_p0 }
  0x90   : > { %2317 = shalt.err (!%p2314_p12)
}
  0x91   : > { %p3171_p1 = scmp.ne.s32.totalorder %s3155_s19, 0  ;;  %s3172_s18 = smov 8  }
  0x92   : > { %s3173_s8 = smov 128   ;;  %s2318_s22 = scalar_lea.hbm %s3117_s7, 512 }
  0x93   : > { %2082 = dma.hbm_to_vmem [thread:$0]  (!%p3171_p1), %s3115_s5, 512, %s314_s17, [#allocation13], %s3173_s8, %s3173_s8, %s3172_s18  }
  0x94   : > { %p2319_p6 = scmp.ne.s32.totalorder %s3117_s7, %s2318_s22  ;;  %p2325_p9 = scmp.lt.u32.totalorder %s2318_s22, %s3117_s7 }
  0x96   : > { %p2321_p12 = pnand %p2319_p6, %p3170_p3 }
  0x98   : > { %p2322_p8 = pneg %p2321_p12 }
  0x9a   : > { %p2327_p5 = pnand %p2325_p9, %p2322_p8 }
  0x9c   : > { %2330 = shalt.err (!%p2327_p5)
}
  0x9d   : > { %s2331_s30 = scalar_lea.vmem %s340_s1, 512  ;;  %p2339_p4 = scmp.lt.s32.totalorder %s340_s1, %s340_s1 }
  0x9e   : > { %p2332_p11 = scmp.ne.s32.totalorder %s340_s1, %s2331_s30  ;;  %p2340_p10 = scmp.lt.s32.totalorder %s2331_s30, %s2331_s30 }
  0xa0   : > { %p2334_p7 = pnand %p2332_p11, %p3170_p3  ;;  %p2341_p13 = por %p2340_p10, %p2339_p4 }
  0xa2   : > { %p2335_p0 = pneg %p2334_p7 }
  0xa4   : > { %p2342_p2 = pnand %p2341_p13, %p2335_p0 }
  0xa6   : > { %2345 = shalt.err (!%p2342_p2)
}
  0xa7   : > { %2088 = dma.hbm_to_vmem [thread:$0]  (!%p3171_p1), %s3117_s7, 512, %s340_s1, [#allocation16], %s3173_s8, %s3173_s8, %s3172_s18  }
  0xa8   : > { %s2819_s6 = scalar_lea.hbm %s3110_s0, %s2721_s9  ;;  %s360_s19 = scalar_lea.vmem [#allocation6], %s2725_s21 }
  0xa9   : > { %s368_s22 = sshll.u32 %s360_s19, 4  ;;  %s2828_s14 = scalar_lea.hbm %s3112_s2, %s2721_s9  ;;  %s2822_s22 = int_to_ptr.vmem [resolvable:$true] %s368_s22 }
  0xaa   : > { %s3174_s4 = sand.u32 1, %s2488_s11   ;;  %s2346_s18 = scalar_lea.hbm %s2819_s6, 128 }
  0xab   : > { %s357_s1 = scalar_lea.sflag [#allocation7], %s3174_s4  ;;  %p2347_p2 = scmp.ne.s32.totalorder %s2819_s6, %s2346_s18 }
  0xac   : > { %p3175_p3 = scmp.ne.s32.totalorder %s3169_s13, 0  ;;  %s2351_s17 = scalar_lea.hbm %s3110_s0, 256 }
  0xad   : > { %p2352_p12 = scmp.lt.u32.totalorder %s2819_s6, %s3110_s0  ;;  %p2353_p8 = scmp.lt.u32.totalorder %s2351_s17, %s2346_s18 }
  0xae   : > { %p2349_p1 = pnand %p2347_p2, %p3175_p3  ;;  %p2355_p5 = scmp.lt.u32.totalorder %s2346_s18, %s2819_s6 }
  0xaf   : > { %p2354_p9 = por %p2353_p8, %p2352_p12 }
  0xb0   : > { %p2350_p6 = pneg %p2349_p1 }
  0xb1   : > { %p2356_p11 = por %p2355_p5, %p2354_p9 }
  0xb3   : > { %p2357_p7 = pnand %p2356_p11, %p2350_p6 }
  0xb5   : > { %2360 = shalt.err (!%p2357_p7)
}
  0xb6   : > { %s2361_s9 = scalar_lea.vmem %s2822_s22, 128  ;;  %s2509_s24 = smov [#allocation6]  }
  0xb7   : > { %p2362_p0 = scmp.ne.s32.totalorder %s2822_s22, %s2361_s9  ;;  %s2366_s19 = sshll.u32 %s2509_s24, 4  ;;  %s2367_s19 = int_to_ptr.vmem [resolvable:$false] %s2366_s19 }
  0xb8   : > { %s2368_s25 = scalar_lea.vmem %s2367_s19, 256  ;;  %p2369_p13 = scmp.lt.s32.totalorder %s2822_s22, %s2367_s19 }
  0xb9   : > { %p2364_p4 = pnand %p2362_p0, %p3175_p3  ;;  %p2370_p2 = scmp.lt.s32.totalorder %s2368_s25, %s2361_s9 }
  0xbb   : > { %p2365_p10 = pneg %p2364_p4  ;;  %p2371_p1 = por %p2370_p2, %p2369_p13 }
  0xbd   : > { %p2372_p12 = pnand %p2371_p1, %p2365_p10 }
  0xbf   : > { %2375 = shalt.err (!%p2372_p12)
}
  0xc0   : > { %p3176_p6 = scmp.ne.s32.totalorder %s3167_s20, 0  ;;  %s398_s23 = scalar_lea.vmem [#allocation11], %s2725_s21 }
  0xc1   : > { %s405_s4 = sshll.u32 %s398_s23, 4  ;;  %s2376_s18 = scalar_lea.hbm %s2828_s14, 128  ;;  %s406_s4 = int_to_ptr.vmem [resolvable:$true] %s405_s4 }
  0xc2   : > { %2092 = dma.hbm_to_vmem [thread:$0]  (!%p3176_p6), %s2819_s6, 128, %s2822_s22, %s357_s1  }
  0xc3   : > { %p2377_p8 = scmp.ne.s32.totalorder %s2828_s14, %s2376_s18  ;;  %s2381_s17 = scalar_lea.hbm %s3112_s2, 256 }
  0xc4   : > { %p2382_p11 = scmp.lt.u32.totalorder %s2828_s14, %s3112_s2  ;;  %p2383_p7 = scmp.lt.u32.totalorder %s2381_s17, %s2376_s18 }
  0xc5   : > { %p2379_p9 = pnand %p2377_p8, %p3175_p3  ;;  %p2385_p4 = scmp.lt.u32.totalorder %s2376_s18, %s2828_s14 }
  0xc6   : > { %p2384_p0 = por %p2383_p7, %p2382_p11 }
  0xc7   : > { %p2380_p5 = pneg %p2379_p9 }
  0xc8   : > { %p2386_p10 = por %p2385_p4, %p2384_p0 }
  0xca   : > { %p2387_p13 = pnand %p2386_p10, %p2380_p5 }
  0xcc   : > { %2390 = shalt.err (!%p2387_p13)
}
  0xcd   : > { %s2391_s21 = scalar_lea.vmem %s406_s4, 128  ;;  %s2510_s6 = smov [#allocation11]  }
  0xce   : > { %p2392_p2 = scmp.ne.s32.totalorder %s406_s4, %s2391_s21  ;;  %s2396_s22 = sshll.u32 %s2510_s6, 4  ;;  %s2397_s22 = int_to_ptr.vmem [resolvable:$false] %s2396_s22 }
  0xcf   : > { %s2398_s1 = scalar_lea.vmem %s2397_s22, 256  ;;  %p2399_p8 = scmp.lt.s32.totalorder %s406_s4, %s2397_s22 }
  0xd0   : > { %p2394_p1 = pnand %p2392_p2, %p3175_p3  ;;  %p2400_p9 = scmp.lt.s32.totalorder %s2398_s1, %s2391_s21 }
  0xd2   : > { %p2395_p12 = pneg %p2394_p1  ;;  %p2401_p6 = por %p2400_p9, %p2399_p8 }
  0xd4   : > { %p2402_p7 = pnand %p2401_p6, %p2395_p12 }
  0xd6   : > { %2405 = shalt.err (!%p2402_p7)
}
  0xd7   : > { %p3177_p11 = scmp.ne.s32.totalorder %s3167_s20, 0  ;;  %p3178_p5 = scmp.ne.s32.totalorder %s3154_s16, 0 }
  0xd8   : > { %s2875_s13 = sand.u32 (!%p3178_p5), 1, %s2484_s10   ;;  %p3179_p3 = scmp.ne.s32.totalorder (!%p3178_p5), %s3161_s28, 0 }
  0xd9   : > { %2098 = dma.hbm_to_vmem [thread:$0]  (!%p3177_p11), %s2828_s14, 128, %s406_s4, %s2743_s26  }
  0xda   : > { %424 = sbr.rel (%p3178_p5) target bundleno = 2104 (0x838), region = 56  ;;  %s2878_s9 = sshll.u32 (!%p3178_p5), %s2875_s13, 3 }
  0xdb   : > { %s427_s24 = scalar_lea.sflag (!%p3178_p5), [#allocation7], %s2875_s13  ;;  %s430_s19 = scalar_lea.vmem (!%p3178_p5), [#allocation6], %s2878_s9 }
  0xe1   : > { %2459 = dma.done.wait (%p3179_p3), %s427_s24, 128  }
  0xe2   : > { %2461 = vsyncadd (%p3179_p3), %s427_s24, 4294967168  ;;  %s435_s16 = sand.u32 1, %s2604_s15   ;;  %s439_s26 = scalar_lea.vmem [#allocation9], %s2878_s9 }
  0xe3   : > { %s436_s20 = scalar_lea.sflag [#allocation10], %s435_s16 }
  0xe4   : > { %2463 = dma.done.wait (%p3179_p3), %s436_s20, 256  }
  0xe5   : > { %2465 = vsyncadd (%p3179_p3), %s436_s20, 4294967040  ;;  %s448_s14 = scalar_lea.vmem [#allocation11], %s2878_s9  ;;  %p3180_p6 = scmp.eq.s32.totalorder %s2604_s15, 0 }
  0xe7   : > { %2467 = dma.done.wait (%p3180_p6), [#allocation13], 1024   ;;  %p3181_p0 = pmov %p3180_p6 }
  0xe9   : > { %2469 = vsyncadd (%p3181_p0), [#allocation13], 4294966272  ;;  %p3182_p4 = pmov %p3181_p0 }
  0xea   : > { %p3183_p10 = pmov %p3181_p0 }
  0xeb   : > { %2471 = dma.done.wait (%p3182_p4), [#allocation16], 1024  }
  0xec   : > { %2473 = vsyncadd (%p3183_p10), [#allocation16], 4294966272  ;;  %vm536_vm0 = vcmask 261120   ;;  %v2511_v0 = vmov 0.0|0.0   ;;  %v2512_v1 = vmov 0.0   ;;  %vm2513_vm1 = vmmov 0  }
  0xed   : > { %2028 = vmatprep.subr.bf16.mxu0 %v2511_v0  ;;  %2034 = vmatprep.subr.bf16.mxu1 %v2511_v0  ;;  %537 = vst.msk [vmem:[#allocation5] sm:$0xff] %vm536_vm0, %v2512_v1  ;;  %v539_v2 = vld [vmem:[#allocation15] sm:$0xff]  ;;  %v540_v3 = vld [vmem:[#allocation15 + $0x8] sm:$0xff]  ;;  %v541_v7 = vld [vmem:[#allocation15 + $0x10] sm:$0xff]  ;;  %vm777_vm2 = vcmask 64512   ;;  %s2514_s15 = smov 120  }
  0xee   : > { %1952 = vmatprep.mubr.msk.f32.mxu0 %vm2513_vm1, %v2512_v1  ;;  %1963 = vmatprep.mubr.msk.f32.mxu1 %vm2513_vm1, %v2512_v1  ;;  %v619_v4 = vld [vmem:[#allocation14] sm:$0xff]  ;;  %v2029_v5 = vpack.c.bf16 %v540_v3, %v539_v2  ;;  %v620_v6 = vld [vmem:[#allocation14 + $0x8] sm:$0xff]  ;;  %v542_v8 = vld [vmem:[#allocation15 + $0x18] sm:$0xff]  ;;  %s2515_s28 = smov 112   ;;  %s2516_s25 = smov 104   ;;  %vm527_vm3 = vcmask 7168  }
  0xef   : > { %v2035_v9 = vpack.c.bf16 %v620_v6, %v619_v4  ;;  %v621_v10 = vld [vmem:[#allocation14 + $0x10] sm:$0xff]  ;;  %v622_v11 = vld [vmem:[#allocation14 + $0x18] sm:$0xff]  ;;  %v2032_v12 = vpack.c.bf16 %v542_v8, %v541_v7  ;;  %v617_v15 = vld [vmem:[%s439_s26] sm:$0xff]  ;;  %p516_p13 = scmp.lt.s32.totalorder %s2492_s12, 1  ;;  %v2517_v42 = vmov -inf   ;;  %532 = vst.msk [vmem:[#allocation4] sm:$0xff] %vm527_vm3, %v2512_v1 }
  0xf0   : > { %2030 = vmatpush3.bf16.msra.mxu0 %v2029_v5  ;;  %v2038_v13 = vpack.c.bf16 %v622_v11, %v621_v10  ;;  %v538_v14 = vld [vmem:[%s448_s14] sm:$0xff]  ;;  %v697_v16 = vld [vmem:[#allocation12] sm:$0xff]  ;;  %v698_v17 = vld [vmem:[#allocation12 + $0x8] sm:$0xff]  ;;  %528 = vst.msk [vmem:[#allocation3] sm:$0xff] %vm527_vm3, %v2517_v42  ;;  %v2518_v43 = vmov 0   ;;  %s2519_s17 = smov 8  }
  0xf1   : > { %2031 = vmatprep.subr.bf16.mxu0 %v2511_v0  ;;  %2036 = vmatpush3.bf16.msra.mxu1 %v2035_v9  ;;  %v2041_v18 = vpack.c.bf16 %v698_v17, %v697_v16  ;;  %v699_v19 = vld [vmem:[#allocation12 + $0x10] sm:$0xff]  ;;  %v700_v20 = vld [vmem:[#allocation12 + $0x18] sm:$0xff]  ;;  %s517_s23 = scalar_select %p516_p13, %s2492_s12, 1  ;;  %529 = vst.msk [vmem:[#allocation3 + $0x8] sm:$0xff] %vm527_vm3, %v2517_v42  ;;  %530 = vst.msk [vmem:[#allocation3 + $0x10] sm:$0xff] %vm527_vm3, %v2517_v42  ;;  %vm1153_vm4 = vcmask 130112  }
  0xf2   : > { %2037 = vmatprep.subr.bf16.mxu1 %v2511_v0  ;;  %v2044_v21 = vpack.c.bf16 %v700_v20, %v699_v19  ;;  %v618_v22 = vld [vmem:[%s430_s19] sm:$0xff]  ;;  %531 = vst.msk [vmem:[#allocation3 + $0x18] sm:$0xff] %vm527_vm3, %v2517_v42  ;;  %533 = vst.msk [vmem:[#allocation4 + $0x8] sm:$0xff] %vm527_vm3, %v2512_v1  ;;  %2178 = vset.pattern.permute.xlu0 %v2518_v43  ;;  %s2520_s29 = smov 16   ;;  %s2521_s27 = smov 24   ;;  %vm1347_vm5 = vcmask 195712  }
  0xf3   : > { %s1886_s4 = sshll.u32 %s517_s23, 2  ;;  %534 = vst.msk [vmem:[#allocation4 + $0x10] sm:$0xff] %vm527_vm3, %v2512_v1  ;;  %535 = vst.msk [vmem:[#allocation4 + $0x18] sm:$0xff] %vm527_vm3, %v2512_v1  ;;  %2179 = vset.pattern.permute.xlu1 %v2518_v43  ;;  %vm1541_vm6 = vcmask 261312   ;;  %s3184_s21 = sld [smem:[#allocation28_spill]] }
  0xf4   : > { %2033 = vmatpush3.bf16.msra.mxu0 %v2032_v12  ;;  %s522_s30 = scalar_lea.vmem %s3113_s3, %s1886_s4  ;;  %s3185_s1 = sld [smem:[#allocation34_spill]] }
  0xf5   : > { %2039 = vmatpush3.bf16.msra.mxu1 %v2038_v13  ;;  %2040 = vmatprep.subr.bf16.mxu0 %v2511_v0  ;;  %v774_v36 = vld [vmem:[%s522_s30] sm:$0xf]  ;;  %s1905_s24 = sshll.u32 %s2492_s12, 7  ;;  %s515_s19 = scalar_lea.vmem [#allocation18], %s2878_s9 }
  0xf6   : > { %1977 = vmatprep.subr.mxu1 %v2512_v1  ;;  %v775_v37 = vunpack.c.l.bf16 %v774_v36  ;;  %v870_v42 = vld [vmem:[#allocation4] sm:$0xff]  ;;  %s1687_s16 = sshll.u32 %s515_s19, 4  ;;  %s3186_s14 = sld [smem:[#allocation35_spill]]  ;;  %s3062_s16 = int_to_ptr.vmem [resolvable:$true] %s1687_s16 }
  0xf7   : > { %1953 = vmatmul.mubr.msk.f32.vlgmr.msra.gmra.mrb[0].mxu0 %vm536_vm0, %v538_v14  ;;  %v2976_v48 = vld [vmem:[#allocation3] sm:$0xff]  ;;  %s2406_s23 = scalar_lea.vmem %s3062_s16, 128  ;;  %s2522_s12 = smov [#allocation18]  }
  0xf8   : > { %1964 = vmatmul.mubr.msk.f32.vlgmr.msra.gmra.mrb[0].mxu1 %vm536_vm0, %v617_v15  ;;  %1974 = vmatprep.mubr.msk.f32.mxu0 %vm2513_vm1, %v2512_v1  ;;  %v2996_v58 = vld [vmem:[#allocation3 + $0x10] sm:$0xff]  ;;  %v1040_v8 = vld [vmem:[#allocation3 + $0x8] sm:$0xff]  ;;  %p2407_p2 = scmp.ne.s32.totalorder %s3062_s16, %s2406_s23  ;;  %s2410_s9 = sshll.u32 %s2522_s12, 4  ;;  %s2411_s9 = int_to_ptr.vmem [resolvable:$false] %s2410_s9 }
  0xf9   : > { %1979 = vmatprep.mubr.msk.f32.mxu1 %vm2513_vm1, %v2512_v1  ;;  %2042 = vmatpush3.bf16.msra.mxu0 %v2041_v18  ;;  %v1429_v11 = vld [vmem:[#allocation3 + $0x18] sm:$0xff]  ;;  %p3188_p1 = scmp.ne.s32.totalorder %s3184_s21, 0  ;;  %s2412_s4 = scalar_lea.vmem %s2411_s9, 256 }
  0xfa   : > { %2043 = vmatprep.subr.bf16.mxu0 %v2511_v0  ;;  %p2413_p9 = scmp.lt.s32.totalorder %s3062_s16, %s2411_s9  ;;  %p2414_p7 = scmp.lt.s32.totalorder %s2412_s4, %s2406_s23 }
  0xfb   : > { %p2408_p12 = pnand %p2407_p2, %p3188_p1 }
  0xfc   : > { %p2415_p11 = por %p2414_p7, %p2413_p9 }
  0xfd   : > { %2045 = vmatpush3.bf16.msra.mxu0 %v2044_v21  ;;  %p2409_p8 = pneg %p2408_p12 }
  0xfe   : > { %1997 = vmatprep.subr.mxu0 %v2512_v1 }
  0xff   : > { %p2416_p5 = pnand %p2415_p11, %p2409_p8 }
 0x100   : > { %1975 = vmatmul.mubr.msk.f32.vlgmr.msra.gmra.mrb[2].mxu0 %vm536_vm0, %v618_v22 }
 0x101   : > { %1999 = vmatprep.mubr.msk.f32.mxu0 %vm2513_vm1, %v2512_v1 }
 0x1ca   : > { %v612_v23 = vpop.f32.mrb[0].mxu0 }
 0x1cb   : > { %616 = vst.msk [vmem:[#allocation2] sm:$0xff] %vm536_vm0, %v612_v23  ;;  %v1954_v24 = vpop.f32.mrb[1].mxu0  ;;  %v693_v25 = vpop.f32.mrb[0].mxu1 }
 0x1cc   : > { %v1965_v26 = vpop.f32.mrb[1].mxu1  ;;  %963 = vrot.lane.b32.xlu1 %v693_v25, %s2514_s15  ;;  %1978 = vmatpush3.xpose.msk.msra.mxu1 %vm777_vm2, %v693_v25 }
 0x1cd   : > { %1982 = vmatprep.subr.mxu1 %v2512_v1 }
 0x1d2   : > { %v776_v27 = vld [vmem:[#allocation2] sm:$0xff] }
 0x1d3   : > { %961 = vrot.lane.b32.xlu1 %v776_v27, %s2514_s15  ;;  %1980 = vmatmul.mubr.msk.f32.vlgmr.msra.gmra.mrb[2].mxu1 %vm777_vm2, %v776_v27  ;;  %v2959_v34 = vpop.f32.mrb[2].mxu0 }
 0x1d4   : > { %1984 = vmatprep.mubr.msk.f32.mxu1 %vm2513_vm1, %v2512_v1  ;;  %v1976_v35 = vpop.f32.mrb[3].mxu0  ;;  %1983 = vmatpush3.msra.mxu1 %v2959_v34 }
 0x1d5   : > { %1987 = vmatprep.subr.mxu1 %v2512_v1 }
 0x1d7   : > { %1158 = vrot.lane.b32.xlu1 %v693_v25, %s2515_s28 }
 0x1db   : > { %1156 = vrot.lane.b32.xlu1 %v776_v27, %s2515_s28 }
 0x1df   : > { %1352 = vrot.lane.b32.xlu1 %v693_v25, %s2516_s25 }
 0x1e3   : > { %1350 = vrot.lane.b32.xlu1 %v776_v27, %s2516_s25 }
 0x23e   : > { %v964_v28 = vpop.permute.xlu1 %963 }
 0x245   : > { %v2942_v29 = vpop.permute.xlu1 %961 }
 0x249   : > { %v1159_v30 = vpop.permute.xlu1 %1158 }
 0x24a   : > { %1998 = vmatpush3.xpose.msk.msra.mxu0 %vm777_vm2, %v1159_v30 }
 0x24b   : > { %2007 = vmatprep.subr.mxu0 %v2512_v1 }
 0x24d   : > { %v1157_v31 = vpop.permute.xlu1 %1156 }
 0x24e   : > { %2000 = vmatmul.mubr.msk.f32.vlgmr.msra.gmra.mrb[4].mxu0 %vm777_vm2, %v1157_v31 }
 0x24f   : > { %2009 = vmatprep.mubr.msk.f32.mxu0 %vm2513_vm1, %v2512_v1 }
 0x251   : > { %v1353_v32 = vpop.permute.xlu1 %1352 }
 0x252   : > { %2008 = vmatpush3.xpose.msk.msra.mxu0 %vm777_vm2, %v1353_v32 }
 0x253   : > { %2046 = vmatprep.subr.bf16.mxu0 %v2511_v0 }
 0x255   : > { %v1351_v33 = vpop.permute.xlu1 %1350 }
 0x256   : > { %2010 = vmatmul.mubr.msk.f32.vlgmr.msra.gmra.mrb[6].mxu0 %vm777_vm2, %v1351_v33 }
 0x257   : > { %2025 = vmatprep.mubr.msk.f32.mxu0 %vm2513_vm1, %v2512_v1 }
 0x2a6   : > { %v850_v38 = vpop.f32.mrb[2].mxu1 }
 0x2a7   : > { %v851_v39 = vadd.f32 %v850_v38, %v775_v37  ;;  %v1981_v40 = vpop.f32.mrb[3].mxu1 }
 0x2a9   : > { %v855_v41 = vsel %vm777_vm2, %v851_v39, -inf }
 0x2aa   : > { %856 = vmax.xlane.f32.xlu0 %v855_v41 }
 0x321   : > { %v1230_v44 = vpop.f32.mrb[4].mxu0 }
 0x322   : > { %v2001_v45 = vpop.f32.mrb[5].mxu0  ;;  %v1231_v52 = vadd.f32 %v1230_v44, %v775_v37 }
 0x324   : > { %v1236_v53 = vsel %vm777_vm2, %v1231_v52, -inf }
 0x329   : > { %v1424_v46 = vpop.f32.mrb[6].mxu0 }
 0x32a   : > { %v2011_v47 = vpop.f32.mrb[7].mxu0  ;;  %v1425_v5 = vadd.f32 %v1424_v46, %v775_v37 }
 0x32c   : > { %v1430_v7 = vsel %vm777_vm2, %v1425_v5, -inf }
 0x337   : > { %v857_v49 = vpop.xlane.xlu0 %856 }
 0x338   : > { %v2979_v50 = vmax.f32 %v2976_v48, %v857_v49 }
 0x33a   : > { %v859_v51 = vsub.f32 %v2976_v48, %v2979_v50  ;;  %960 = vst.msk [vmem:[#allocation3] sm:$0xff] %vm527_vm3, %v2979_v50  ;;  %864 = vperm.xlu0 %2178, %v2979_v50   ;;  %v1057_v48 = vld [vmem:[#allocation4 + $0x8] sm:$0xff] }
 0x33c   : > { %v860_v36 = vmul.f32 1.442695, %v859_v51  ;;  %v1252_v51 = vld [vmem:[#allocation4 + $0x10] sm:$0xff] }
 0x359   : > { %1237 = vmax.xlane.f32.xlu0 %v1236_v53 }
 0x3b9   : > { %v865_v54 = vpop.permute.xlu0 %864 }
 0x3ba   : > { %v867_v55 = vsub.f32 %v851_v39, %v865_v54 }
 0x3bc   : > { %v868_v56 = vmul.f32 1.442695, %v867_v55  ;;  %v1446_v55 = vld [vmem:[#allocation4 + $0x18] sm:$0xff] }
 0x3be   : > { %2180 = vpow2.f32 %v868_v56 }
 0x3c8   : > { %v2181_v57 = vpop.eup %2180 }
 0x3c9   : > { %1985 = vmatmul.mubr.msk.f32.vlgmr.msra.gmra.mrb[4].mxu1 %vm777_vm2, %v2181_v57  ;;  %v872_v16 = vsel %vm777_vm2, %v2181_v57, 0.0 }
 0x3ca   : > { %1988 = vmatpush3.xpose.msk.msra.mxu1 %vm777_vm2, %v964_v28  ;;  %1989 = vmatprep.mubr.msk.f32.mxu1 %vm2513_vm1, %v2512_v1 }
 0x3cb   : > { %1992 = vmatprep.subr.mxu1 %v2512_v1 }
 0x3cd   : > { %1990 = vmatmul.mubr.msk.f32.vlgmr.msra.gmra.mrb[6].mxu1 %vm777_vm2, %v2942_v29 }
 0x3ce   : > { %1994 = vmatprep.mubr.msk.f32.mxu1 %vm2513_vm1, %v2512_v1 }
 0x3e6   : > { %v1238_v59 = vpop.xlane.xlu0 %1237 }
 0x3e7   : > { %v2999_v60 = vmax.f32 %v2996_v58, %v1238_v59 }
 0x3e9   : > { %v1240_v61 = vsub.f32 %v2996_v58, %v2999_v60  ;;  %1349 = vst.msk [vmem:[#allocation3 + $0x10] sm:$0xff] %vm527_vm3, %v2999_v60  ;;  %1245 = vperm.xlu0 %2178, %v2999_v60   ;;  %v951_v60 = vld [vmem:[#allocation5] sm:$0xff] }
 0x468   : > { %v1246_v17 = vpop.permute.xlu0 %1245 }
 0x469   : > { %v1248_v18 = vsub.f32 %v1231_v52, %v1246_v17  ;;  %v1590_v17 = vld [vmem:[#allocation17 + $0x10] sm:$0xff] }
 0x46b   : > { %v1249_v21 = vmul.f32 1.442695, %v1248_v18  ;;  %v1591_v18 = vld [vmem:[#allocation17 + $0x18] sm:$0xff] }
 0x49c   : > { %v3006_v62 = vpop.f32.mrb[4].mxu1 }
 0x49d   : > { %v1986_v63 = vpop.f32.mrb[5].mxu1 }
 0x4a0   : > { %v1035_v2 = vpop.f32.mrb[6].mxu1 }
 0x4a1   : > { %v1036_v3 = vadd.f32 %v1035_v2, %v775_v37  ;;  %v1991_v4 = vpop.f32.mrb[7].mxu1  ;;  %v1241_v37 = vmul.f32 1.442695, %v1240_v61 }
 0x4a3   : > { %v1041_v6 = vsel %vm777_vm2, %v1036_v3, -inf }
 0x4a4   : > { %1042 = vmax.xlane.f32.xlu1 %v1041_v6 }
 0x4a8   : > { %1431 = vmax.xlane.f32.xlu1 %v1430_v7 }
 0x531   : > { %v1043_v9 = vpop.xlane.xlu1 %1042 }
 0x532   : > { %v1044_v10 = vmax.f32 %v1040_v8, %v1043_v9 }
 0x534   : > { %v1045_v12 = vsub.f32 %v1040_v8, %v1044_v10  ;;  %1155 = vst.msk [vmem:[#allocation3 + $0x8] sm:$0xff] %vm527_vm3, %v1044_v10  ;;  %1050 = vperm.xlu1 %2179, %v1044_v10  }
 0x535   : > { %v1432_v13 = vpop.xlane.xlu1 %1431 }
 0x536   : > { %v1433_v14 = vmax.f32 %v1429_v11, %v1432_v13  ;;  %v1046_v35 = vmul.f32 1.442695, %v1045_v12 }
 0x538   : > { %v1434_v15 = vsub.f32 %v1429_v11, %v1433_v14  ;;  %1543 = vst.msk [vmem:[#allocation3 + $0x18] sm:$0xff] %vm527_vm3, %v1433_v14  ;;  %1065 = vrot.lane.b32.xlu1 %v2959_v34, %s2514_s15  ;;  %s3187_s15 = smov %s3186_s14 }
 0x53a   : > { %v1435_v38 = vmul.f32 1.442695, %v1434_v15  ;;  %v1589_v15 = vld [vmem:[#allocation17 + $0x8] sm:$0xff] }
 0x53c   : > { %1439 = vperm.xlu1 %2179, %v1433_v14   ;;  %v1588_v14 = vld [vmem:[#allocation17] sm:$0xff] }
 0x540   : > { %1259 = vrot.lane.b32.xlu1 %v2959_v34, %s2515_s28  ;;  %s3060_s28 = scalar_lea.hbm %s3186_s14, %s1905_s24 }
 0x544   : > { %1453 = vrot.lane.b32.xlu1 %v2959_v34, %s2516_s25  ;;  %s1674_s25 = scalar_lea.sflag [#allocation8], %s2875_s13 }
 0x568   : > { %873 = vadd.xlane.f32.xlu1 %v872_v16  ;;  %v2047_v16 = vpack.c.bf16 %v1589_v15, %v1588_v14 }
 0x56a   : > { %2048 = vmatpush3.bf16.msra.mxu0 %v2047_v16 }
 0x56b   : > { %2049 = vmatprep.subr.bf16.mxu0 %v2511_v0 }
 0x5b3   : > { %v1051_v19 = vpop.permute.xlu1 %1050 }
 0x5b4   : > { %v1053_v20 = vsub.f32 %v1036_v3, %v1051_v19  ;;  %v2050_v19 = vpack.c.bf16 %v1591_v18, %v1590_v17 }
 0x5b6   : > { %v1054_v22 = vmul.f32 1.442695, %v1053_v20  ;;  %2051 = vmatpush3.bf16.msra.mxu0 %v2050_v19 }
 0x5b7   : > { %v1066_v23 = vpop.permute.xlu1 %1065 }
 0x5b8   : > { %2182 = vpow2.f32 %v1054_v22  ;;  %1993 = vmatpush3.msra.mxu1 %v1066_v23 }
 0x5b9   : > { %2002 = vmatprep.subr.mxu1 %v2512_v1  ;;  %2184 = vpow2.f32 %v1249_v21 }
 0x5bb   : > { %v1440_v24 = vpop.permute.xlu1 %1439 }
 0x5bc   : > { %v1442_v25 = vsub.f32 %v1425_v5, %v1440_v24 }
 0x5be   : > { %v1443_v26 = vmul.f32 1.442695, %v1442_v25 }
 0x5bf   : > { %v1260_v27 = vpop.permute.xlu1 %1259 }
 0x5c0   : > { %2186 = vpow2.f32 %v1443_v26 }
 0x5c1   : > { %2188 = vpow2.f32 %v1046_v35 }
 0x5c2   : > { %v2183_v28 = vpop.eup %2182  ;;  %2190 = vpow2.f32 %v860_v36 }
 0x5c3   : > { %1995 = vmatmul.mubr.msk.f32.vlgmr.msra.gmra.mrb[8].mxu1 %vm777_vm2, %v2183_v28  ;;  %v1059_v29 = vsel %vm777_vm2, %v2183_v28, 0.0  ;;  %v2185_v30 = vpop.eup %2184  ;;  %v1454_v31 = vpop.permute.xlu1 %1453  ;;  %2192 = vpow2.f32 %v1241_v37 }
 0x5c4   : > { %2003 = vmatpush3.msra.mxu1 %v1260_v27  ;;  %1060 = vadd.xlane.f32.xlu0 %v1059_v29  ;;  %v1254_v32 = vsel %vm777_vm2, %v2185_v30, 0.0  ;;  %2194 = vpow2.f32 %v1435_v38 }
 0x5c5   : > { %2004 = vmatprep.mubr.msk.f32.mxu1 %vm2513_vm1, %v2512_v1  ;;  %2012 = vmatprep.subr.mxu1 %v2512_v1 }
 0x5c7   : > { %2005 = vmatmul.mubr.msk.f32.vlgmr.msra.gmra.mrb[10].mxu1 %vm777_vm2, %v2185_v30 }
 0x5c8   : > { %2013 = vmatpush3.msra.mxu1 %v1454_v31  ;;  %1255 = vadd.xlane.f32.xlu0 %v1254_v32 }
 0x5c9   : > { %2014 = vmatprep.mubr.msk.f32.mxu1 %vm2513_vm1, %v2512_v1 }
 0x5ca   : > { %v2187_v33 = vpop.eup %2186 }
 0x5cb   : > { %2015 = vmatmul.mubr.msk.f32.vlgmr.msra.gmra.mrb[12].mxu1 %vm777_vm2, %v2187_v33  ;;  %v1448_v34 = vsel %vm777_vm2, %v2187_v33, 0.0  ;;  %v2189_v1 = vpop.eup %2188 }
 0x5cc   : > { %1449 = vadd.xlane.f32.xlu1 %v1448_v34  ;;  %v2191_v39 = vpop.eup %2190  ;;  %v1058_v49 = vmul.f32 %v2189_v1, %v1057_v48 }
 0x5cd   : > { %v2193_v40 = vpop.eup %2192  ;;  %v871_v43 = vmul.f32 %v2191_v39, %v870_v42 }
 0x5ce   : > { %v2195_v41 = vpop.eup %2194  ;;  %v1253_v53 = vmul.f32 %v2193_v40, %v1252_v51 }
 0x5cf   : > { %v1447_v57 = vmul.f32 %v2195_v41, %v1446_v55 }
 0x5dd   : > { %1144 = vperm.xlu1 %2179, %v2189_v1  }
 0x5de   : > { %954 = vperm.xlu0 %2178, %v2191_v39  }
 0x5e2   : > { %1338 = vperm.xlu0 %2178, %v2193_v40  }
 0x5e6   : > { %1532 = vperm.xlu0 %2178, %v2195_v41  }
 0x5f5   : > { %v874_v44 = vpop.xlane.xlu1 %873 }
 0x5f6   : > { %v875_v45 = vadd.f32 %v874_v44, %v871_v43 }
 0x5f8   : > { %877 = vst.msk [vmem:[#allocation4] sm:$0xff] %vm527_vm3, %v875_v45 }
 0x5ff   : > { %v1547_v46 = vld [vmem:[#allocation4] sm:$0xff] }
 0x600   : > { %2196 = vrcp.f32 %v1547_v46  ;;  %v1902_v46 = vld [vmem:[%s3185_s1] ss:$0 sm:$0xff] }
 0x60a   : > { %v2197_v47 = vpop.eup %2196 }
 0x60b   : > { %1552 = vperm.xlu0 %2178, %v2197_v47  }
 0x651   : > { %v1061_v50 = vpop.xlane.xlu0 %1060 }
 0x652   : > { %v1062_v52 = vadd.f32 %v1061_v50, %v1058_v49 }
 0x654   : > { %1063 = vst.msk [vmem:[#allocation4 + $0x8] sm:$0xff] %vm527_vm3, %v1062_v52 }
 0x655   : > { %v1256_v54 = vpop.xlane.xlu0 %1255 }
 0x656   : > { %v1257_v56 = vadd.f32 %v1256_v54, %v1253_v53 }
 0x658   : > { %1258 = vst.msk [vmem:[#allocation4 + $0x10] sm:$0xff] %vm527_vm3, %v1257_v56 }
 0x659   : > { %v1450_v58 = vpop.xlane.xlu1 %1449 }
 0x65a   : > { %v1451_v59 = vadd.f32 %v1450_v58, %v1447_v57 }
 0x65b   : > { %v1557_v5 = vld [vmem:[#allocation4 + $0x8] sm:$0xff] }
 0x65c   : > { %1452 = vst.msk [vmem:[#allocation4 + $0x18] sm:$0xff] %vm527_vm3, %v1451_v59 }
 0x65d   : > { %v955_v61 = vpop.permute.xlu0 %954  ;;  %v1145_v20 = vpop.permute.xlu1 %1144 }
 0x65e   : > { %v957_v63 = vmul.f32 %v955_v61, %v951_v60 }
 0x65f   : > { %v1567_v2 = vld [vmem:[#allocation4 + $0x10] sm:$0xff] }
 0x660   : > { %v958_v3 = vadd.f32 %v957_v63, %v3006_v62  ;;  %2198 = vrcp.f32 %v1567_v2 }
 0x661   : > { %2200 = vrcp.f32 %v1557_v5  ;;  %v1339_v25 = vpop.permute.xlu0 %1338 }
 0x662   : > { %959 = vst.msk [vmem:[#allocation5] sm:$0xff] %vm777_vm2, %v958_v3 }
 0x663   : > { %v1577_v8 = vld [vmem:[#allocation4 + $0x18] sm:$0xff] }
 0x664   : > { %2202 = vrcp.f32 %v1577_v8 }
 0x665   : > { %v1533_v30 = vpop.permute.xlu0 %1532 }
 0x669   : > { %v1141_v21 = vld [vmem:[#allocation5] sm:$0xff] }
 0x66a   : > { %v2199_v4 = vpop.eup %2198  ;;  %v1147_v22 = vmul.f32 %v1145_v20, %v1141_v21 }
 0x66b   : > { %1572 = vperm.xlu0 %2178, %v2199_v4   ;;  %v2201_v12 = vpop.eup %2200 }
 0x66e   : > { %v2203_v13 = vpop.eup %2202 }
 0x68a   : > { %v1553_v34 = vpop.permute.xlu0 %1552 }
 0x696   : > { %v1137_v6 = vpop.f32.mrb[8].mxu1 }
 0x697   : > { %v1996_v7 = vpop.f32.mrb[9].mxu1  ;;  %1149 = vrot.lane.b32.xlu1 %v1137_v6, %s2519_s17 }
 0x69a   : > { %v1331_v9 = vpop.f32.mrb[10].mxu1 }
 0x69b   : > { %1343 = vrot.lane.b32.xlu1 %v1331_v9, %s2520_s29  ;;  %v2006_v10 = vpop.f32.mrb[11].mxu1 }
 0x69e   : > { %v1525_v11 = vpop.f32.mrb[12].mxu1 }
 0x69f   : > { %1537 = vrot.lane.b32.xlu1 %v1525_v11, %s2521_s27  ;;  %v2016_v62 = vpop.f32.mrb[13].mxu1 }
 0x6a3   : > { %1562 = vperm.xlu1 %2179, %v2201_v12  }
 0x6a7   : > { %1582 = vperm.xlu1 %2179, %v2203_v13  }
 0x6ea   : > { %v1573_v39 = vpop.permute.xlu0 %1572 }
 0x709   : > { %v1150_v23 = vpop.permute.xlu1 %1149 }
 0x70a   : > { %v1152_v24 = vadd.f32 %v1150_v23, %v1147_v22 }
 0x70c   : > { %1154 = vst.msk [vmem:[#allocation5] sm:$0xff] %vm1153_vm4, %v1152_v24 }
 0x70d   : > { %v1344_v28 = vpop.permute.xlu1 %1343 }
 0x711   : > { %v1538_v32 = vpop.permute.xlu1 %1537 }
 0x713   : > { %v1335_v26 = vld [vmem:[#allocation5] sm:$0xff] }
 0x714   : > { %v1341_v27 = vmul.f32 %v1339_v25, %v1335_v26 }
 0x716   : > { %v1346_v29 = vadd.f32 %v1344_v28, %v1341_v27 }
 0x718   : > { %1348 = vst.msk [vmem:[#allocation5] sm:$0xff] %vm1347_vm5, %v1346_v29 }
 0x71f   : > { %v1529_v31 = vld [vmem:[#allocation5] sm:$0xff] }
 0x720   : > { %v1535_v0 = vmul.f32 %v1533_v30, %v1529_v31 }
 0x722   : > { %v1540_v33 = vadd.f32 %v1538_v32, %v1535_v0  ;;  %v1563_v37 = vpop.permute.xlu1 %1562 }
 0x724   : > { %1542 = vst.msk [vmem:[#allocation5] sm:$0xff] %vm1541_vm6, %v1540_v33 }
 0x726   : > { %v1583_v42 = vpop.permute.xlu1 %1582 }
 0x72b   : > { %v1549_v35 = vld [vmem:[#allocation5] sm:$0xff] }
 0x72c   : > { %v1555_v36 = vmul.f32 %v1553_v34, %v1549_v35 }
 0x72e   : > { %1556 = vst.msk [vmem:[#allocation5] sm:$0xff] %vm777_vm2, %v1555_v36 }
 0x735   : > { %v1559_v38 = vld [vmem:[#allocation5] sm:$0xff] }
 0x736   : > { %v1565_v1 = vmul.f32 %v1563_v37, %v1559_v38 }
 0x738   : > { %1566 = vst.msk [vmem:[#allocation5] sm:$0xff] %vm1153_vm4, %v1565_v1 }
 0x73f   : > { %v1569_v40 = vld [vmem:[#allocation5] sm:$0xff] }
 0x740   : > { %v1575_v41 = vmul.f32 %v1573_v39, %v1569_v40 }
 0x742   : > { %1576 = vst.msk [vmem:[#allocation5] sm:$0xff] %vm1347_vm5, %v1575_v41 }
 0x749   : > { %v1579_v43 = vld [vmem:[#allocation5] sm:$0xff] }
 0x74a   : > { %v1585_v44 = vmul.f32 %v1583_v42, %v1579_v43 }
 0x74c   : > { %1586 = vst.msk [vmem:[#allocation5] sm:$0xff] %vm1541_vm6, %v1585_v44 }
 0x753   : > { %v1587_v45 = vld [vmem:[#allocation5] sm:$0xff] }
 0x754   : > { %2026 = vmatmul.mubr.msk.f32.vlgmr.msra.gmra.mrb[8].mxu0 %vm536_vm0, %v1587_v45 }
 0x827   : > { %v1668_v47 = vpop.f32.mrb[8].mxu0 }
 0x828   : > { %v1669_v48 = vadd.f32 %v1902_v46, %v1668_v47  ;;  %v2027_v49 = vpop.f32.mrb[9].mxu0 }
 0x82a   : > { %1672 = vst.msk [vmem:[%s515_s19] sm:$0xff] %vm536_vm0, %v1669_v48 }
 0x82b   : > { %2419 = shalt.err (!%p2416_p5)
}
 0x82c   : > { %s2420_s13 = scalar_lea.hbm %s3060_s28, 128  ;;  %s2424_s30 = scalar_lea.hbm %s3187_s15, 256 }
 0x82d   : > { %p2421_p3 = scmp.ne.s32.totalorder %s3060_s28, %s2420_s13  ;;  %p2425_p4 = scmp.lt.u32.totalorder %s3060_s28, %s3187_s15 }
 0x82e   : > { %p2426_p10 = scmp.lt.u32.totalorder %s2424_s30, %s2420_s13  ;;  %p2428_p2 = scmp.lt.u32.totalorder %s2420_s13, %s3060_s28 }
 0x82f   : > { %p2422_p6 = pnand %p2421_p3, %p3188_p1 }
 0x830   : > { %p2427_p13 = por %p2426_p10, %p2425_p4 }
 0x831   : > { %p2423_p0 = pneg %p2422_p6 }
 0x832   : > { %p2429_p12 = por %p2428_p2, %p2427_p13 }
 0x834   : > { %p2430_p8 = pnand %p2429_p12, %p2423_p0 }
 0x836   : > { %2433 = shalt.err (!%p2430_p8)
}
 0x837   : > { %2074 = dma.vmem_to_hbm [thread:$0]  (%p3188_p1), %s3062_s16, 128, %s3060_s28, %s1674_s25  }
 0x838 PF: > { %s3189_s27 = sld [smem:[#allocation24_spill]]  ;;  %s3190_s6 = sld [smem:[#allocation30_spill]] }
 0x839   : > { %s3191_s22 = sld [smem:[#allocation26_spill]] }
 0x83e   : > { %s1699_s1 = sand.u32 1, %s3189_s27   ;;  %p3192_p9 = scmp.ne.s32.totalorder %s3190_s6, 0 }
 0x83f   : > { %p3193_p7 = scmp.ge.s32.totalorder %s3191_s22, 2  ;;  %s1700_s24 = scalar_lea.sflag [#allocation8], %s1699_s1 }
 0x841   : > { %p2100_p11 = pnand %p3193_p7, %p3192_p9 }
 0x843   : > { %2475 = dma.done.wait (!%p2100_p11), %s1700_s24, 128  }
 0x844   : > { %2477 = vsyncadd (!%p2100_p11), %s1700_s24, 4294967168  ;;  %s30_s14 = sadd.s32 1, %s3191_s22   ;;  %s3194_s21 = sld [smem:[#allocation29_spill]] }
 0x845   : > { %p27_p5 = scmp.ge.s32.totalorder %s30_s14, 4   ;;  %s3195_s12 = sld [smem:[#allocation25_spill]] }
 0x846   : > { %s3196_s13 = sld [smem:[#allocation27_spill]]  ;;  %s3197_s30 = smov %s2484_s10 }
 0x847   : > { %s3198_s10 = smov %s2488_s11  ;;  %29 = sbr.rel (!%p27_p5) target bundleno = 16 (0x10), region = 158 }
 0x84a   : > { %s3199_s11 = smov %s3194_s21 }
 0x84e   :  { %1705 = vsyncpa [#allocation7], 1 }
 0x84f   :  { %1707 = vsyncpa [#allocation7 + $0x1], 1 }
 0x850   :  { %1708 = vsyncpa [#allocation10], 1 }
 0x851   :  { %1710 = vsyncpa [#allocation10 + $0x1], 1 }
 0x852   :  { %1711 = vsyncpa [#allocation13], 1 }
 0x853   :  { %1712 = vsyncpa [#allocation16], 1 }
 0x854   :  { %1713 = vsyncpa [#allocation8], 1 }
 0x855   :  { %1715 = vsyncpa [#allocation8 + $0x1], 1 }

// kernel: tpu_custom_call.1
= control target key start
LH: loop header
LB: loop body
LE: loop exit
PB: predicated region body
PF: predicated region fallthrough
CT: control target
= control target key end

     0   :  { %s3110_s0 = inlined_call_operand.hbm [shape: f32[2,8,32], index: 0, kind: input, shape index: {}]   ;;  %s3111_s1 = inlined_call_operand.hbm [shape: f32[2,8,32], index: 1, kind: input, shape index: {}]   ;;  %s3112_s2 = inlined_call_operand.hbm [shape: f32[2,8,32], index: 2, kind: input, shape index: {}]   ;;  %s3113_s3 = inlined_call_operand.vmem [shape: bf16[2,8,8], index: 3, kind: input, shape index: {}]   ;;  %s3114_s4 = inlined_call_operand.hbm [shape: f32[32,32], index: 4, kind: input, shape index: {}]   ;;  %s3115_s5 = inlined_call_operand.hbm [shape: f32[32,32], index: 5, kind: input, shape index: {}]   ;;  %s3116_s6 = inlined_call_operand.hbm [shape: f32[32,32], index: 6, kind: input, shape index: {}]   ;;  %s3117_s7 = inlined_call_operand.hbm [shape: f32[32,32], index: 7, kind: input, shape index: {}]   ;;  %s3118_s8 = inlined_call_operand.vmem [shape: f32[1,32], index: 8, kind: input, shape index: {}]   ;;  %s3119_s9 = inlined_call_operand.hbm [shape: f32[2,8,32], index: 9, kind: output, shape index: {}]  }
   0x1   :  { %3146 = sst [smem:[#allocation31_spill]] %s3111_s1 }
   0x2   :  { %3147 = sst [smem:[#allocation32_spill]] %s3114_s4 }
   0x3   :  { %3148 = sst [smem:[#allocation33_spill]] %s3116_s6 }
   0x4   :  { %3149 = sst [smem:[#allocation34_spill]] %s3118_s8 }
   0x5   :  { %3150 = sst [smem:[#allocation35_spill]] %s3119_s9 }
   0x6   :  { %14 = vsyncpa [#allocation7], 0 }
   0x7   :  { %16 = vsyncpa [#allocation7 + $0x1], 0 }
   0x8   :  { %17 = vsyncpa [#allocation10], 0 }
   0x9   :  { %19 = vsyncpa [#allocation10 + $0x1], 0 }
   0xa   :  { %20 = vsyncpa [#allocation13], 0 }
   0xb   :  { %21 = vsyncpa [#allocation16], 0 }
   0xc   :  { %22 = vsyncpa [#allocation8], 0 }
   0xd   :  { %24 = vsyncpa [#allocation8 + $0x1], 0  ;;  %s2573_s30 = smov 0   ;;  %s2575_s10 = smov 0  }
   0xe   :  { %s2577_s11 = smov 0   ;;  %s2579_s12 = smov 0  }
   0xf   :  { %s2581_s13 = smov 0   ;;  %s2583_s14 = smov 0  }
  0x10 LB: > { %3151 = sst [smem:[#allocation24_spill]] %s2480_s30  ;;  %s2604_s15 = sadd.s32 4294967295, %s2500_s14   ;;  %s2500_s14 = sphi %s2583_s14, %s30_s14   ;;  %s2496_s13 = sphi %s2581_s13, %s3196_s13   ;;  %s2492_s12 = sphi %s2579_s12, %s3195_s12   ;;  %s2488_s11 = sphi %s2577_s11, %s3199_s11   ;;  %s2484_s10 = sphi %s2575_s10, %s3198_s10   ;;  %s2480_s30 = sphi %s2573_s30, %s3197_s30  }
  0x11   : > { %3152 = sst [smem:[#allocation25_spill]] %s2496_s13  ;;  %p1865_p0 = scmp.ge.s32.totalorder %s2500_s14, 1 }
  0x12   : > { %3153 = sst [smem:[#allocation26_spill]] %s2500_s14  ;;  %p3130_p1 = scmp.eq.s32.totalorder %s2604_s15, 0 }
  0x13   : > { %p288_p2 = scmp.lt.s32.totalorder %s2500_s14, 3  ;;  %s2502_s17 = smov [#allocation12]  }
  0x14   : > { %s300_s18 = sshll.u32 %s2502_s17, 4  ;;  %s2503_s20 = smov [#allocation15]   ;;  %s2613_s18 = int_to_ptr.vmem [resolvable:$true] %s300_s18 }
  0x15   : > { %p2609_p3 = pnand %p1865_p0, %p288_p2  ;;  %s326_s21 = sshll.u32 %s2503_s20, 4  ;;  %s2624_s21 = int_to_ptr.vmem [resolvable:$true] %s326_s21 }
  0x16   : > { %s3156_s4 = sld [smem:[#allocation32_spill]] }
  0x17   : > { %s3154_s16 = scalar_select %p2609_p3, 1, 0 }
  0x18   : > { %p2076_p4 = pneg %p2609_p3 }
  0x1a   : > { %p2620_p6 = pnand %p2076_p4, %p3130_p1 }
  0x1c   : > { %s3155_s19 = scalar_select %p2620_p6, 1, 0 }
  0x1d   : > { %s2204_s24 = scalar_lea.hbm %s3156_s4, 512  ;;  %p2634_p8 = pneg %p2620_p6 }
  0x1e   : > { %p2205_p7 = scmp.ne.s32.totalorder %s3156_s4, %s2204_s24  ;;  %p2211_p11 = scmp.lt.u32.totalorder %s2204_s24, %s3156_s4 }
  0x1f   : > { %s3157_s27 = scalar_select %p2634_p8, 1, 0 }
  0x20   : > { %p2207_p9 = pnand %p2634_p8, %p2205_p7 }
  0x22   : > { %p2208_p10 = pneg %p2207_p9 }
  0x24   : > { %p2213_p12 = pnand %p2211_p11, %p2208_p10 }
  0x26   : > { %2216 = shalt.err (!%p2213_p12)
}
  0x27   : > { %s2217_s17 = scalar_lea.vmem %s2613_s18, 512  ;;  %p2225_p4 = scmp.lt.s32.totalorder %s2613_s18, %s2613_s18 }
  0x28   : > { %p2218_p13 = scmp.ne.s32.totalorder %s2613_s18, %s2217_s17  ;;  %p2226_p5 = scmp.lt.s32.totalorder %s2217_s17, %s2217_s17 }
  0x2a   : > { %p2220_p0 = pnand %p2218_p13, %p2634_p8  ;;  %p2227_p7 = por %p2226_p5, %p2225_p4 }
  0x2c   : > { %p2221_p2 = pneg %p2220_p0 }
  0x2e   : > { %p2228_p9 = pnand %p2227_p7, %p2221_p2 }
  0x30   : > { %2231 = shalt.err (!%p2228_p9)
}
  0x31   : > { %s3121_s20 = smov 128   ;;  %s3123_s22 = smov 8  }
  0x32   : > { %2079 = dma.hbm_to_vmem [thread:$0]  (!%p2620_p6), %s3156_s4, 512, %s2613_s18, [#allocation13], %s3121_s20, %s3121_s20, %s3123_s22  }
  0x33   : > { %s3158_s6 = sld [smem:[#allocation33_spill]] }
  0x39   : > { %s2232_s28 = scalar_lea.hbm %s3158_s6, 512 }
  0x3a   : > { %p2233_p5 = scmp.ne.s32.totalorder %s3158_s6, %s2232_s28  ;;  %p2239_p12 = scmp.lt.u32.totalorder %s2232_s28, %s3158_s6 }
  0x3c   : > { %p2235_p10 = pnand %p2233_p5, %p2634_p8 }
  0x3e   : > { %p2236_p11 = pneg %p2235_p10 }
  0x40   : > { %p2241_p13 = pnand %p2239_p12, %p2236_p11 }
  0x42   : > { %2244 = shalt.err (!%p2241_p13)
}
  0x43   : > { %s2245_s18 = scalar_lea.vmem %s2624_s21, 512  ;;  %p2253_p7 = scmp.lt.s32.totalorder %s2624_s21, %s2624_s21 }
  0x44   : > { %p2246_p0 = scmp.ne.s32.totalorder %s2624_s21, %s2245_s18  ;;  %p2254_p9 = scmp.lt.s32.totalorder %s2245_s18, %s2245_s18 }
  0x46   : > { %p2248_p2 = pnand %p2246_p0, %p2634_p8  ;;  %p2255_p5 = por %p2254_p9, %p2253_p7 }
  0x48   : > { %p2249_p4 = pneg %p2248_p2 }
  0x4a   : > { %p2256_p10 = pnand %p2255_p5, %p2249_p4 }
  0x4c   : > { %2259 = shalt.err (!%p2256_p10)
}
  0x4d   : > { %2085 = dma.hbm_to_vmem [thread:$0]  (!%p2620_p6), %s3158_s6, 512, %s2624_s21, [#allocation16], %s3121_s20, %s3121_s20, %s3123_s22  }
  0x4e   : > { %s1864_s23 = sadd.s32 4294967294, %s2500_s14   ;;  %s42_s24 = sadd.s32 1, %s2496_s13 }
  0x4f   : > { %p44_p11 = scmp.ge.s32.totalorder %s42_s24, 2  ;;  %s51_s25 = sadd.s32 1, %s2488_s11 }
  0x50   : > { %p58_p12 = scmp.ne.s32.totalorder %s2488_s11, %s2484_s10  ;;  %p59_p13 = scmp.eq.s32.totalorder %s2500_s14, 0 }
  0x51   : > { %s3201_s24 = smov (%p44_p11, %s42_s24), 0  ;;  %p64_p2 = scmp.ne.s32.totalorder %s2484_s10, %s2480_s30 }
  0x52   : > { %3159 = sst [smem:[#allocation27_spill]] %s3201_s24  ;;  %p2692_p0 = por %p59_p13, %p58_p12 }
  0x53   : > { %s46_s21 = ssub.s32 %s2496_s13, %s3201_s24  ;;  %p275_p4 = scmp.eq.s32.totalorder %s2604_s15, 1 }
  0x54   : > { %p49_p7 = scmp.eq.s32.totalorder %s46_s21, 0  ;;  %p2703_p9 = por %p3130_p1, %p64_p2 }
  0x55   : > { %p2707_p5 = por %p275_p4, %p58_p12  ;;  %p281_p10 = scmp.eq.s32.totalorder %s1864_s23, 1 }
  0x56   : > { %s3161_s28 = scalar_select %p2703_p9, 1, 0 }
  0x57   : > { %s3162_s29 = scalar_select %p2707_p5, 1, 0 }
  0x58   : > { %s2712_s17 = scalar_select %p49_p7, %s2488_s11, %s51_s25  }
  0x59   : > { %3163 = sst [smem:[#allocation28_spill]] %s3162_s29  ;;  %p2714_p11 = por %p281_p10, %p64_p2 }
  0x5a   : > { %3164 = sst [smem:[#allocation29_spill]] %s2712_s17  ;;  %p2107_p13 = scmp.lt.s32.totalorder %s2500_s14, 2 }
  0x5b   : > { %s3165_s18 = scalar_select %p2714_p11, 1, 0 }
  0x5c   : > { %s3125_s8 = sand.u32 1, %s2488_s11   ;;  %s2721_s9 = sshll.u32 %s2496_s13, 7 }
  0x5d   : > { %3166 = sst [smem:[#allocation30_spill]] %s3165_s18  ;;  %s2725_s21 = sshll.u32 %s3125_s8, 3 }
  0x5e   : > { %p2729_p12 = pnand %p2107_p13, %p2692_p0  ;;  %s375_s23 = sand.u32 1, %s2500_s14  }
  0x5f   : > { %s3168_s1 = sld [smem:[#allocation31_spill]]  ;;  %s379_s6 = scalar_lea.vmem [#allocation9], %s2725_s21 }
  0x60   : > { %s3167_s20 = scalar_select %p2729_p12, 1, 0 }
  0x61   : > { %s387_s8 = sshll.u32 %s379_s6, 4  ;;  %s2743_s26 = scalar_lea.sflag [#allocation10], %s375_s23  ;;  %s2741_s8 = int_to_ptr.vmem [resolvable:$true] %s387_s8 }
  0x62   : > { %p2749_p2 = pneg %p2729_p12 }
  0x64   : > { %s3169_s13 = scalar_select %p2749_p2, 1, 0 }
  0x65   : > { %s2738_s4 = scalar_lea.hbm %s3168_s1, %s2721_s9  ;;  %s2265_s17 = scalar_lea.hbm %s3168_s1, 256 }
  0x66   : > { %s2260_s24 = scalar_lea.hbm %s2738_s4, 128  ;;  %p2266_p10 = scmp.lt.u32.totalorder %s2738_s4, %s3168_s1 }
  0x67   : > { %p2261_p0 = scmp.ne.s32.totalorder %s2738_s4, %s2260_s24  ;;  %p2267_p13 = scmp.lt.u32.totalorder %s2265_s17, %s2260_s24 }
  0x68   : > { %p2269_p11 = scmp.lt.u32.totalorder %s2260_s24, %s2738_s4 }
  0x69   : > { %p2263_p4 = pnand %p2749_p2, %p2261_p0  ;;  %p2268_p1 = por %p2267_p13, %p2266_p10 }
  0x6b   : > { %p2264_p7 = pneg %p2263_p4  ;;  %p2270_p5 = por %p2269_p11, %p2268_p1 }
  0x6d   : > { %p2271_p9 = pnand %p2270_p5, %p2264_p7 }
  0x6f   : > { %2274 = shalt.err (!%p2271_p9)
}
  0x70   : > { %s2275_s23 = scalar_lea.vmem %s2741_s8, 128  ;;  %s2506_s22 = smov [#allocation9]  }
  0x71   : > { %p2276_p0 = scmp.ne.s32.totalorder %s2741_s8, %s2275_s23  ;;  %s2280_s25 = sshll.u32 %s2506_s22, 4  ;;  %s2281_s25 = int_to_ptr.vmem [resolvable:$false] %s2280_s25 }
  0x72   : > { %s2282_s14 = scalar_lea.vmem %s2281_s25, 256  ;;  %p2283_p6 = scmp.lt.s32.totalorder %s2741_s8, %s2281_s25 }
  0x73   : > { %p2278_p4 = pnand %p2276_p0, %p2749_p2  ;;  %p2284_p8 = scmp.lt.s32.totalorder %s2282_s14, %s2275_s23 }
  0x75   : > { %p2279_p3 = pneg %p2278_p4  ;;  %p2285_p10 = por %p2284_p8, %p2283_p6 }
  0x77   : > { %p2286_p13 = pnand %p2285_p10, %p2279_p3 }
  0x79   : > { %2289 = shalt.err (!%p2286_p13)
}
  0x7a   : > { %2095 = dma.hbm_to_vmem [thread:$0]  (!%p2729_p12), %s2738_s4, 128, %s2741_s8, %s2743_s26  }
  0x7b   : > { %s2507_s24 = smov [#allocation14]   ;;  %s2508_s6 = smov [#allocation17]  }
  0x7c   : > { %s313_s17 = sshll.u32 %s2507_s24, 4  ;;  %s339_s1 = sshll.u32 %s2508_s6, 4  ;;  %s314_s17 = int_to_ptr.vmem [resolvable:$true] %s313_s17  ;;  %s340_s1 = int_to_ptr.vmem [resolvable:$true] %s339_s1 }
  0x7d   : > { %s2290_s25 = scalar_lea.hbm %s3115_s5, 512  ;;  %p3170_p3 = scmp.ne.s32.totalorder %s3157_s27, 0 }
  0x7e   : > { %p2291_p1 = scmp.ne.s32.totalorder %s3115_s5, %s2290_s25  ;;  %p2297_p9 = scmp.lt.u32.totalorder %s2290_s25, %s3115_s5 }
  0x80   : > { %p2293_p6 = pnand %p2291_p1, %p3170_p3 }
  0x82   : > { %p2294_p8 = pneg %p2293_p6 }
  0x84   : > { %p2299_p5 = pnand %p2297_p9, %p2294_p8 }
  0x86   : > { %2302 = shalt.err (!%p2299_p5)
}
  0x87   : > { %s2303_s4 = scalar_lea.vmem %s314_s17, 512  ;;  %p2311_p4 = scmp.lt.s32.totalorder %s314_s17, %s314_s17 }
  0x88   : > { %p2304_p11 = scmp.ne.s32.totalorder %s314_s17, %s2303_s4  ;;  %p2312_p10 = scmp.lt.s32.totalorder %s2303_s4, %s2303_s4 }
  0x8a   : > { %p2306_p7 = pnand %p2304_p11, %p3170_p3  ;;  %p2313_p13 = por %p2312_p10, %p2311_p4 }
  0x8c   : > { %p2307_p0 = pneg %p2306_p7 }
  0x8e   : > { %p2314_p12 = pnand %p2313_p13, %p2307_p0 }
  0x90   : > { %2317 = shalt.err (!%p2314_p12)
}
  0x91   : > { %p3171_p1 = scmp.ne.s32.totalorder %s3155_s19, 0  ;;  %s3172_s18 = smov 8  }
  0x92   : > { %s3173_s8 = smov 128   ;;  %s2318_s22 = scalar_lea.hbm %s3117_s7, 512 }
  0x93   : > { %2082 = dma.hbm_to_vmem [thread:$0]  (!%p3171_p1), %s3115_s5, 512, %s314_s17, [#allocation13], %s3173_s8, %s3173_s8, %s3172_s18  }
  0x94   : > { %p2319_p6 = scmp.ne.s32.totalorder %s3117_s7, %s2318_s22  ;;  %p2325_p9 = scmp.lt.u32.totalorder %s2318_s22, %s3117_s7 }
  0x96   : > { %p2321_p12 = pnand %p2319_p6, %p3170_p3 }
  0x98   : > { %p2322_p8 = pneg %p2321_p12 }
  0x9a   : > { %p2327_p5 = pnand %p2325_p9, %p2322_p8 }
  0x9c   : > { %2330 = shalt.err (!%p2327_p5)
}
  0x9d   : > { %s2331_s30 = scalar_lea.vmem %s340_s1, 512  ;;  %p2339_p4 = scmp.lt.s32.totalorder %s340_s1, %s340_s1 }
  0x9e   : > { %p2332_p11 = scmp.ne.s32.totalorder %s340_s1, %s2331_s30  ;;  %p2340_p10 = scmp.lt.s32.totalorder %s2331_s30, %s2331_s30 }
  0xa0   : > { %p2334_p7 = pnand %p2332_p11, %p3170_p3  ;;  %p2341_p13 = por %p2340_p10, %p2339_p4 }
  0xa2   : > { %p2335_p0 = pneg %p2334_p7 }
  0xa4   : > { %p2342_p2 = pnand %p2341_p13, %p2335_p0 }
  0xa6   : > { %2345 = shalt.err (!%p2342_p2)
}
  0xa7   : > { %2088 = dma.hbm_to_vmem [thread:$0]  (!%p3171_p1), %s3117_s7, 512, %s340_s1, [#allocation16], %s3173_s8, %s3173_s8, %s3172_s18  }
  0xa8   : > { %s2819_s6 = scalar_lea.hbm %s3110_s0, %s2721_s9  ;;  %s360_s19 = scalar_lea.vmem [#allocation6], %s2725_s21 }
  0xa9   : > { %s368_s22 = sshll.u32 %s360_s19, 4  ;;  %s2828_s14 = scalar_lea.hbm %s3112_s2, %s2721_s9  ;;  %s2822_s22 = int_to_ptr.vmem [resolvable:$true] %s368_s22 }
  0xaa   : > { %s3174_s4 = sand.u32 1, %s2488_s11   ;;  %s2346_s18 = scalar_lea.hbm %s2819_s6, 128 }
  0xab   : > { %s357_s1 = scalar_lea.sflag [#allocation7], %s3174_s4  ;;  %p2347_p2 = scmp.ne.s32.totalorder %s2819_s6, %s2346_s18 }
  0xac   : > { %p3175_p3 = scmp.ne.s32.totalorder %s3169_s13, 0  ;;  %s2351_s17 = scalar_lea.hbm %s3110_s0, 256 }
  0xad   : > { %p2352_p12 = scmp.lt.u32.totalorder %s2819_s6, %s3110_s0  ;;  %p2353_p8 = scmp.lt.u32.totalorder %s2351_s17, %s2346_s18 }
  0xae   : > { %p2349_p1 = pnand %p2347_p2, %p3175_p3  ;;  %p2355_p5 = scmp.lt.u32.totalorder %s2346_s18, %s2819_s6 }
  0xaf   : > { %p2354_p9 = por %p2353_p8, %p2352_p12 }
  0xb0   : > { %p2350_p6 = pneg %p2349_p1 }
  0xb1   : > { %p2356_p11 = por %p2355_p5, %p2354_p9 }
  0xb3   : > { %p2357_p7 = pnand %p2356_p11, %p2350_p6 }
  0xb5   : > { %2360 = shalt.err (!%p2357_p7)
}
  0xb6   : > { %s2361_s9 = scalar_lea.vmem %s2822_s22, 128  ;;  %s2509_s24 = smov [#allocation6]  }
  0xb7   : > { %p2362_p0 = scmp.ne.s32.totalorder %s2822_s22, %s2361_s9  ;;  %s2366_s19 = sshll.u32 %s2509_s24, 4  ;;  %s2367_s19 = int_to_ptr.vmem [resolvable:$false] %s2366_s19 }
  0xb8   : > { %s2368_s25 = scalar_lea.vmem %s2367_s19, 256  ;;  %p2369_p13 = scmp.lt.s32.totalorder %s2822_s22, %s2367_s19 }
  0xb9   : > { %p2364_p4 = pnand %p2362_p0, %p3175_p3  ;;  %p2370_p2 = scmp.lt.s32.totalorder %s2368_s25, %s2361_s9 }
  0xbb   : > { %p2365_p10 = pneg %p2364_p4  ;;  %p2371_p1 = por %p2370_p2, %p2369_p13 }
  0xbd   : > { %p2372_p12 = pnand %p2371_p1, %p2365_p10 }
  0xbf   : > { %2375 = shalt.err (!%p2372_p12)
}
  0xc0   : > { %p3176_p6 = scmp.ne.s32.totalorder %s3167_s20, 0  ;;  %s398_s23 = scalar_lea.vmem [#allocation11], %s2725_s21 }
  0xc1   : > { %s405_s4 = sshll.u32 %s398_s23, 4  ;;  %s2376_s18 = scalar_lea.hbm %s2828_s14, 128  ;;  %s406_s4 = int_to_ptr.vmem [resolvable:$true] %s405_s4 }
  0xc2   : > { %2092 = dma.hbm_to_vmem [thread:$0]  (!%p3176_p6), %s2819_s6, 128, %s2822_s22, %s357_s1  }
  0xc3   : > { %p2377_p8 = scmp.ne.s32.totalorder %s2828_s14, %s2376_s18  ;;  %s2381_s17 = scalar_lea.hbm %s3112_s2, 256 }
  0xc4   : > { %p2382_p11 = scmp.lt.u32.totalorder %s2828_s14, %s3112_s2  ;;  %p2383_p7 = scmp.lt.u32.totalorder %s2381_s17, %s2376_s18 }
  0xc5   : > { %p2379_p9 = pnand %p2377_p8, %p3175_p3  ;;  %p2385_p4 = scmp.lt.u32.totalorder %s2376_s18, %s2828_s14 }
  0xc6   : > { %p2384_p0 = por %p2383_p7, %p2382_p11 }
  0xc7   : > { %p2380_p5 = pneg %p2379_p9 }
  0xc8   : > { %p2386_p10 = por %p2385_p4, %p2384_p0 }
  0xca   : > { %p2387_p13 = pnand %p2386_p10, %p2380_p5 }
  0xcc   : > { %2390 = shalt.err (!%p2387_p13)
}
  0xcd   : > { %s2391_s21 = scalar_lea.vmem %s406_s4, 128  ;;  %s2510_s6 = smov [#allocation11]  }
  0xce   : > { %p2392_p2 = scmp.ne.s32.totalorder %s406_s4, %s2391_s21  ;;  %s2396_s22 = sshll.u32 %s2510_s6, 4  ;;  %s2397_s22 = int_to_ptr.vmem [resolvable:$false] %s2396_s22 }
  0xcf   : > { %s2398_s1 = scalar_lea.vmem %s2397_s22, 256  ;;  %p2399_p8 = scmp.lt.s32.totalorder %s406_s4, %s2397_s22 }
  0xd0   : > { %p2394_p1 = pnand %p2392_p2, %p3175_p3  ;;  %p2400_p9 = scmp.lt.s32.totalorder %s2398_s1, %s2391_s21 }
  0xd2   : > { %p2395_p12 = pneg %p2394_p1  ;;  %p2401_p6 = por %p2400_p9, %p2399_p8 }
  0xd4   : > { %p2402_p7 = pnand %p2401_p6, %p2395_p12 }
  0xd6   : > { %2405 = shalt.err (!%p2402_p7)
}
  0xd7   : > { %p3177_p11 = scmp.ne.s32.totalorder %s3167_s20, 0  ;;  %p3178_p5 = scmp.ne.s32.totalorder %s3154_s16, 0 }
  0xd8   : > { %s2875_s13 = sand.u32 (!%p3178_p5), 1, %s2484_s10   ;;  %p3179_p3 = scmp.ne.s32.totalorder (!%p3178_p5), %s3161_s28, 0 }
  0xd9   : > { %2098 = dma.hbm_to_vmem [thread:$0]  (!%p3177_p11), %s2828_s14, 128, %s406_s4, %s2743_s26  }
  0xda   : > { %424 = sbr.rel (%p3178_p5) target bundleno = 2104 (0x838), region = 56  ;;  %s2878_s9 = sshll.u32 (!%p3178_p5), %s2875_s13, 3 }
  0xdb   : > { %s427_s24 = scalar_lea.sflag (!%p3178_p5), [#allocation7], %s2875_s13  ;;  %s430_s19 = scalar_lea.vmem (!%p3178_p5), [#allocation6], %s2878_s9 }
  0xe1   : > { %2459 = dma.done.wait (%p3179_p3), %s427_s24, 128  }
  0xe2   : > { %2461 = vsyncadd (%p3179_p3), %s427_s24, 4294967168  ;;  %s435_s16 = sand.u32 1, %s2604_s15   ;;  %s439_s26 = scalar_lea.vmem [#allocation9], %s2878_s9 }
  0xe3   : > { %s436_s20 = scalar_lea.sflag [#allocation10], %s435_s16 }
  0xe4   : > { %2463 = dma.done.wait (%p3179_p3), %s436_s20, 256  }
  0xe5   : > { %2465 = vsyncadd (%p3179_p3), %s436_s20, 4294967040  ;;  %s448_s14 = scalar_lea.vmem [#allocation11], %s2878_s9  ;;  %p3180_p6 = scmp.eq.s32.totalorder %s2604_s15, 0 }
  0xe7   : > { %2467 = dma.done.wait (%p3180_p6), [#allocation13], 1024   ;;  %p3181_p0 = pmov %p3180_p6 }
  0xe9   : > { %2469 = vsyncadd (%p3181_p0), [#allocation13], 4294966272  ;;  %p3182_p4 = pmov %p3181_p0 }
  0xea   : > { %p3183_p10 = pmov %p3181_p0 }
  0xeb   : > { %2471 = dma.done.wait (%p3182_p4), [#allocation16], 1024  }
  0xec   : > { %2473 = vsyncadd (%p3183_p10), [#allocation16], 4294966272  ;;  %vm536_vm0 = vcmask 261120   ;;  %v2511_v0 = vmov 0.0|0.0   ;;  %v2512_v1 = vmov 0.0   ;;  %vm2513_vm1 = vmmov 0  }
  0xed   : > { %2028 = vmatprep.subr.bf16.mxu0 %v2511_v0  ;;  %2034 = vmatprep.subr.bf16.mxu1 %v2511_v0  ;;  %537 = vst.msk [vmem:[#allocation5] sm:$0xff] %vm536_vm0, %v2512_v1  ;;  %v539_v2 = vld [vmem:[#allocation15] sm:$0xff]  ;;  %v540_v3 = vld [vmem:[#allocation15 + $0x8] sm:$0xff]  ;;  %v541_v7 = vld [vmem:[#allocation15 + $0x10] sm:$0xff]  ;;  %vm777_vm2 = vcmask 64512   ;;  %s2514_s15 = smov 120  }
  0xee   : > { %1952 = vmatprep.mubr.msk.f32.mxu0 %vm2513_vm1, %v2512_v1  ;;  %1963 = vmatprep.mubr.msk.f32.mxu1 %vm2513_vm1, %v2512_v1  ;;  %v619_v4 = vld [vmem:[#allocation14] sm:$0xff]  ;;  %v2029_v5 = vpack.c.bf16 %v540_v3, %v539_v2  ;;  %v620_v6 = vld [vmem:[#allocation14 + $0x8] sm:$0xff]  ;;  %v542_v8 = vld [vmem:[#allocation15 + $0x18] sm:$0xff]  ;;  %s2515_s28 = smov 112   ;;  %s2516_s25 = smov 104   ;;  %vm527_vm3 = vcmask 7168  }
  0xef   : > { %v2035_v9 = vpack.c.bf16 %v620_v6, %v619_v4  ;;  %v621_v10 = vld [vmem:[#allocation14 + $0x10] sm:$0xff]  ;;  %v622_v11 = vld [vmem:[#allocation14 + $0x18] sm:$0xff]  ;;  %v2032_v12 = vpack.c.bf16 %v542_v8, %v541_v7  ;;  %v617_v15 = vld [vmem:[%s439_s26] sm:$0xff]  ;;  %p516_p13 = scmp.lt.s32.totalorder %s2492_s12, 1  ;;  %v2517_v42 = vmov -inf   ;;  %532 = vst.msk [vmem:[#allocation4] sm:$0xff] %vm527_vm3, %v2512_v1 }
  0xf0   : > { %2030 = vmatpush3.bf16.msra.mxu0 %v2029_v5  ;;  %v2038_v13 = vpack.c.bf16 %v622_v11, %v621_v10  ;;  %v538_v14 = vld [vmem:[%s448_s14] sm:$0xff]  ;;  %v697_v16 = vld [vmem:[#allocation12] sm:$0xff]  ;;  %v698_v17 = vld [vmem:[#allocation12 + $0x8] sm:$0xff]  ;;  %528 = vst.msk [vmem:[#allocation3] sm:$0xff] %vm527_vm3, %v2517_v42  ;;  %v2518_v43 = vmov 0   ;;  %s2519_s17 = smov 8  }
  0xf1   : > { %2031 = vmatprep.subr.bf16.mxu0 %v2511_v0  ;;  %2036 = vmatpush3.bf16.msra.mxu1 %v2035_v9  ;;  %v2041_v18 = vpack.c.bf16 %v698_v17, %v697_v16  ;;  %v699_v19 = vld [vmem:[#allocation12 + $0x10] sm:$0xff]  ;;  %v700_v20 = vld [vmem:[#allocation12 + $0x18] sm:$0xff]  ;;  %s517_s23 = scalar_select %p516_p13, %s2492_s12, 1  ;;  %529 = vst.msk [vmem:[#allocation3 + $0x8] sm:$0xff] %vm527_vm3, %v2517_v42  ;;  %530 = vst.msk [vmem:[#allocation3 + $0x10] sm:$0xff] %vm527_vm3, %v2517_v42  ;;  %vm1153_vm4 = vcmask 130112  }
  0xf2   : > { %2037 = vmatprep.subr.bf16.mxu1 %v2511_v0  ;;  %v2044_v21 = vpack.c.bf16 %v700_v20, %v699_v19  ;;  %v618_v22 = vld [vmem:[%s430_s19] sm:$0xff]  ;;  %531 = vst.msk [vmem:[#allocation3 + $0x18] sm:$0xff] %vm527_vm3, %v2517_v42  ;;  %533 = vst.msk [vmem:[#allocation4 + $0x8] sm:$0xff] %vm527_vm3, %v2512_v1  ;;  %2178 = vset.pattern.permute.xlu0 %v2518_v43  ;;  %s2520_s29 = smov 16   ;;  %s2521_s27 = smov 24   ;;  %vm1347_vm5 = vcmask 195712  }
  0xf3   : > { %s1886_s4 = sshll.u32 %s517_s23, 2  ;;  %534 = vst.msk [vmem:[#allocation4 + $0x10] sm:$0xff] %vm527_vm3, %v2512_v1  ;;  %535 = vst.msk [vmem:[#allocation4 + $0x18] sm:$0xff] %vm527_vm3, %v2512_v1  ;;  %2179 = vset.pattern.permute.xlu1 %v2518_v43  ;;  %vm1541_vm6 = vcmask 261312   ;;  %s3184_s21 = sld [smem:[#allocation28_spill]] }
  0xf4   : > { %2033 = vmatpush3.bf16.msra.mxu0 %v2032_v12  ;;  %s522_s30 = scalar_lea.vmem %s3113_s3, %s1886_s4  ;;  %s3185_s1 = sld [smem:[#allocation34_spill]] }
  0xf5   : > { %2039 = vmatpush3.bf16.msra.mxu1 %v2038_v13  ;;  %2040 = vmatprep.subr.bf16.mxu0 %v2511_v0  ;;  %v774_v36 = vld [vmem:[%s522_s30] sm:$0xf]  ;;  %s1905_s24 = sshll.u32 %s2492_s12, 7  ;;  %s515_s19 = scalar_lea.vmem [#allocation18], %s2878_s9 }
  0xf6   : > { %1977 = vmatprep.subr.mxu1 %v2512_v1  ;;  %v775_v37 = vunpack.c.l.bf16 %v774_v36  ;;  %v870_v42 = vld [vmem:[#allocation4] sm:$0xff]  ;;  %s1687_s16 = sshll.u32 %s515_s19, 4  ;;  %s3186_s14 = sld [smem:[#allocation35_spill]]  ;;  %s3062_s16 = int_to_ptr.vmem [resolvable:$true] %s1687_s16 }
  0xf7   : > { %1953 = vmatmul.mubr.msk.f32.vlgmr.msra.gmra.mrb[0].mxu0 %vm536_vm0, %v538_v14  ;;  %v2976_v48 = vld [vmem:[#allocation3] sm:$0xff]  ;;  %s2406_s23 = scalar_lea.vmem %s3062_s16, 128  ;;  %s2522_s12 = smov [#allocation18]  }
  0xf8   : > { %1964 = vmatmul.mubr.msk.f32.vlgmr.msra.gmra.mrb[0].mxu1 %vm536_vm0, %v617_v15  ;;  %1974 = vmatprep.mubr.msk.f32.mxu0 %vm2513_vm1, %v2512_v1  ;;  %v2996_v58 = vld [vmem:[#allocation3 + $0x10] sm:$0xff]  ;;  %v1040_v8 = vld [vmem:[#allocation3 + $0x8] sm:$0xff]  ;;  %p2407_p2 = scmp.ne.s32.totalorder %s3062_s16, %s2406_s23  ;;  %s2410_s9 = sshll.u32 %s2522_s12, 4  ;;  %s2411_s9 = int_to_ptr.vmem [resolvable:$false] %s2410_s9 }
  0xf9   : > { %1979 = vmatprep.mubr.msk.f32.mxu1 %vm2513_vm1, %v2512_v1  ;;  %2042 = vmatpush3.bf16.msra.mxu0 %v2041_v18  ;;  %v1429_v11 = vld [vmem:[#allocation3 + $0x18] sm:$0xff]  ;;  %p3188_p1 = scmp.ne.s32.totalorder %s3184_s21, 0  ;;  %s2412_s4 = scalar_lea.vmem %s2411_s9, 256 }
  0xfa   : > { %2043 = vmatprep.subr.bf16.mxu0 %v2511_v0  ;;  %p2413_p9 = scmp.lt.s32.totalorder %s3062_s16, %s2411_s9  ;;  %p2414_p7 = scmp.lt.s32.totalorder %s2412_s4, %s2406_s23 }
  0xfb   : > { %p2408_p12 = pnand %p2407_p2, %p3188_p1 }
  0xfc   : > { %p2415_p11 = por %p2414_p7, %p2413_p9 }
  0xfd   : > { %2045 = vmatpush3.bf16.msra.mxu0 %v2044_v21  ;;  %p2409_p8 = pneg %p2408_p12 }
  0xfe   : > { %1997 = vmatprep.subr.mxu0 %v2512_v1 }
  0xff   : > { %p2416_p5 = pnand %p2415_p11, %p2409_p8 }
 0x100   : > { %1975 = vmatmul.mubr.msk.f32.vlgmr.msra.gmra.mrb[2].mxu0 %vm536_vm0, %v618_v22 }
 0x101   : > { %1999 = vmatprep.mubr.msk.f32.mxu0 %vm2513_vm1, %v2512_v1 }
 0x1ca   : > { %v612_v23 = vpop.f32.mrb[0].mxu0 }
 0x1cb   : > { %616 = vst.msk [vmem:[#allocation2] sm:$0xff] %vm536_vm0, %v612_v23  ;;  %v1954_v24 = vpop.f32.mrb[1].mxu0  ;;  %v693_v25 = vpop.f32.mrb[0].mxu1 }
 0x1cc   : > { %v1965_v26 = vpop.f32.mrb[1].mxu1  ;;  %963 = vrot.lane.b32.xlu1 %v693_v25, %s2514_s15  ;;  %1978 = vmatpush3.xpose.msk.msra.mxu1 %vm777_vm2, %v693_v25 }
 0x1cd   : > { %1982 = vmatprep.subr.mxu1 %v2512_v1 }
 0x1d2   : > { %v776_v27 = vld [vmem:[#allocation2] sm:$0xff] }
 0x1d3   : > { %961 = vrot.lane.b32.xlu1 %v776_v27, %s2514_s15  ;;  %1980 = vmatmul.mubr.msk.f32.vlgmr.msra.gmra.mrb[2].mxu1 %vm777_vm2, %v776_v27  ;;  %v2959_v34 = vpop.f32.mrb[2].mxu0 }
 0x1d4   : > { %1984 = vmatprep.mubr.msk.f32.mxu1 %vm2513_vm1, %v2512_v1  ;;  %v1976_v35 = vpop.f32.mrb[3].mxu0  ;;  %1983 = vmatpush3.msra.mxu1 %v2959_v34 }
 0x1d5   : > { %1987 = vmatprep.subr.mxu1 %v2512_v1 }
 0x1d7   : > { %1158 = vrot.lane.b32.xlu1 %v693_v25, %s2515_s28 }
 0x1db   : > { %1156 = vrot.lane.b32.xlu1 %v776_v27, %s2515_s28 }
 0x1df   : > { %1352 = vrot.lane.b32.xlu1 %v693_v25, %s2516_s25 }
 0x1e3   : > { %1350 = vrot.lane.b32.xlu1 %v776_v27, %s2516_s25 }
 0x23e   : > { %v964_v28 = vpop.permute.xlu1 %963 }
 0x245   : > { %v2942_v29 = vpop.permute.xlu1 %961 }
 0x249   : > { %v1159_v30 = vpop.permute.xlu1 %1158 }
 0x24a   : > { %1998 = vmatpush3.xpose.msk.msra.mxu0 %vm777_vm2, %v1159_v30 }
 0x24b   : > { %2007 = vmatprep.subr.mxu0 %v2512_v1 }
 0x24d   : > { %v1157_v31 = vpop.permute.xlu1 %1156 }
 0x24e   : > { %2000 = vmatmul.mubr.msk.f32.vlgmr.msra.gmra.mrb[4].mxu0 %vm777_vm2, %v1157_v31 }
 0x24f   : > { %2009 = vmatprep.mubr.msk.f32.mxu0 %vm2513_vm1, %v2512_v1 }
 0x251   : > { %v1353_v32 = vpop.permute.xlu1 %1352 }
 0x252   : > { %2008 = vmatpush3.xpose.msk.msra.mxu0 %vm777_vm2, %v1353_v32 }
 0x253   : > { %2046 = vmatprep.subr.bf16.mxu0 %v2511_v0 }
 0x255   : > { %v1351_v33 = vpop.permute.xlu1 %1350 }
 0x256   : > { %2010 = vmatmul.mubr.msk.f32.vlgmr.msra.gmra.mrb[6].mxu0 %vm777_vm2, %v1351_v33 }
 0x257   : > { %2025 = vmatprep.mubr.msk.f32.mxu0 %vm2513_vm1, %v2512_v1 }
 0x2a6   : > { %v850_v38 = vpop.f32.mrb[2].mxu1 }
 0x2a7   : > { %v851_v39 = vadd.f32 %v850_v38, %v775_v37  ;;  %v1981_v40 = vpop.f32.mrb[3].mxu1 }
 0x2a9   : > { %v855_v41 = vsel %vm777_vm2, %v851_v39, -inf }
 0x2aa   : > { %856 = vmax.xlane.f32.xlu0 %v855_v41 }
 0x321   : > { %v1230_v44 = vpop.f32.mrb[4].mxu0 }
 0x322   : > { %v2001_v45 = vpop.f32.mrb[5].mxu0  ;;  %v1231_v52 = vadd.f32 %v1230_v44, %v775_v37 }
 0x324   : > { %v1236_v53 = vsel %vm777_vm2, %v1231_v52, -inf }
 0x329   : > { %v1424_v46 = vpop.f32.mrb[6].mxu0 }
 0x32a   : > { %v2011_v47 = vpop.f32.mrb[7].mxu0  ;;  %v1425_v5 = vadd.f32 %v1424_v46, %v775_v37 }
 0x32c   : > { %v1430_v7 = vsel %vm777_vm2, %v1425_v5, -inf }
 0x337   : > { %v857_v49 = vpop.xlane.xlu0 %856 }
 0x338   : > { %v2979_v50 = vmax.f32 %v2976_v48, %v857_v49 }
 0x33a   : > { %v859_v51 = vsub.f32 %v2976_v48, %v2979_v50  ;;  %960 = vst.msk [vmem:[#allocation3] sm:$0xff] %vm527_vm3, %v2979_v50  ;;  %864 = vperm.xlu0 %2178, %v2979_v50   ;;  %v1057_v48 = vld [vmem:[#allocation4 + $0x8] sm:$0xff] }
 0x33c   : > { %v860_v36 = vmul.f32 1.442695, %v859_v51  ;;  %v1252_v51 = vld [vmem:[#allocation4 + $0x10] sm:$0xff] }
 0x359   : > { %1237 = vmax.xlane.f32.xlu0 %v1236_v53 }
 0x3b9   : > { %v865_v54 = vpop.permute.xlu0 %864 }
 0x3ba   : > { %v867_v55 = vsub.f32 %v851_v39, %v865_v54 }
 0x3bc   : > { %v868_v56 = vmul.f32 1.442695, %v867_v55  ;;  %v1446_v55 = vld [vmem:[#allocation4 + $0x18] sm:$0xff] }
 0x3be   : > { %2180 = vpow2.f32 %v868_v56 }
 0x3c8   : > { %v2181_v57 = vpop.eup %2180 }
 0x3c9   : > { %1985 = vmatmul.mubr.msk.f32.vlgmr.msra.gmra.mrb[4].mxu1 %vm777_vm2, %v2181_v57  ;;  %v872_v16 = vsel %vm777_vm2, %v2181_v57, 0.0 }
 0x3ca   : > { %1988 = vmatpush3.xpose.msk.msra.mxu1 %vm777_vm2, %v964_v28  ;;  %1989 = vmatprep.mubr.msk.f32.mxu1 %vm2513_vm1, %v2512_v1 }
 0x3cb   : > { %1992 = vmatprep.subr.mxu1 %v2512_v1 }
 0x3cd   : > { %1990 = vmatmul.mubr.msk.f32.vlgmr.msra.gmra.mrb[6].mxu1 %vm777_vm2, %v2942_v29 }
 0x3ce   : > { %1994 = vmatprep.mubr.msk.f32.mxu1 %vm2513_vm1, %v2512_v1 }
 0x3e6   : > { %v1238_v59 = vpop.xlane.xlu0 %1237 }
 0x3e7   : > { %v2999_v60 = vmax.f32 %v2996_v58, %v1238_v59 }
 0x3e9   : > { %v1240_v61 = vsub.f32 %v2996_v58, %v2999_v60  ;;  %1349 = vst.msk [vmem:[#allocation3 + $0x10] sm:$0xff] %vm527_vm3, %v2999_v60  ;;  %1245 = vperm.xlu0 %2178, %v2999_v60   ;;  %v951_v60 = vld [vmem:[#allocation5] sm:$0xff] }
 0x468   : > { %v1246_v17 = vpop.permute.xlu0 %1245 }
 0x469   : > { %v1248_v18 = vsub.f32 %v1231_v52, %v1246_v17  ;;  %v1590_v17 = vld [vmem:[#allocation17 + $0x10] sm:$0xff] }
 0x46b   : > { %v1249_v21 = vmul.f32 1.442695, %v1248_v18  ;;  %v1591_v18 = vld [vmem:[#allocation17 + $0x18] sm:$0xff] }
 0x49c   : > { %v3006_v62 = vpop.f32.mrb[4].mxu1 }
 0x49d   : > { %v1986_v63 = vpop.f32.mrb[5].mxu1 }
 0x4a0   : > { %v1035_v2 = vpop.f32.mrb[6].mxu1 }
 0x4a1   : > { %v1036_v3 = vadd.f32 %v1035_v2, %v775_v37  ;;  %v1991_v4 = vpop.f32.mrb[7].mxu1  ;;  %v1241_v37 = vmul.f32 1.442695, %v1240_v61 }
 0x4a3   : > { %v1041_v6 = vsel %vm777_vm2, %v1036_v3, -inf }
 0x4a4   : > { %1042 = vmax.xlane.f32.xlu1 %v1041_v6 }
 0x4a8   : > { %1431 = vmax.xlane.f32.xlu1 %v1430_v7 }
 0x531   : > { %v1043_v9 = vpop.xlane.xlu1 %1042 }
 0x532   : > { %v1044_v10 = vmax.f32 %v1040_v8, %v1043_v9 }
 0x534   : > { %v1045_v12 = vsub.f32 %v1040_v8, %v1044_v10  ;;  %1155 = vst.msk [vmem:[#allocation3 + $0x8] sm:$0xff] %vm527_vm3, %v1044_v10  ;;  %1050 = vperm.xlu1 %2179, %v1044_v10  }
 0x535   : > { %v1432_v13 = vpop.xlane.xlu1 %1431 }
 0x536   : > { %v1433_v14 = vmax.f32 %v1429_v11, %v1432_v13  ;;  %v1046_v35 = vmul.f32 1.442695, %v1045_v12 }
 0x538   : > { %v1434_v15 = vsub.f32 %v1429_v11, %v1433_v14  ;;  %1543 = vst.msk [vmem:[#allocation3 + $0x18] sm:$0xff] %vm527_vm3, %v1433_v14  ;;  %1065 = vrot.lane.b32.xlu1 %v2959_v34, %s2514_s15  ;;  %s3187_s15 = smov %s3186_s14 }
 0x53a   : > { %v1435_v38 = vmul.f32 1.442695, %v1434_v15  ;;  %v1589_v15 = vld [vmem:[#allocation17 + $0x8] sm:$0xff] }
 0x53c   : > { %1439 = vperm.xlu1 %2179, %v1433_v14   ;;  %v1588_v14 = vld [vmem:[#allocation17] sm:$0xff] }
 0x540   : > { %1259 = vrot.lane.b32.xlu1 %v2959_v34, %s2515_s28  ;;  %s3060_s28 = scalar_lea.hbm %s3186_s14, %s1905_s24 }
 0x544   : > { %1453 = vrot.lane.b32.xlu1 %v2959_v34, %s2516_s25  ;;  %s1674_s25 = scalar_lea.sflag [#allocation8], %s2875_s13 }
 0x568   : > { %873 = vadd.xlane.f32.xlu1 %v872_v16  ;;  %v2047_v16 = vpack.c.bf16 %v1589_v15, %v1588_v14 }
 0x56a   : > { %2048 = vmatpush3.bf16.msra.mxu0 %v2047_v16 }
 0x56b   : > { %2049 = vmatprep.subr.bf16.mxu0 %v2511_v0 }
 0x5b3   : > { %v1051_v19 = vpop.permute.xlu1 %1050 }
 0x5b4   : > { %v1053_v20 = vsub.f32 %v1036_v3, %v1051_v19  ;;  %v2050_v19 = vpack.c.bf16 %v1591_v18, %v1590_v17 }
 0x5b6   : > { %v1054_v22 = vmul.f32 1.442695, %v1053_v20  ;;  %2051 = vmatpush3.bf16.msra.mxu0 %v2050_v19 }
 0x5b7   : > { %v1066_v23 = vpop.permute.xlu1 %1065 }
 0x5b8   : > { %2182 = vpow2.f32 %v1054_v22  ;;  %1993 = vmatpush3.msra.mxu1 %v1066_v23 }
 0x5b9   : > { %2002 = vmatprep.subr.mxu1 %v2512_v1  ;;  %2184 = vpow2.f32 %v1249_v21 }
 0x5bb   : > { %v1440_v24 = vpop.permute.xlu1 %1439 }
 0x5bc   : > { %v1442_v25 = vsub.f32 %v1425_v5, %v1440_v24 }
 0x5be   : > { %v1443_v26 = vmul.f32 1.442695, %v1442_v25 }
 0x5bf   : > { %v1260_v27 = vpop.permute.xlu1 %1259 }
 0x5c0   : > { %2186 = vpow2.f32 %v1443_v26 }
 0x5c1   : > { %2188 = vpow2.f32 %v1046_v35 }
 0x5c2   : > { %v2183_v28 = vpop.eup %2182  ;;  %2190 = vpow2.f32 %v860_v36 }
 0x5c3   : > { %1995 = vmatmul.mubr.msk.f32.vlgmr.msra.gmra.mrb[8].mxu1 %vm777_vm2, %v2183_v28  ;;  %v1059_v29 = vsel %vm777_vm2, %v2183_v28, 0.0  ;;  %v2185_v30 = vpop.eup %2184  ;;  %v1454_v31 = vpop.permute.xlu1 %1453  ;;  %2192 = vpow2.f32 %v1241_v37 }
 0x5c4   : > { %2003 = vmatpush3.msra.mxu1 %v1260_v27  ;;  %1060 = vadd.xlane.f32.xlu0 %v1059_v29  ;;  %v1254_v32 = vsel %vm777_vm2, %v2185_v30, 0.0  ;;  %2194 = vpow2.f32 %v1435_v38 }
 0x5c5   : > { %2004 = vmatprep.mubr.msk.f32.mxu1 %vm2513_vm1, %v2512_v1  ;;  %2012 = vmatprep.subr.mxu1 %v2512_v1 }
 0x5c7   : > { %2005 = vmatmul.mubr.msk.f32.vlgmr.msra.gmra.mrb[10].mxu1 %vm777_vm2, %v2185_v30 }
 0x5c8   : > { %2013 = vmatpush3.msra.mxu1 %v1454_v31  ;;  %1255 = vadd.xlane.f32.xlu0 %v1254_v32 }
 0x5c9   : > { %2014 = vmatprep.mubr.msk.f32.mxu1 %vm2513_vm1, %v2512_v1 }
 0x5ca   : > { %v2187_v33 = vpop.eup %2186 }
 0x5cb   : > { %2015 = vmatmul.mubr.msk.f32.vlgmr.msra.gmra.mrb[12].mxu1 %vm777_vm2, %v2187_v33  ;;  %v1448_v34 = vsel %vm777_vm2, %v2187_v33, 0.0  ;;  %v2189_v1 = vpop.eup %2188 }
 0x5cc   : > { %1449 = vadd.xlane.f32.xlu1 %v1448_v34  ;;  %v2191_v39 = vpop.eup %2190  ;;  %v1058_v49 = vmul.f32 %v2189_v1, %v1057_v48 }
 0x5cd   : > { %v2193_v40 = vpop.eup %2192  ;;  %v871_v43 = vmul.f32 %v2191_v39, %v870_v42 }
 0x5ce   : > { %v2195_v41 = vpop.eup %2194  ;;  %v1253_v53 = vmul.f32 %v2193_v40, %v1252_v51 }
 0x5cf   : > { %v1447_v57 = vmul.f32 %v2195_v41, %v1446_v55 }
 0x5dd   : > { %1144 = vperm.xlu1 %2179, %v2189_v1  }
 0x5de   : > { %954 = vperm.xlu0 %2178, %v2191_v39  }
 0x5e2   : > { %1338 = vperm.xlu0 %2178, %v2193_v40  }
 0x5e6   : > { %1532 = vperm.xlu0 %2178, %v2195_v41  }
 0x5f5   : > { %v874_v44 = vpop.xlane.xlu1 %873 }
 0x5f6   : > { %v875_v45 = vadd.f32 %v874_v44, %v871_v43 }
 0x5f8   : > { %877 = vst.msk [vmem:[#allocation4] sm:$0xff] %vm527_vm3, %v875_v45 }
 0x5ff   : > { %v1547_v46 = vld [vmem:[#allocation4] sm:$0xff] }
 0x600   : > { %2196 = vrcp.f32 %v1547_v46  ;;  %v1902_v46 = vld [vmem:[%s3185_s1] ss:$0 sm:$0xff] }
 0x60a   : > { %v2197_v47 = vpop.eup %2196 }
 0x60b   : > { %1552 = vperm.xlu0 %2178, %v2197_v47  }
 0x651   : > { %v1061_v50 = vpop.xlane.xlu0 %1060 }
 0x652   : > { %v1062_v52 = vadd.f32 %v1061_v50, %v1058_v49 }
 0x654   : > { %1063 = vst.msk [vmem:[#allocation4 + $0x8] sm:$0xff] %vm527_vm3, %v1062_v52 }
 0x655   : > { %v1256_v54 = vpop.xlane.xlu0 %1255 }
 0x656   : > { %v1257_v56 = vadd.f32 %v1256_v54, %v1253_v53 }
 0x658   : > { %1258 = vst.msk [vmem:[#allocation4 + $0x10] sm:$0xff] %vm527_vm3, %v1257_v56 }
 0x659   : > { %v1450_v58 = vpop.xlane.xlu1 %1449 }
 0x65a   : > { %v1451_v59 = vadd.f32 %v1450_v58, %v1447_v57 }
 0x65b   : > { %v1557_v5 = vld [vmem:[#allocation4 + $0x8] sm:$0xff] }
 0x65c   : > { %1452 = vst.msk [vmem:[#allocation4 + $0x18] sm:$0xff] %vm527_vm3, %v1451_v59 }
 0x65d   : > { %v955_v61 = vpop.permute.xlu0 %954  ;;  %v1145_v20 = vpop.permute.xlu1 %1144 }
 0x65e   : > { %v957_v63 = vmul.f32 %v955_v61, %v951_v60 }
 0x65f   : > { %v1567_v2 = vld [vmem:[#allocation4 + $0x10] sm:$0xff] }
 0x660   : > { %v958_v3 = vadd.f32 %v957_v63, %v3006_v62  ;;  %2198 = vrcp.f32 %v1567_v2 }
 0x661   : > { %2200 = vrcp.f32 %v1557_v5  ;;  %v1339_v25 = vpop.permute.xlu0 %1338 }
 0x662   : > { %959 = vst.msk [vmem:[#allocation5] sm:$0xff] %vm777_vm2, %v958_v3 }
 0x663   : > { %v1577_v8 = vld [vmem:[#allocation4 + $0x18] sm:$0xff] }
 0x664   : > { %2202 = vrcp.f32 %v1577_v8 }
 0x665   : > { %v1533_v30 = vpop.permute.xlu0 %1532 }
 0x669   : > { %v1141_v21 = vld [vmem:[#allocation5] sm:$0xff] }
 0x66a   : > { %v2199_v4 = vpop.eup %2198  ;;  %v1147_v22 = vmul.f32 %v1145_v20, %v1141_v21 }
 0x66b   : > { %1572 = vperm.xlu0 %2178, %v2199_v4   ;;  %v2201_v12 = vpop.eup %2200 }
 0x66e   : > { %v2203_v13 = vpop.eup %2202 }
 0x68a   : > { %v1553_v34 = vpop.permute.xlu0 %1552 }
 0x696   : > { %v1137_v6 = vpop.f32.mrb[8].mxu1 }
 0x697   : > { %v1996_v7 = vpop.f32.mrb[9].mxu1  ;;  %1149 = vrot.lane.b32.xlu1 %v1137_v6, %s2519_s17 }
 0x69a   : > { %v1331_v9 = vpop.f32.mrb[10].mxu1 }
 0x69b   : > { %1343 = vrot.lane.b32.xlu1 %v1331_v9, %s2520_s29  ;;  %v2006_v10 = vpop.f32.mrb[11].mxu1 }
 0x69e   : > { %v1525_v11 = vpop.f32.mrb[12].mxu1 }
 0x69f   : > { %1537 = vrot.lane.b32.xlu1 %v1525_v11, %s2521_s27  ;;  %v2016_v62 = vpop.f32.mrb[13].mxu1 }
 0x6a3   : > { %1562 = vperm.xlu1 %2179, %v2201_v12  }
 0x6a7   : > { %1582 = vperm.xlu1 %2179, %v2203_v13  }
 0x6ea   : > { %v1573_v39 = vpop.permute.xlu0 %1572 }
 0x709   : > { %v1150_v23 = vpop.permute.xlu1 %1149 }
 0x70a   : > { %v1152_v24 = vadd.f32 %v1150_v23, %v1147_v22 }
 0x70c   : > { %1154 = vst.msk [vmem:[#allocation5] sm:$0xff] %vm1153_vm4, %v1152_v24 }
 0x70d   : > { %v1344_v28 = vpop.permute.xlu1 %1343 }
 0x711   : > { %v1538_v32 = vpop.permute.xlu1 %1537 }
 0x713   : > { %v1335_v26 = vld [vmem:[#allocation5] sm:$0xff] }
 0x714   : > { %v1341_v27 = vmul.f32 %v1339_v25, %v1335_v26 }
 0x716   : > { %v1346_v29 = vadd.f32 %v1344_v28, %v1341_v27 }
 0x718   : > { %1348 = vst.msk [vmem:[#allocation5] sm:$0xff] %vm1347_vm5, %v1346_v29 }
 0x71f   : > { %v1529_v31 = vld [vmem:[#allocation5] sm:$0xff] }
 0x720   : > { %v1535_v0 = vmul.f32 %v1533_v30, %v1529_v31 }
 0x722   : > { %v1540_v33 = vadd.f32 %v1538_v32, %v1535_v0  ;;  %v1563_v37 = vpop.permute.xlu1 %1562 }
 0x724   : > { %1542 = vst.msk [vmem:[#allocation5] sm:$0xff] %vm1541_vm6, %v1540_v33 }
 0x726   : > { %v1583_v42 = vpop.permute.xlu1 %1582 }
 0x72b   : > { %v1549_v35 = vld [vmem:[#allocation5] sm:$0xff] }
 0x72c   : > { %v1555_v36 = vmul.f32 %v1553_v34, %v1549_v35 }
 0x72e   : > { %1556 = vst.msk [vmem:[#allocation5] sm:$0xff] %vm777_vm2, %v1555_v36 }
 0x735   : > { %v1559_v38 = vld [vmem:[#allocation5] sm:$0xff] }
 0x736   : > { %v1565_v1 = vmul.f32 %v1563_v37, %v1559_v38 }
 0x738   : > { %1566 = vst.msk [vmem:[#allocation5] sm:$0xff] %vm1153_vm4, %v1565_v1 }
 0x73f   : > { %v1569_v40 = vld [vmem:[#allocation5] sm:$0xff] }
 0x740   : > { %v1575_v41 = vmul.f32 %v1573_v39, %v1569_v40 }
 0x742   : > { %1576 = vst.msk [vmem:[#allocation5] sm:$0xff] %vm1347_vm5, %v1575_v41 }
 0x749   : > { %v1579_v43 = vld [vmem:[#allocation5] sm:$0xff] }
 0x74a   : > { %v1585_v44 = vmul.f32 %v1583_v42, %v1579_v43 }
 0x74c   : > { %1586 = vst.msk [vmem:[#allocation5] sm:$0xff] %vm1541_vm6, %v1585_v44 }
 0x753   : > { %v1587_v45 = vld [vmem:[#allocation5] sm:$0xff] }
 0x754   : > { %2026 = vmatmul.mubr.msk.f32.vlgmr.msra.gmra.mrb[8].mxu0 %vm536_vm0, %v1587_v45 }
 0x827   : > { %v1668_v47 = vpop.f32.mrb[8].mxu0 }
 0x828   : > { %v1669_v48 = vadd.f32 %v1902_v46, %v1668_v47  ;;  %v2027_v49 = vpop.f32.mrb[9].mxu0 }
 0x82a   : > { %1672 = vst.msk [vmem:[%s515_s19] sm:$0xff] %vm536_vm0, %v1669_v48 }
 0x82b   : > { %2419 = shalt.err (!%p2416_p5)
}
 0x82c   : > { %s2420_s13 = scalar_lea.hbm %s3060_s28, 128  ;;  %s2424_s30 = scalar_lea.hbm %s3187_s15, 256 }
 0x82d   : > { %p2421_p3 = scmp.ne.s32.totalorder %s3060_s28, %s2420_s13  ;;  %p2425_p4 = scmp.lt.u32.totalorder %s3060_s28, %s3187_s15 }
 0x82e   : > { %p2426_p10 = scmp.lt.u32.totalorder %s2424_s30, %s2420_s13  ;;  %p2428_p2 = scmp.lt.u32.totalorder %s2420_s13, %s3060_s28 }
 0x82f   : > { %p2422_p6 = pnand %p2421_p3, %p3188_p1 }
 0x830   : > { %p2427_p13 = por %p2426_p10, %p2425_p4 }
 0x831   : > { %p2423_p0 = pneg %p2422_p6 }
 0x832   : > { %p2429_p12 = por %p2428_p2, %p2427_p13 }
 0x834   : > { %p2430_p8 = pnand %p2429_p12, %p2423_p0 }
 0x836   : > { %2433 = shalt.err (!%p2430_p8)
}
 0x837   : > { %2074 = dma.vmem_to_hbm [thread:$0]  (%p3188_p1), %s3062_s16, 128, %s3060_s28, %s1674_s25  }
 0x838 PF: > { %s3189_s27 = sld [smem:[#allocation24_spill]]  ;;  %s3190_s6 = sld [smem:[#allocation30_spill]] }
 0x839   : > { %s3191_s22 = sld [smem:[#allocation26_spill]] }
 0x83e   : > { %s1699_s1 = sand.u32 1, %s3189_s27   ;;  %p3192_p9 = scmp.ne.s32.totalorder %s3190_s6, 0 }
 0x83f   : > { %p3193_p7 = scmp.ge.s32.totalorder %s3191_s22, 2  ;;  %s1700_s24 = scalar_lea.sflag [#allocation8], %s1699_s1 }
 0x841   : > { %p2100_p11 = pnand %p3193_p7, %p3192_p9 }
 0x843   : > { %2475 = dma.done.wait (!%p2100_p11), %s1700_s24, 128  }
 0x844   : > { %2477 = vsyncadd (!%p2100_p11), %s1700_s24, 4294967168  ;;  %s30_s14 = sadd.s32 1, %s3191_s22   ;;  %s3194_s21 = sld [smem:[#allocation29_spill]] }
 0x845   : > { %p27_p5 = scmp.ge.s32.totalorder %s30_s14, 4   ;;  %s3195_s12 = sld [smem:[#allocation25_spill]] }
 0x846   : > { %s3196_s13 = sld [smem:[#allocation27_spill]]  ;;  %s3197_s30 = smov %s2484_s10 }
 0x847   : > { %s3198_s10 = smov %s2488_s11  ;;  %29 = sbr.rel (!%p27_p5) target bundleno = 16 (0x10), region = 158 }
 0x84a   : > { %s3199_s11 = smov %s3194_s21 }
 0x84e   :  { %1705 = vsyncpa [#allocation7], 1 }
 0x84f   :  { %1707 = vsyncpa [#allocation7 + $0x1], 1 }
 0x850   :  { %1708 = vsyncpa [#allocation10], 1 }
 0x851   :  { %1710 = vsyncpa [#allocation10 + $0x1], 1 }
 0x852   :  { %1711 = vsyncpa [#allocation13], 1 }
 0x853   :  { %1712 = vsyncpa [#allocation16], 1 }
 0x854   :  { %1713 = vsyncpa [#allocation8], 1 }
 0x855   :  { %1715 = vsyncpa [#allocation8 + $0x1], 1 }

</bundles_post_ra>
